<compile_context>
chip_gen: v7x
topology: tpu7x:2x2x1
jax: 0.10.0
libtpu: 0.0.40
codegen_flags: <defaults>
</compile_context>

<pallas_src>
import math
import functools

import jax
import jax.numpy as jnp
from jax import lax
from jax.experimental import pallas as pl
from jax.experimental.pallas import tpu as pltpu

LANE = 128
SUB = 8                                # f32 sublane block
VMEM_LIMIT = 48 * 1024 * 1024          # leave headroom below 64 MiB (v7x)


def _round_up(x, m):
    return (x + m - 1) // m * m


def _pick_chunk(L, max_chunk=256):
    if L % SUB:
        raise ValueError("sequence length must be a multiple of 8")
    c = min(max_chunk, L)
    c = (c // SUB) * SUB
    while c > SUB and L % c:
        c -= SUB
    return c


def _reversal_matrix(chunk):
    i = jnp.arange(chunk)
    return (i[:, None] + i[None, :] == chunk - 1).astype(jnp.float32)


# ----------------------------------------------------------------------------
# row-tiled matmul (in_proj): (M, K)bf16 @ (K, N)bf16 -> (M, N)f32
# ----------------------------------------------------------------------------
def _matmul_kernel(x_ref, w_ref, o_ref):
    o_ref[...] = jnp.dot(x_ref[...], w_ref[...],
                         preferred_element_type=jnp.float32)


def pallas_matmul(x, w, tile_m=256):
    M, K = x.shape
    N = w.shape[1]
    tm = min(tile_m, M)
    return pl.pallas_call(
        _matmul_kernel,
        out_shape=jax.ShapeDtypeStruct((M, N), jnp.float32),
        grid=(pl.cdiv(M, tm),),
        in_specs=[pl.BlockSpec((tm, K), lambda i: (i, 0)),
                  pl.BlockSpec((K, N), lambda i: (0, 0))],
        out_specs=pl.BlockSpec((tm, N), lambda i: (i, 0)),
        compiler_params=pltpu.CompilerParams(
            dimension_semantics=("parallel",),
            vmem_limit_bytes=VMEM_LIMIT),
    )(x, w)


# ----------------------------------------------------------------------------
# depthwise 3D conv (k=3, pad=1, groups=C) + bias + SiLU
# grid = (batch, output-depth); the three depth taps come from the same padded
# array passed three times with depth-shifted index maps (no whole-volume VMEM).
# ----------------------------------------------------------------------------
def _dwconv3d_silu_kernel(x0_ref, x1_ref, x2_ref, w_ref, b_ref, o_ref, *, W, H):
    refs = (x0_ref, x1_ref, x2_ref)
    Cp = o_ref.shape[-1]
    acc = jnp.zeros((W, H, Cp), jnp.float32)
    k = 0
    for kd in range(3):
        for kw in range(3):
            for kh in range(3):
                patch = refs[kd][0, 0, kw:kw + W, kh:kh + H, :]   # (W, H, Cp)
                acc = acc + patch * w_ref[k, :]
                k += 1
    acc = acc + b_ref[...]
    o_ref[0, 0] = acc * jax.nn.sigmoid(acc)                        # SiLU


def pallas_dwconv3d_silu(x, w27, bias):
    B, D, W, H, Cp = x.shape
    xp = jnp.pad(x, ((0, 0), (1, 1), (1, 1), (1, 1), (0, 0)))
    Wp, Hp = W + 2, H + 2
    kern = functools.partial(_dwconv3d_silu_kernel, W=W, H=H)
    slab = (1, 1, Wp, Hp, Cp)
    return pl.pallas_call(
        kern,
        out_shape=jax.ShapeDtypeStruct((B, D, W, H, Cp), jnp.float32),
        grid=(B, D),
        in_specs=[
            pl.BlockSpec(slab, lambda b, d: (b, d, 0, 0, 0)),
            pl.BlockSpec(slab, lambda b, d: (b, d + 1, 0, 0, 0)),
            pl.BlockSpec(slab, lambda b, d: (b, d + 2, 0, 0, 0)),
            pl.BlockSpec((27, Cp), lambda b, d: (0, 0)),
            pl.BlockSpec((1, Cp), lambda b, d: (0, 0)),
        ],
        out_specs=pl.BlockSpec((1, 1, W, H, Cp), lambda b, d: (b, d, 0, 0, 0)),
        compiler_params=pltpu.CompilerParams(
            dimension_semantics=("parallel", "parallel"),
            vmem_limit_bytes=VMEM_LIMIT),
    )(xp, xp, xp, w27, bias)


# ----------------------------------------------------------------------------
# selective scan, chunked over time.
# grid = (4 directions, batch, 2*L/CHUNK chunks).  The hidden state (N, Cp)
# lives in a persistent VMEM scratch, reset at chunk 0 of each (dir, batch).
# Chunks >= half consume the forward data reversed (MXU reversal matmul), so
# only the forward L-length sequence lives in HBM; only the reversed-half
# outputs (the ones the reference keeps) are written out.
# ----------------------------------------------------------------------------
def _make_scan_kernel(CHUNK, Cp, N, half):
    NB = CHUNK // SUB

    def kernel(xs_ref, rev_ref, wf_ref, dtb_ref, a_ref, d_ref, o_ref,
               dA_ref, dBu_ref, cmat_ref, xbuf_ref, h_ref):
        c_idx = pl.program_id(2)

        @pl.when(c_idx == 0)
        def _():
            h_ref[...] = jnp.zeros_like(h_ref)

        # chunk input; reversed phase reads the same forward chunk backwards
        xbuf_ref[...] = xs_ref[0, 0]

        @pl.when(c_idx >= half)
        def _():
            xbuf_ref[...] = jnp.dot(rev_ref[...], xs_ref[0, 0],
                                    preferred_element_type=jnp.float32)

        xs = xbuf_ref[...]                                          # (CHUNK, Cp)

        # single fused MXU pass: [delta_pre | B | C]
        proj = jnp.dot(xs.astype(jnp.bfloat16), wf_ref[0],
                       preferred_element_type=jnp.float32)          # (CHUNK, Cp+2N)
        delta = jax.nn.softplus(proj[:, :Cp] + dtb_ref[0])          # (CHUNK, Cp)
        Bm = proj[:, Cp:Cp + N]                                     # (CHUNK, N)
        cmat_ref[...] = proj[:, Cp + N:]                            # (CHUNK, N)

        A = a_ref[0]                                                # (N, Cp)
        dA_ref[...] = jnp.exp(delta[:, None, :] * A[None, :, :])    # (CHUNK, N, Cp)
        du = delta * xs
        dBu_ref[...] = du[:, None, :] * Bm[:, :, None]              # (CHUNK, N, Cp)

        # bulk skip path (D * u); recurrence output is accumulated on top
        o_ref[0, 0] = xs * d_ref[0]

        def blk(i, h):
            base = pl.multiple_of(i * SUB, SUB)
            rows = []
            for j in range(SUB):                                    # unrolled
                t = base + j
                h = dA_ref[t] * h + dBu_ref[t]                      # (N, Cp)
                c_row = cmat_ref[pl.ds(t, 1), :]                    # (1, N)
                rows.append(jnp.dot(c_row, h,
                                    preferred_element_type=jnp.float32))
            y_blk = jnp.concatenate(rows, axis=0)                   # (SUB, Cp)
            o_ref[0, 0, pl.ds(base, SUB), :] += y_blk               # 8-row store
            return h

        h_ref[...] = lax.fori_loop(0, NB, blk, h_ref[...])

    return kernel


def pallas_selective_scan(xs_fwd, rev_mat, w_fused, dt_bias, A_neg_T, Dv, chunk):
    G, B, L, Cp = xs_fwd.shape
    N = A_neg_T.shape[1]
    half = L // chunk
    nc = 2 * half
    kernel = _make_scan_kernel(chunk, Cp, N, half)

    xs_map = lambda d, b, c: (d, b, jnp.minimum(c, nc - 1 - c), 0)
    out_map = lambda d, b, c: (d, b, jnp.maximum(c - half, 0), 0)

    return pl.pallas_call(
        kernel,
        out_shape=jax.ShapeDtypeStruct((G, B, L, Cp), jnp.float32),
        grid=(G, B, nc),
        in_specs=[
            pl.BlockSpec((1, 1, chunk, Cp), xs_map),
            pl.BlockSpec((chunk, chunk), lambda d, b, c: (0, 0)),
            pl.BlockSpec((1, Cp, Cp + 2 * N), lambda d, b, c: (d, 0, 0)),
            pl.BlockSpec((1, 1, Cp), lambda d, b, c: (d, 0, 0)),
            pl.BlockSpec((1, N, Cp), lambda d, b, c: (d, 0, 0)),
            pl.BlockSpec((1, 1, Cp), lambda d, b, c: (d, 0, 0)),
        ],
        out_specs=pl.BlockSpec((1, 1, chunk, Cp), out_map),
        scratch_shapes=[
            pltpu.VMEM((chunk, N, Cp), jnp.float32),   # dA
            pltpu.VMEM((chunk, N, Cp), jnp.float32),   # dB*u
            pltpu.VMEM((chunk, N), jnp.float32),       # C
            pltpu.VMEM((chunk, Cp), jnp.float32),      # (possibly reversed) xs
            pltpu.VMEM((N, Cp), jnp.float32),          # carried hidden state
        ],
        compiler_params=pltpu.CompilerParams(
            dimension_semantics=("parallel", "parallel", "arbitrary"),
            vmem_limit_bytes=VMEM_LIMIT),
    )(xs_fwd, rev_mat, w_fused, dt_bias, A_neg_T, Dv)


# ----------------------------------------------------------------------------
# fused LayerNorm + SiLU(z) gate + out_proj, row-tiled
# ----------------------------------------------------------------------------
def _norm_gate_proj_kernel(y_ref, z_ref, g_ref, b_ref, w_ref, o_ref, *, c_real):
    y = y_ref[...]                                      # (tm, Cp) f32, pads are 0
    inv_c = 1.0 / c_real
    mean = jnp.sum(y, axis=-1, keepdims=True) * inv_c
    lane = lax.broadcasted_iota(jnp.int32, y.shape, 1)
    d = jnp.where(lane < c_real, y - mean, 0.0)
    var = jnp.sum(d * d, axis=-1, keepdims=True) * inv_c
    yn = d * lax.rsqrt(var + 1e-5)
    yn = yn * g_ref[...] + b_ref[...]
    z = z_ref[...]
    gated = yn * (z * jax.nn.sigmoid(z))
    o_ref[...] = jnp.dot(gated.astype(jnp.bfloat16), w_ref[...],
                         preferred_element_type=jnp.float32)


def pallas_norm_gate_proj(y, z, gamma, beta, w_out, c_real, tile_m=256):
    M, Cp = y.shape
    Np = w_out.shape[1]
    tm = min(tile_m, M)
    kern = functools.partial(_norm_gate_proj_kernel, c_real=c_real)
    return pl.pallas_call(
        kern,
        out_shape=jax.ShapeDtypeStruct((M, Np), jnp.float32),
        grid=(pl.cdiv(M, tm),),
        in_specs=[pl.BlockSpec((tm, Cp), lambda i: (i, 0)),
                  pl.BlockSpec((tm, Cp), lambda i: (i, 0)),
                  pl.BlockSpec((1, Cp), lambda i: (0, 0)),
                  pl.BlockSpec((1, Cp), lambda i: (0, 0)),
                  pl.BlockSpec((Cp, Np), lambda i: (0, 0))],
        out_specs=pl.BlockSpec((tm, Np), lambda i: (i, 0)),
        compiler_params=pltpu.CompilerParams(
            dimension_semantics=("parallel",),
            vmem_limit_bytes=VMEM_LIMIT),
    )(y, z, gamma, beta, w_out)


# ----------------------------------------------------------------------------
# parameter init (deterministic, synthetic - mirrors the torch module's shapes)
# ----------------------------------------------------------------------------
def init_params(key, d_model, d_state=16, d_conv=3, expand=1,
                dt_min=0.001, dt_max=0.1, dt_init_floor=1e-4):
    d_inner = int(expand * d_model)
    dt_rank = math.ceil(d_model / 16)
    ks = jax.random.split(key, 7)

    in_proj_w = jax.random.normal(ks[0], (2 * d_inner, d_model), jnp.float32) * d_model ** -0.5
    conv_w = jax.random.normal(ks[1], (d_inner, d_conv, d_conv, d_conv), jnp.float32) * 0.1
    conv_b = jax.random.normal(ks[2], (d_inner,), jnp.float32) * 0.01

    x_proj_w = jax.random.uniform(ks[3], (4, dt_rank + 2 * d_state, d_inner),
                                  jnp.float32, -d_inner ** -0.5, d_inner ** -0.5)

    dt_init_std = dt_rank ** -0.5
    dt_w = jax.random.uniform(ks[4], (4, d_inner, dt_rank), jnp.float32,
                              -dt_init_std, dt_init_std)
    dt = jnp.exp(jax.random.uniform(ks[5], (4, d_inner), jnp.float32)
                 * (math.log(dt_max) - math.log(dt_min)) + math.log(dt_min))
    dt = jnp.maximum(dt, dt_init_floor)
    dt_bias = dt + jnp.log(-jnp.expm1(-dt))          # inverse-softplus init

    A = jnp.tile(jnp.arange(1, d_state + 1, dtype=jnp.float32)[None, :], (4 * d_inner, 1))
    A_logs = jnp.log(A)
    Ds = jnp.ones((4 * d_inner,), jnp.float32)

    gamma = jnp.ones((d_inner,), jnp.float32)
    beta = jnp.zeros((d_inner,), jnp.float32)
    out_proj_w = jax.random.normal(ks[6], (d_model, d_inner), jnp.float32) * d_inner ** -0.5

    return dict(d_model=d_model, d_inner=d_inner, d_state=d_state, dt_rank=dt_rank,
                in_proj_w=in_proj_w, conv_w=conv_w, conv_b=conv_b,
                x_proj_w=x_proj_w, dt_w=dt_w, dt_bias=dt_bias,
                A_logs=A_logs, Ds=Ds, gamma=gamma, beta=beta,
                out_proj_w=out_proj_w)


# ----------------------------------------------------------------------------
# one-time weight preprocessing: lane-padding, fused projections, bf16 casts
# ----------------------------------------------------------------------------
def prepare_params(p):
    d_model, d_inner = p['d_model'], p['d_inner']
    N, R = p['d_state'], p['dt_rank']
    Cp = _round_up(d_inner, LANE)
    OutP = _round_up(d_model, LANE)

    def pad_last(a, target):
        return jnp.pad(a, [(0, 0)] * (a.ndim - 1) + [(0, target - a.shape[-1])])

    # in_proj: (2*d_inner, d_model) -> (d_model, 2*Cp)  [x part | z part]
    w_x = jnp.pad(p['in_proj_w'][:d_inner], ((0, Cp - d_inner), (0, 0)))
    w_z = jnp.pad(p['in_proj_w'][d_inner:], ((0, Cp - d_inner), (0, 0)))
    in_proj_T = jnp.concatenate([w_x, w_z], axis=0).T.astype(jnp.bfloat16)

    conv_w = pad_last(p['conv_w'].reshape(d_inner, 27).T, Cp)        # (27, Cp)
    conv_b = pad_last(p['conv_b'].reshape(1, d_inner), Cp)           # (1, Cp)

    # fold dt_proj into x_proj:  xs @ [W_delta | W_B^T | W_C^T]
    wx = p['x_proj_w']                                               # (4, R+2N, d_inner)
    wx_dt, wx_B, wx_C = wx[:, :R], wx[:, R:R + N], wx[:, R + N:]
    W_delta = jnp.einsum('grd,gcr->gdc', wx_dt, p['dt_w'],
                         precision=lax.Precision.HIGHEST)            # (4, d_inner, d_inner)
    W_delta = jnp.pad(W_delta, ((0, 0), (0, Cp - d_inner), (0, Cp - d_inner)))
    W_B_T = jnp.pad(jnp.transpose(wx_B, (0, 2, 1)), ((0, 0), (0, Cp - d_inner), (0, 0)))
    W_C_T = jnp.pad(jnp.transpose(wx_C, (0, 2, 1)), ((0, 0), (0, Cp - d_inner), (0, 0)))
    w_fused = jnp.concatenate([W_delta, W_B_T, W_C_T], axis=-1).astype(jnp.bfloat16)

    dt_bias = pad_last(p['dt_bias'], Cp).reshape(4, 1, Cp)
    A_neg_T = jnp.transpose(-jnp.exp(p['A_logs'].reshape(4, d_inner, N)), (0, 2, 1))
    A_neg_T = pad_last(A_neg_T, Cp)                                  # (4, N, Cp)
    Dv = pad_last(p['Ds'].reshape(4, 1, d_inner), Cp)                # (4, 1, Cp)

    gamma = pad_last(p['gamma'].reshape(1, d_inner), Cp)
    beta = pad_last(p['beta'].reshape(1, d_inner), Cp)
    w_out = jnp.pad(p['out_proj_w'].T,
                    ((0, Cp - d_inner), (0, OutP - d_model))).astype(jnp.bfloat16)

    return dict(d_model=d_model, d_inner=d_inner, Cp=Cp, OutP=OutP,
                in_proj_T=in_proj_T, conv_w=conv_w, conv_b=conv_b,
                w_fused=w_fused, dt_bias=dt_bias, A_neg_T=A_neg_T, Dv=Dv,
                gamma=gamma, beta=beta, w_out=w_out)


# ----------------------------------------------------------------------------
# full forward (glue in JAX, hot paths in Pallas)
# ----------------------------------------------------------------------------
def ss3d_forward(x, kp):
    B, Dd, Wd, Hd, dm = x.shape
    assert Dd == Wd == Hd, "direction sum requires a cubic volume (as in the torch module)"
    Cp = kp['Cp']
    L = Dd * Wd * Hd

    # in_proj (Linear, no bias) -- bf16 MXU, f32 accumulate
    xz = pallas_matmul(x.reshape(B * L, dm).astype(jnp.bfloat16), kp['in_proj_T'])
    xz = xz.reshape(B, Dd, Wd, Hd, 2 * Cp)
    xe, z = xz[..., :Cp], xz[..., Cp:]

    # depthwise conv3d + SiLU
    xconv = pallas_dwconv3d_silu(xe, kp['conv_w'], kp['conv_b'])

    # forward-only directional sequences; flatten orders (D,H,W),(H,W,D),(W,D,H),(D,W,H)
    perms = [(0, 1, 3, 2, 4), (0, 3, 2, 1, 4), (0, 2, 1, 3, 4), (0, 1, 2, 3, 4)]
    xs_fwd = jnp.stack([jnp.transpose(xconv, p).reshape(B, L, Cp) for p in perms], axis=0)

    chunk = _pick_chunk(L)
    rev_mat = _reversal_matrix(chunk)

    ys = pallas_selective_scan(xs_fwd, rev_mat, kp['w_fused'], kp['dt_bias'],
                               kp['A_neg_T'], kp['Dv'], chunk)       # (4, B, L, Cp)

    # inverse reshapes exactly as the torch code (no flip-back; D==W==H)
    o0 = jnp.transpose(ys[0].reshape(B, Dd, Hd, Wd, Cp), (0, 1, 3, 2, 4))
    o1 = jnp.transpose(ys[1].reshape(B, Hd, Wd, Dd, Cp), (0, 3, 2, 1, 4))
    o2 = jnp.transpose(ys[2].reshape(B, Wd, Dd, Hd, Cp), (0, 1, 3, 2, 4))
    o3 = ys[3].reshape(B, Dd, Wd, Hd, Cp)
    ysum = o0 + o1 + o2 + o3
    # TODO(synk): fold these four inverse permutations + the sum into the
    # norm/gate/proj consumer to remove the extra HBM round trips.

    out = pallas_norm_gate_proj(ysum.reshape(B * L, Cp), z.reshape(B * L, Cp),
                                kp['gamma'], kp['beta'], kp['w_out'],
                                c_real=kp['d_inner'])
    return out[:, :kp['d_model']].reshape(B, Dd, Wd, Hd, kp['d_model'])


if __name__ == "__main__":
    key = jax.random.PRNGKey(0)
    kx, kparam = jax.random.split(key)

    d_model = 32                     # -> dt_rank = 2, d_state = 16, d_inner = 32
    B, Dd, Wd, Hd = 2, 4, 4, 4       # cubic spatial (required by the torch module's sum)
    x = jax.random.normal(kx, (B, Dd, Wd, Hd, d_model), jnp.float32)

    raw = init_params(kparam, d_model)
    kp = prepare_params(raw)

    fwd = jax.jit(functools.partial(ss3d_forward, kp=kp))
    out = jax.block_until_ready(fwd(x))

    assert out.shape == (B, Dd, Wd, Hd, d_model)
    assert bool(jnp.all(jnp.isfinite(out)))
    print("KERNEL_OK")
</pallas_src>

<mosaic_0001>
module attributes {stable_mosaic.version = 11 : i64} {
  func.func @_matmul_kernel(%arg0: i32, %arg1: memref<128x32xbf16, #tpu.memory_space<vmem>>, %arg2: memref<32x256xbf16, #tpu.memory_space<vmem>>, %arg3: memref<128x256xf32, #tpu.memory_space<vmem>>) attributes {dimension_semantics = [#tpu.dimension_semantics<parallel>], iteration_bounds = array<i64: 1>, scalar_prefetch = 0 : i64, scratch_operands = 0 : i64, tpu.core_type = #tpu.core_type<tc>, window_params = [{transform_indices = @transform_0, window_bounds = array<i64: 128, 32>}, {pipeline_mode = #tpu.pipeline_mode<synchronous>, transform_indices = @transform_1, window_bounds = array<i64: 32, 256>}, {transform_indices = @transform_2, window_bounds = array<i64: 128, 256>}]} {
    %c0 = arith.constant 0 : index
    %c0_0 = arith.constant 0 : index
    %0 = vector.load %arg1[%c0, %c0_0] : memref<128x32xbf16, #tpu.memory_space<vmem>>, vector<128x32xbf16>
    %c0_1 = arith.constant 0 : index
    %c0_2 = arith.constant 0 : index
    %1 = vector.load %arg2[%c0_1, %c0_2] : memref<32x256xbf16, #tpu.memory_space<vmem>>, vector<32x256xbf16>
    %cst = arith.constant dense<0.000000e+00> : vector<128x256xf32>
    %2 = tpu.matmul %0, %1, %cst {dimension_numbers = #tpu.dot_dimension_numbers<[1], [0], [0], [1], [0, 0, 1, 1], [], []>} : vector<128x32xbf16>, vector<32x256xbf16>, vector<128x256xf32> -> vector<128x256xf32>
    %c0_3 = arith.constant 0 : index
    %c0_4 = arith.constant 0 : index
    %3 = vector.load %arg3[%c0_3, %c0_4] : memref<128x256xf32, #tpu.memory_space<vmem>>, vector<128x256xf32>
    tpu.vector_store %arg3[%c0_3, %c0_4], %2 {strides = array<i32>} : memref<128x256xf32, #tpu.memory_space<vmem>>, vector<128x256xf32>,
    return
  }
  func.func @transform_0(%arg0: i32) -> (i32, i32) {
    %c0_i32 = arith.constant 0 : i32
    %c0_i32_0 = arith.constant 0 : i32
    return %arg0, %c0_i32 : i32, i32
  }
  func.func @transform_1(%arg0: i32) -> (i32, i32) {
    %c0_i32 = arith.constant 0 : i32
    %c0_i32_0 = arith.constant 0 : i32
    %c0_i32_1 = arith.constant 0 : i32
    return %c0_i32, %c0_i32_0 : i32, i32
  }
  func.func @transform_2(%arg0: i32) -> (i32, i32) {
    %c0_i32 = arith.constant 0 : i32
    %c0_i32_0 = arith.constant 0 : i32
    return %arg0, %c0_i32 : i32, i32
  }
}

module attributes {stable_mosaic.version = 11 : i64} {
  func.func @_dwconv3d_silu_kernel(%arg0: i32, %arg1: i32, %arg2: memref<1x1x6x6x128xf32, #tpu.memory_space<vmem>>, %arg3: memref<1x1x6x6x128xf32, #tpu.memory_space<vmem>>, %arg4: memref<1x1x6x6x128xf32, #tpu.memory_space<vmem>>, %arg5: memref<27x128xf32, #tpu.memory_space<vmem>>, %arg6: memref<1x128xf32, #tpu.memory_space<vmem>>, %arg7: memref<1x1x4x4x128xf32, #tpu.memory_space<vmem>>) attributes {dimension_semantics = [#tpu.dimension_semantics<parallel>, #tpu.dimension_semantics<parallel>], iteration_bounds = array<i64: 2, 4>, scalar_prefetch = 0 : i64, scratch_operands = 0 : i64, tpu.core_type = #tpu.core_type<tc>, window_params = [{transform_indices = @transform_0, window_bounds = array<i64: 1, 1, 6, 6, 128>}, {transform_indices = @transform_1, window_bounds = array<i64: 1, 1, 6, 6, 128>}, {transform_indices = @transform_2, window_bounds = array<i64: 1, 1, 6, 6, 128>}, {pipeline_mode = #tpu.pipeline_mode<synchronous>, transform_indices = @transform_3, window_bounds = array<i64: 27, 128>}, {pipeline_mode = #tpu.pipeline_mode<synchronous>, transform_indices = @transform_4, window_bounds = array<i64: 1, 128>}, {transform_indices = @transform_5, window_bounds = array<i64: 1, 1, 4, 4, 128>}]} {
    %cst = arith.constant 0.000000e+00 : f32
    %0 = vector.broadcast %cst : f32 to vector<4x4x128xf32>
    %c0 = arith.constant 0 : index
    %c0_0 = arith.constant 0 : index
    %c0_1 = arith.constant 0 : index
    %c0_2 = arith.constant 0 : index
    %c0_3 = arith.constant 0 : index
    %1 = vector.load %arg2[%c0, %c0_0, %c0_1, %c0_2, %c0_3] : memref<1x1x6x6x128xf32, #tpu.memory_space<vmem>>, vector<1x1x4x4x128xf32>
    %2 = vector.shape_cast %1 : vector<1x1x4x4x128xf32> to vector<4x4x128xf32>
    %c0_4 = arith.constant 0 : index
    %c0_5 = arith.constant 0 : index
    %3 = vector.load %arg5[%c0_4, %c0_5] : memref<27x128xf32, #tpu.memory_space<vmem>>, vector<1x128xf32>
    %4 = vector.shape_cast %3 : vector<1x128xf32> to vector<128xf32>
    %5 = vector.shape_cast %4 : vector<128xf32> to vector<1x1x128xf32>
    %6 = vector.broadcast %5 : vector<1x1x128xf32> to vector<4x4x128xf32>
    %7 = arith.mulf %2, %6 : vector<4x4x128xf32>
    %8 = arith.addf %0, %7 : vector<4x4x128xf32>
    %c0_6 = arith.constant 0 : index
    %c0_7 = arith.constant 0 : index
    %c0_8 = arith.constant 0 : index
    %c1 = arith.constant 1 : index
    %c0_9 = arith.constant 0 : index
    %9 = vector.load %arg2[%c0_6, %c0_7, %c0_8, %c1, %c0_9] : memref<1x1x6x6x128xf32, #tpu.memory_space<vmem>>, vector<1x1x4x4x128xf32>
    %10 = vector.shape_cast %9 : vector<1x1x4x4x128xf32> to vector<4x4x128xf32>
    %c1_10 = arith.constant 1 : index
    %c0_11 = arith.constant 0 : index
    %11 = vector.load %arg5[%c1_10, %c0_11] : memref<27x128xf32, #tpu.memory_space<vmem>>, vector<1x128xf32>
    %12 = vector.shape_cast %11 : vector<1x128xf32> to vector<128xf32>
    %13 = vector.shape_cast %12 : vector<128xf32> to vector<1x1x128xf32>
    %14 = vector.broadcast %13 : vector<1x1x128xf32> to vector<4x4x128xf32>
    %15 = arith.mulf %10, %14 : vector<4x4x128xf32>
    %16 = arith.addf %8, %15 : vector<4x4x128xf32>
    %c0_12 = arith.constant 0 : index
    %c0_13 = arith.constant 0 : index
    %c0_14 = arith.constant 0 : index
    %c2 = arith.constant 2 : index
    %c0_15 = arith.constant 0 : index
    %17 = vector.load %arg2[%c0_12, %c0_13, %c0_14, %c2, %c0_15] : memref<1x1x6x6x128xf32, #tpu.memory_space<vmem>>, vector<1x1x4x4x128xf32>
    %18 = vector.shape_cast %17 : vector<1x1x4x4x128xf32> to vector<4x4x128xf32>
    %c2_16 = arith.constant 2 : index
    %c0_17 = arith.constant 0 : index
    %19 = vector.load %arg5[%c2_16, %c0_17] : memref<27x128xf32, #tpu.memory_space<vmem>>, vector<1x128xf32>
    %20 = vector.shape_cast %19 : vector<1x128xf32> to vector<128xf32>
    %21 = vector.shape_cast %20 : vector<128xf32> to vector<1x1x128xf32>
    %22 = vector.broadcast %21 : vector<1x1x128xf32> to vector<4x4x128xf32>
    %23 = arith.mulf %18, %22 : vector<4x4x128xf32>
    %24 = arith.addf %16, %23 : vector<4x4x128xf32>
    %c0_18 = arith.constant 0 : index
    %c0_19 = arith.constant 0 : index
    %c1_20 = arith.constant 1 : index
    %c0_21 = arith.constant 0 : index
    %c0_22 = arith.constant 0 : index
    %25 = vector.load %arg2[%c0_18, %c0_19, %c1_20, %c0_21, %c0_22] : memref<1x1x6x6x128xf32, #tpu.memory_space<vmem>>, vector<1x1x4x4x128xf32>
    %26 = vector.shape_cast %25 : vector<1x1x4x4x128xf32> to vector<4x4x128xf32>
    %c3 = arith.constant 3 : index
    %c0_23 = arith.constant 0 : index
    %27 = vector.load %arg5[%c3, %c0_23] : memref<27x128xf32, #tpu.memory_space<vmem>>, vector<1x128xf32>
    %28 = vector.shape_cast %27 : vector<1x128xf32> to vector<128xf32>
    %29 = vector.shape_cast %28 : vector<128xf32> to vector<1x1x128xf32>
    %30 = vector.broadcast %29 : vector<1x1x128xf32> to vector<4x4x128xf32>
    %31 = arith.mulf %26, %30 : vector<4x4x128xf32>
    %32 = arith.addf %24, %31 : vector<4x4x128xf32>
    %c0_24 = arith.constant 0 : index
    %c0_25 = arith.constant 0 : index
    %c1_26 = arith.constant 1 : index
    %c1_27 = arith.constant 1 : index
    %c0_28 = arith.constant 0 : index
    %33 = vector.load %arg2[%c0_24, %c0_25, %c1_26, %c1_27, %c0_28] : memref<1x1x6x6x128xf32, #tpu.memory_space<vmem>>, vector<1x1x4x4x128xf32>
    %34 = vector.shape_cast %33 : vector<1x1x4x4x128xf32> to vector<4x4x128xf32>
    %c4 = arith.constant 4 : index
    %c0_29 = arith.constant 0 : index
    %35 = vector.load %arg5[%c4, %c0_29] : memref<27x128xf32, #tpu.memory_space<vmem>>, vector<1x128xf32>
    %36 = vector.shape_cast %35 : vector<1x128xf32> to vector<128xf32>
    %37 = vector.shape_cast %36 : vector<128xf32> to vector<1x1x128xf32>
    %38 = vector.broadcast %37 : vector<1x1x128xf32> to vector<4x4x128xf32>
    %39 = arith.mulf %34, %38 : vector<4x4x128xf32>
    %40 = arith.addf %32, %39 : vector<4x4x128xf32>
    %c0_30 = arith.constant 0 : index
    %c0_31 = arith.constant 0 : index
    %c1_32 = arith.constant 1 : index
    %c2_33 = arith.constant 2 : index
    %c0_34 = arith.constant 0 : index
    %41 = vector.load %arg2[%c0_30, %c0_31, %c1_32, %c2_33, %c0_34] : memref<1x1x6x6x128xf32, #tpu.memory_space<vmem>>, vector<1x1x4x4x128xf32>
    %42 = vector.shape_cast %41 : vector<1x1x4x4x128xf32> to vector<4x4x128xf32>
    %c5 = arith.constant 5 : index
    %c0_35 = arith.constant 0 : index
    %43 = vector.load %arg5[%c5, %c0_35] : memref<27x128xf32, #tpu.memory_space<vmem>>, vector<1x128xf32>
    %44 = vector.shape_cast %43 : vector<1x128xf32> to vector<128xf32>
    %45 = vector.shape_cast %44 : vector<128xf32> to vector<1x1x128xf32>
    %46 = vector.broadcast %45 : vector<1x1x128xf32> to vector<4x4x128xf32>
    %47 = arith.mulf %42, %46 : vector<4x4x128xf32>
    %48 = arith.addf %40, %47 : vector<4x4x128xf32>
    %c0_36 = arith.constant 0 : index
    %c0_37 = arith.constant 0 : index
    %c2_38 = arith.constant 2 : index
    %c0_39 = arith.constant 0 : index
    %c0_40 = arith.constant 0 : index
    %49 = vector.load %arg2[%c0_36, %c0_37, %c2_38, %c0_39, %c0_40] : memref<1x1x6x6x128xf32, #tpu.memory_space<vmem>>, vector<1x1x4x4x128xf32>
    %50 = vector.shape_cast %49 : vector<1x1x4x4x128xf32> to vector<4x4x128xf32>
    %c6 = arith.constant 6 : index
    %c0_41 = arith.constant 0 : index
    %51 = vector.load %arg5[%c6, %c0_41] : memref<27x128xf32, #tpu.memory_space<vmem>>, vector<1x128xf32>
    %52 = vector.shape_cast %51 : vector<1x128xf32> to vector<128xf32>
    %53 = vector.shape_cast %52 : vector<128xf32> to vector<1x1x128xf32>
    %54 = vector.broadcast %53 : vector<1x1x128xf32> to vector<4x4x128xf32>
    %55 = arith.mulf %50, %54 : vector<4x4x128xf32>
    %56 = arith.addf %48, %55 : vector<4x4x128xf32>
    %c0_42 = arith.constant 0 : index
    %c0_43 = arith.constant 0 : index
    %c2_44 = arith.constant 2 : index
    %c1_45 = arith.constant 1 : index
    %c0_46 = arith.constant 0 : index
    %57 = vector.load %arg2[%c0_42, %c0_43, %c2_44, %c1_45, %c0_46] : memref<1x1x6x6x128xf32, #tpu.memory_space<vmem>>, vector<1x1x4x4x128xf32>
    %58 = vector.shape_cast %57 : vector<1x1x4x4x128xf32> to vector<4x4x128xf32>
    %c7 = arith.constant 7 : index
    %c0_47 = arith.constant 0 : index
    %59 = vector.load %arg5[%c7, %c0_47] : memref<27x128xf32, #tpu.memory_space<vmem>>, vector<1x128xf32>
    %60 = vector.shape_cast %59 : vector<1x128xf32> to vector<128xf32>
    %61 = vector.shape_cast %60 : vector<128xf32> to vector<1x1x128xf32>
    %62 = vector.broadcast %61 : vector<1x1x128xf32> to vector<4x4x128xf32>
    %63 = arith.mulf %58, %62 : vector<4x4x128xf32>
    %64 = arith.addf %56, %63 : vector<4x4x128xf32>
    %c0_48 = arith.constant 0 : index
    %c0_49 = arith.constant 0 : index
    %c2_50 = arith.constant 2 : index
    %c2_51 = arith.constant 2 : index
    %c0_52 = arith.constant 0 : index
    %65 = vector.load %arg2[%c0_48, %c0_49, %c2_50, %c2_51, %c0_52] : memref<1x1x6x6x128xf32, #tpu.memory_space<vmem>>, vector<1x1x4x4x128xf32>
    %66 = vector.shape_cast %65 : vector<1x1x4x4x128xf32> to vector<4x4x128xf32>
    %c8 = arith.constant 8 : index
    %c0_53 = arith.constant 0 : index
    %67 = vector.load %arg5[%c8, %c0_53] : memref<27x128xf32, #tpu.memory_space<vmem>>, vector<1x128xf32>
    %68 = vector.shape_cast %67 : vector<1x128xf32> to vector<128xf32>
    %69 = vector.shape_cast %68 : vector<128xf32> to vector<1x1x128xf32>
    %70 = vector.broadcast %69 : vector<1x1x128xf32> to vector<4x4x128xf32>
    %71 = arith.mulf %66, %70 : vector<4x4x128xf32>
    %72 = arith.addf %64, %71 : vector<4x4x128xf32>
    %c0_54 = arith.constant 0 : index
    %c0_55 = arith.constant 0 : index
    %c0_56 = arith.constant 0 : index
    %c0_57 = arith.constant 0 : index
    %c0_58 = arith.constant 0 : index
    %73 = vector.load %arg3[%c0_54, %c0_55, %c0_56, %c0_57, %c0_58] : memref<1x1x6x6x128xf32, #tpu.memory_space<vmem>>, vector<1x1x4x4x128xf32>
    %74 = vector.shape_cast %73 : vector<1x1x4x4x128xf32> to vector<4x4x128xf32>
    %c9 = arith.constant 9 : index
    %c0_59 = arith.constant 0 : index
    %75 = vector.load %arg5[%c9, %c0_59] : memref<27x128xf32, #tpu.memory_space<vmem>>, vector<1x128xf32>
    %76 = vector.shape_cast %75 : vector<1x128xf32> to vector<128xf32>
    %77 = vector.shape_cast %76 : vector<128xf32> to vector<1x1x128xf32>
    %78 = vector.broadcast %77 : vector<1x1x128xf32> to vector<4x4x128xf32>
    %79 = arith.mulf %74, %78 : vector<4x4x128xf32>
    %80 = arith.addf %72, %79 : vector<4x4x128xf32>
    %c0_60 = arith.constant 0 : index
    %c0_61 = arith.constant 0 : index
    %c0_62 = arith.constant 0 : index
    %c1_63 = arith.constant 1 : index
    %c0_64 = arith.constant 0 : index
    %81 = vector.load %arg3[%c0_60, %c0_61, %c0_62, %c1_63, %c0_64] : memref<1x1x6x6x128xf32, #tpu.memory_space<vmem>>, vector<1x1x4x4x128xf32>
    %82 = vector.shape_cast %81 : vector<1x1x4x4x128xf32> to vector<4x4x128xf32>
    %c10 = arith.constant 10 : index
    %c0_65 = arith.constant 0 : index
    %83 = vector.load %arg5[%c10, %c0_65] : memref<27x128xf32, #tpu.memory_space<vmem>>, vector<1x128xf32>
    %84 = vector.shape_cast %83 : vector<1x128xf32> to vector<128xf32>
    %85 = vector.shape_cast %84 : vector<128xf32> to vector<1x1x128xf32>
    %86 = vector.broadcast %85 : vector<1x1x128xf32> to vector<4x4x128xf32>
    %87 = arith.mulf %82, %86 : vector<4x4x128xf32>
    %88 = arith.addf %80, %87 : vector<4x4x128xf32>
    %c0_66 = arith.constant 0 : index
    %c0_67 = arith.constant 0 : index
    %c0_68 = arith.constant 0 : index
    %c2_69 = arith.constant 2 : index
    %c0_70 = arith.constant 0 : index
    %89 = vector.load %arg3[%c0_66, %c0_67, %c0_68, %c2_69, %c0_70] : memref<1x1x6x6x128xf32, #tpu.memory_space<vmem>>, vector<1x1x4x4x128xf32>
    %90 = vector.shape_cast %89 : vector<1x1x4x4x128xf32> to vector<4x4x128xf32>
    %c11 = arith.constant 11 : index
    %c0_71 = arith.constant 0 : index
    %91 = vector.load %arg5[%c11, %c0_71] : memref<27x128xf32, #tpu.memory_space<vmem>>, vector<1x128xf32>
    %92 = vector.shape_cast %91 : vector<1x128xf32> to vector<128xf32>
    %93 = vector.shape_cast %92 : vector<128xf32> to vector<1x1x128xf32>
    %94 = vector.broadcast %93 : vector<1x1x128xf32> to vector<4x4x128xf32>
    %95 = arith.mulf %90, %94 : vector<4x4x128xf32>
    %96 = arith.addf %88, %95 : vector<4x4x128xf32>
    %c0_72 = arith.constant 0 : index
    %c0_73 = arith.constant 0 : index
    %c1_74 = arith.constant 1 : index
    %c0_75 = arith.constant 0 : index
    %c0_76 = arith.constant 0 : index
    %97 = vector.load %arg3[%c0_72, %c0_73, %c1_74, %c0_75, %c0_76] : memref<1x1x6x6x128xf32, #tpu.memory_space<vmem>>, vector<1x1x4x4x128xf32>
    %98 = vector.shape_cast %97 : vector<1x1x4x4x128xf32> to vector<4x4x128xf32>
    %c12 = arith.constant 12 : index
    %c0_77 = arith.constant 0 : index
    %99 = vector.load %arg5[%c12, %c0_77] : memref<27x128xf32, #tpu.memory_space<vmem>>, vector<1x128xf32>
    %100 = vector.shape_cast %99 : vector<1x128xf32> to vector<128xf32>
    %101 = vector.shape_cast %100 : vector<128xf32> to vector<1x1x128xf32>
    %102 = vector.broadcast %101 : vector<1x1x128xf32> to vector<4x4x128xf32>
    %103 = arith.mulf %98, %102 : vector<4x4x128xf32>
    %104 = arith.addf %96, %103 : vector<4x4x128xf32>
    %c0_78 = arith.constant 0 : index
    %c0_79 = arith.constant 0 : index
    %c1_80 = arith.constant 1 : index
    %c1_81 = arith.constant 1 : index
    %c0_82 = arith.constant 0 : index
    %105 = vector.load %arg3[%c0_78, %c0_79, %c1_80, %c1_81, %c0_82] : memref<1x1x6x6x128xf32, #tpu.memory_space<vmem>>, vector<1x1x4x4x128xf32>
    %106 = vector.shape_cast %105 : vector<1x1x4x4x128xf32> to vector<4x4x128xf32>
    %c13 = arith.constant 13 : index
    %c0_83 = arith.constant 0 : index
    %107 = vector.load %arg5[%c13, %c0_83] : memref<27x128xf32, #tpu.memory_space<vmem>>, vector<1x128xf32>
    %108 = vector.shape_cast %107 : vector<1x128xf32> to vector<128xf32>
    %109 = vector.shape_cast %108 : vector<128xf32> to vector<1x1x128xf32>
    %110 = vector.broadcast %109 : vector<1x1x128xf32> to vector<4x4x128xf32>
    %111 = arith.mulf %106, %110 : vector<4x4x128xf32>
    %112 = arith.addf %104, %111 : vector<4x4x128xf32>
    %c0_84 = arith.constant 0 : index
    %c0_85 = arith.constant 0 : index
    %c1_86 = arith.constant 1 : index
    %c2_87 = arith.constant 2 : index
    %c0_88 = arith.constant 0 : index
    %113 = vector.load %arg3[%c0_84, %c0_85, %c1_86, %c2_87, %c0_88] : memref<1x1x6x6x128xf32, #tpu.memory_space<vmem>>, vector<1x1x4x4x128xf32>
    %114 = vector.shape_cast %113 : vector<1x1x4x4x128xf32> to vector<4x4x128xf32>
    %c14 = arith.constant 14 : index
    %c0_89 = arith.constant 0 : index
    %115 = vector.load %arg5[%c14, %c0_89] : memref<27x128xf32, #tpu.memory_space<vmem>>, vector<1x128xf32>
    %116 = vector.shape_cast %115 : vector<1x128xf32> to vector<128xf32>
    %117 = vector.shape_cast %116 : vector<128xf32> to vector<1x1x128xf32>
    %118 = vector.broadcast %117 : vector<1x1x128xf32> to vector<4x4x128xf32>
    %119 = arith.mulf %114, %118 : vector<4x4x128xf32>
    %120 = arith.addf %112, %119 : vector<4x4x128xf32>
    %c0_90 = arith.constant 0 : index
    %c0_91 = arith.constant 0 : index
    %c2_92 = arith.constant 2 : index
    %c0_93 = arith.constant 0 : index
    %c0_94 = arith.constant 0 : index
    %121 = vector.load %arg3[%c0_90, %c0_91, %c2_92, %c0_93, %c0_94] : memref<1x1x6x6x128xf32, #tpu.memory_space<vmem>>, vector<1x1x4x4x128xf32>
    %122 = vector.shape_cast %121 : vector<1x1x4x4x128xf32> to vector<4x4x128xf32>
    %c15 = arith.constant 15 : index
    %c0_95 = arith.constant 0 : index
    %123 = vector.load %arg5[%c15, %c0_95] : memref<27x128xf32, #tpu.memory_space<vmem>>, vector<1x128xf32>
    %124 = vector.shape_cast %123 : vector<1x128xf32> to vector<128xf32>
    %125 = vector.shape_cast %124 : vector<128xf32> to vector<1x1x128xf32>
    %126 = vector.broadcast %125 : vector<1x1x128xf32> to vector<4x4x128xf32>
    %127 = arith.mulf %122, %126 : vector<4x4x128xf32>
    %128 = arith.addf %120, %127 : vector<4x4x128xf32>
    %c0_96 = arith.constant 0 : index
    %c0_97 = arith.constant 0 : index
    %c2_98 = arith.constant 2 : index
    %c1_99 = arith.constant 1 : index
    %c0_100 = arith.constant 0 : index
    %129 = vector.load %arg3[%c0_96, %c0_97, %c2_98, %c1_99, %c0_100] : memref<1x1x6x6x128xf32, #tpu.memory_space<vmem>>, vector<1x1x4x4x128xf32>
    %130 = vector.shape_cast %129 : vector<1x1x4x4x128xf32> to vector<4x4x128xf32>
    %c16 = arith.constant 16 : index
    %c0_101 = arith.constant 0 : index
    %131 = vector.load %arg5[%c16, %c0_101] : memref<27x128xf32, #tpu.memory_space<vmem>>, vector<1x128xf32>
    %132 = vector.shape_cast %131 : vector<1x128xf32> to vector<128xf32>
    %133 = vector.shape_cast %132 : vector<128xf32> to vector<1x1x128xf32>
    %134 = vector.broadcast %133 : vector<1x1x128xf32> to vector<4x4x128xf32>
    %135 = arith.mulf %130, %134 : vector<4x4x128xf32>
    %136 = arith.addf %128, %135 : vector<4x4x128xf32>
    %c0_102 = arith.constant 0 : index
    %c0_103 = arith.constant 0 : index
    %c2_104 = arith.constant 2 : index
    %c2_105 = arith.constant 2 : index
    %c0_106 = arith.constant 0 : index
    %137 = vector.load %arg3[%c0_102, %c0_103, %c2_104, %c2_105, %c0_106] : memref<1x1x6x6x128xf32, #tpu.memory_space<vmem>>, vector<1x1x4x4x128xf32>
    %138 = vector.shape_cast %137 : vector<1x1x4x4x128xf32> to vector<4x4x128xf32>
    %c17 = arith.constant 17 : index
    %c0_107 = arith.constant 0 : index
    %139 = vector.load %arg5[%c17, %c0_107] : memref<27x128xf32, #tpu.memory_space<vmem>>, vector<1x128xf32>
    %140 = vector.shape_cast %139 : vector<1x128xf32> to vector<128xf32>
    %141 = vector.shape_cast %140 : vector<128xf32> to vector<1x1x128xf32>
    %142 = vector.broadcast %141 : vector<1x1x128xf32> to vector<4x4x128xf32>
    %143 = arith.mulf %138, %142 : vector<4x4x128xf32>
    %144 = arith.addf %136, %143 : vector<4x4x128xf32>
    %c0_108 = arith.constant 0 : index
    %c0_109 = arith.constant 0 : index
    %c0_110 = arith.constant 0 : index
    %c0_111 = arith.constant 0 : index
    %c0_112 = arith.constant 0 : index
    %145 = vector.load %arg4[%c0_108, %c0_109, %c0_110, %c0_111, %c0_112] : memref<1x1x6x6x128xf32, #tpu.memory_space<vmem>>, vector<1x1x4x4x128xf32>
    %146 = vector.shape_cast %145 : vector<1x1x4x4x128xf32> to vector<4x4x128xf32>
    %c18 = arith.constant 18 : index
    %c0_113 = arith.constant 0 : index
    %147 = vector.load %arg5[%c18, %c0_113] : memref<27x128xf32, #tpu.memory_space<vmem>>, vector<1x128xf32>
    %148 = vector.shape_cast %147 : vector<1x128xf32> to vector<128xf32>
    %149 = vector.shape_cast %148 : vector<128xf32> to vector<1x1x128xf32>
    %150 = vector.broadcast %149 : vector<1x1x128xf32> to vector<4x4x128xf32>
    %151 = arith.mulf %146, %150 : vector<4x4x128xf32>
    %152 = arith.addf %144, %151 : vector<4x4x128xf32>
    %c0_114 = arith.constant 0 : index
    %c0_115 = arith.constant 0 : index
    %c0_116 = arith.constant 0 : index
    %c1_117 = arith.constant 1 : index
    %c0_118 = arith.constant 0 : index
    %153 = vector.load %arg4[%c0_114, %c0_115, %c0_116, %c1_117, %c0_118] : memref<1x1x6x6x128xf32, #tpu.memory_space<vmem>>, vector<1x1x4x4x128xf32>
    %154 = vector.shape_cast %153 : vector<1x1x4x4x128xf32> to vector<4x4x128xf32>
    %c19 = arith.constant 19 : index
    %c0_119 = arith.constant 0 : index
    %155 = vector.load %arg5[%c19, %c0_119] : memref<27x128xf32, #tpu.memory_space<vmem>>, vector<1x128xf32>
    %156 = vector.shape_cast %155 : vector<1x128xf32> to vector<128xf32>
    %157 = vector.shape_cast %156 : vector<128xf32> to vector<1x1x128xf32>
    %158 = vector.broadcast %157 : vector<1x1x128xf32> to vector<4x4x128xf32>
    %159 = arith.mulf %154, %158 : vector<4x4x128xf32>
    %160 = arith.addf %152, %159 : vector<4x4x128xf32>
    %c0_120 = arith.constant 0 : index
    %c0_121 = arith.constant 0 : index
    %c0_122 = arith.constant 0 : index
    %c2_123 = arith.constant 2 : index
    %c0_124 = arith.constant 0 : index
    %161 = vector.load %arg4[%c0_120, %c0_121, %c0_122, %c2_123, %c0_124] : memref<1x1x6x6x128xf32, #tpu.memory_space<vmem>>, vector<1x1x4x4x128xf32>
    %162 = vector.shape_cast %161 : vector<1x1x4x4x128xf32> to vector<4x4x128xf32>
    %c20 = arith.constant 20 : index
    %c0_125 = arith.constant 0 : index
    %163 = vector.load %arg5[%c20, %c0_125] : memref<27x128xf32, #tpu.memory_space<vmem>>, vector<1x128xf32>
    %164 = vector.shape_cast %163 : vector<1x128xf32> to vector<128xf32>
    %165 = vector.shape_cast %164 : vector<128xf32> to vector<1x1x128xf32>
    %166 = vector.broadcast %165 : vector<1x1x128xf32> to vector<4x4x128xf32>
    %167 = arith.mulf %162, %166 : vector<4x4x128xf32>
    %168 = arith.addf %160, %167 : vector<4x4x128xf32>
    %c0_126 = arith.constant 0 : index
    %c0_127 = arith.constant 0 : index
    %c1_128 = arith.constant 1 : index
    %c0_129 = arith.constant 0 : index
    %c0_130 = arith.constant 0 : index
    %169 = vector.load %arg4[%c0_126, %c0_127, %c1_128, %c0_129, %c0_130] : memref<1x1x6x6x128xf32, #tpu.memory_space<vmem>>, vector<1x1x4x4x128xf32>
    %170 = vector.shape_cast %169 : vector<1x1x4x4x128xf32> to vector<4x4x128xf32>
    %c21 = arith.constant 21 : index
    %c0_131 = arith.constant 0 : index
    %171 = vector.load %arg5[%c21, %c0_131] : memref<27x128xf32, #tpu.memory_space<vmem>>, vector<1x128xf32>
    %172 = vector.shape_cast %171 : vector<1x128xf32> to vector<128xf32>
    %173 = vector.shape_cast %172 : vector<128xf32> to vector<1x1x128xf32>
    %174 = vector.broadcast %173 : vector<1x1x128xf32> to vector<4x4x128xf32>
    %175 = arith.mulf %170, %174 : vector<4x4x128xf32>
    %176 = arith.addf %168, %175 : vector<4x4x128xf32>
    %c0_132 = arith.constant 0 : index
    %c0_133 = arith.constant 0 : index
    %c1_134 = arith.constant 1 : index
    %c1_135 = arith.constant 1 : index
    %c0_136 = arith.constant 0 : index
    %177 = vector.load %arg4[%c0_132, %c0_133, %c1_134, %c1_135, %c0_136] : memref<1x1x6x6x128xf32, #tpu.memory_space<vmem>>, vector<1x1x4x4x128xf32>
    %178 = vector.shape_cast %177 : vector<1x1x4x4x128xf32> to vector<4x4x128xf32>
    %c22 = arith.constant 22 : index
    %c0_137 = arith.constant 0 : index
    %179 = vector.load %arg5[%c22, %c0_137] : memref<27x128xf32, #tpu.memory_space<vmem>>, vector<1x128xf32>
    %180 = vector.shape_cast %179 : vector<1x128xf32> to vector<128xf32>
    %181 = vector.shape_cast %180 : vector<128xf32> to vector<1x1x128xf32>
    %182 = vector.broadcast %181 : vector<1x1x128xf32> to vector<4x4x128xf32>
    %183 = arith.mulf %178, %182 : vector<4x4x128xf32>
    %184 = arith.addf %176, %183 : vector<4x4x128xf32>
    %c0_138 = arith.constant 0 : index
    %c0_139 = arith.constant 0 : index
    %c1_140 = arith.constant 1 : index
    %c2_141 = arith.constant 2 : index
    %c0_142 = arith.constant 0 : index
    %185 = vector.load %arg4[%c0_138, %c0_139, %c1_140, %c2_141, %c0_142] : memref<1x1x6x6x128xf32, #tpu.memory_space<vmem>>, vector<1x1x4x4x128xf32>
    %186 = vector.shape_cast %185 : vector<1x1x4x4x128xf32> to vector<4x4x128xf32>
    %c23 = arith.constant 23 : index
    %c0_143 = arith.constant 0 : index
    %187 = vector.load %arg5[%c23, %c0_143] : memref<27x128xf32, #tpu.memory_space<vmem>>, vector<1x128xf32>
    %188 = vector.shape_cast %187 : vector<1x128xf32> to vector<128xf32>
    %189 = vector.shape_cast %188 : vector<128xf32> to vector<1x1x128xf32>
    %190 = vector.broadcast %189 : vector<1x1x128xf32> to vector<4x4x128xf32>
    %191 = arith.mulf %186, %190 : vector<4x4x128xf32>
    %192 = arith.addf %184, %191 : vector<4x4x128xf32>
    %c0_144 = arith.constant 0 : index
    %c0_145 = arith.constant 0 : index
    %c2_146 = arith.constant 2 : index
    %c0_147 = arith.constant 0 : index
    %c0_148 = arith.constant 0 : index
    %193 = vector.load %arg4[%c0_144, %c0_145, %c2_146, %c0_147, %c0_148] : memref<1x1x6x6x128xf32, #tpu.memory_space<vmem>>, vector<1x1x4x4x128xf32>
    %194 = vector.shape_cast %193 : vector<1x1x4x4x128xf32> to vector<4x4x128xf32>
    %c24 = arith.constant 24 : index
    %c0_149 = arith.constant 0 : index
    %195 = vector.load %arg5[%c24, %c0_149] : memref<27x128xf32, #tpu.memory_space<vmem>>, vector<1x128xf32>
    %196 = vector.shape_cast %195 : vector<1x128xf32> to vector<128xf32>
    %197 = vector.shape_cast %196 : vector<128xf32> to vector<1x1x128xf32>
    %198 = vector.broadcast %197 : vector<1x1x128xf32> to vector<4x4x128xf32>
    %199 = arith.mulf %194, %198 : vector<4x4x128xf32>
    %200 = arith.addf %192, %199 : vector<4x4x128xf32>
    %c0_150 = arith.constant 0 : index
    %c0_151 = arith.constant 0 : index
    %c2_152 = arith.constant 2 : index
    %c1_153 = arith.constant 1 : index
    %c0_154 = arith.constant 0 : index
    %201 = vector.load %arg4[%c0_150, %c0_151, %c2_152, %c1_153, %c0_154] : memref<1x1x6x6x128xf32, #tpu.memory_space<vmem>>, vector<1x1x4x4x128xf32>
    %202 = vector.shape_cast %201 : vector<1x1x4x4x128xf32> to vector<4x4x128xf32>
    %c25 = arith.constant 25 : index
    %c0_155 = arith.constant 0 : index
    %203 = vector.load %arg5[%c25, %c0_155] : memref<27x128xf32, #tpu.memory_space<vmem>>, vector<1x128xf32>
    %204 = vector.shape_cast %203 : vector<1x128xf32> to vector<128xf32>
    %205 = vector.shape_cast %204 : vector<128xf32> to vector<1x1x128xf32>
    %206 = vector.broadcast %205 : vector<1x1x128xf32> to vector<4x4x128xf32>
    %207 = arith.mulf %202, %206 : vector<4x4x128xf32>
    %208 = arith.addf %200, %207 : vector<4x4x128xf32>
    %c0_156 = arith.constant 0 : index
    %c0_157 = arith.constant 0 : index
    %c2_158 = arith.constant 2 : index
    %c2_159 = arith.constant 2 : index
    %c0_160 = arith.constant 0 : index
    %209 = vector.load %arg4[%c0_156, %c0_157, %c2_158, %c2_159, %c0_160] : memref<1x1x6x6x128xf32, #tpu.memory_space<vmem>>, vector<1x1x4x4x128xf32>
    %210 = vector.shape_cast %209 : vector<1x1x4x4x128xf32> to vector<4x4x128xf32>
    %c26 = arith.constant 26 : index
    %c0_161 = arith.constant 0 : index
    %211 = vector.load %arg5[%c26, %c0_161] : memref<27x128xf32, #tpu.memory_space<vmem>>, vector<1x128xf32>
    %212 = vector.shape_cast %211 : vector<1x128xf32> to vector<128xf32>
    %213 = vector.shape_cast %212 : vector<128xf32> to vector<1x1x128xf32>
    %214 = vector.broadcast %213 : vector<1x1x128xf32> to vector<4x4x128xf32>
    %215 = arith.mulf %210, %214 : vector<4x4x128xf32>
    %216 = arith.addf %208, %215 : vector<4x4x128xf32>
    %c0_162 = arith.constant 0 : index
    %c0_163 = arith.constant 0 : index
    %217 = vector.load %arg6[%c0_162, %c0_163] : memref<1x128xf32, #tpu.memory_space<vmem>>, vector<1x128xf32>
    %218 = vector.shape_cast %217 : vector<1x128xf32> to vector<1x1x128xf32>
    %219 = vector.broadcast %218 : vector<1x1x128xf32> to vector<4x4x128xf32>
    %220 = arith.addf %216, %219 : vector<4x4x128xf32>
    %221 = arith.negf %220 : vector<4x4x128xf32>
    %222 = math.exp %221 : vector<4x4x128xf32>
    %cst_164 = arith.constant 1.000000e+00 : f32
    %223 = vector.broadcast %cst_164 : f32 to vector<4x4x128xf32>
    %224 = arith.addf %223, %222 : vector<4x4x128xf32>
    %225 = arith.divf %223, %224 : vector<4x4x128xf32>
    %226 = arith.mulf %220, %225 : vector<4x4x128xf32>
    %c0_165 = arith.constant 0 : index
    %c0_166 = arith.constant 0 : index
    %c0_167 = arith.constant 0 : index
    %c0_168 = arith.constant 0 : index
    %c0_169 = arith.constant 0 : index
    %227 = vector.load %arg7[%c0_165, %c0_166, %c0_167, %c0_168, %c0_169] : memref<1x1x4x4x128xf32, #tpu.memory_space<vmem>>, vector<1x1x4x4x128xf32>
    %228 = vector.shape_cast %227 : vector<1x1x4x4x128xf32> to vector<4x4x128xf32>
    %229 = vector.shape_cast %226 : vector<4x4x128xf32> to vector<1x1x4x4x128xf32>
    tpu.vector_store %arg7[%c0_165, %c0_166, %c0_167, %c0_168, %c0_169], %229 {strides = array<i32>} : memref<1x1x4x4x128xf32, #tpu.memory_space<vmem>>, vector<1x1x4x4x128xf32>,
    return
  }
  func.func @transform_0(%arg0: i32, %arg1: i32) -> (i32, i32, i32, i32, i32) {
    %c0_i32 = arith.constant 0 : i32
    %c0_i32_0 = arith.constant 0 : i32
    %c0_i32_1 = arith.constant 0 : i32
    %c0_i32_2 = arith.constant 0 : i32
    return %arg0, %arg1, %c0_i32, %c0_i32_0, %c0_i32_1 : i32, i32, i32, i32, i32
  }
  func.func @transform_1(%arg0: i32, %arg1: i32) -> (i32, i32, i32, i32, i32) {
    %c1_i32 = arith.constant 1 : i32
    %0 = arith.addi %arg1, %c1_i32 : i32
    %c0_i32 = arith.constant 0 : i32
    %c0_i32_0 = arith.constant 0 : i32
    %c0_i32_1 = arith.constant 0 : i32
    %c0_i32_2 = arith.constant 0 : i32
    return %arg0, %0, %c0_i32, %c0_i32_0, %c0_i32_1 : i32, i32, i32, i32, i32
  }
  func.func @transform_2(%arg0: i32, %arg1: i32) -> (i32, i32, i32, i32, i32) {
    %c2_i32 = arith.constant 2 : i32
    %0 = arith.addi %arg1, %c2_i32 : i32
    %c0_i32 = arith.constant 0 : i32
    %c0_i32_0 = arith.constant 0 : i32
    %c0_i32_1 = arith.constant 0 : i32
    %c0_i32_2 = arith.constant 0 : i32
    return %arg0, %0, %c0_i32, %c0_i32_0, %c0_i32_1 : i32, i32, i32, i32, i32
  }
  func.func @transform_3(%arg0: i32, %arg1: i32) -> (i32, i32) {
    %c0_i32 = arith.constant 0 : i32
    %c0_i32_0 = arith.constant 0 : i32
    %c0_i32_1 = arith.constant 0 : i32
    return %c0_i32, %c0_i32_0 : i32, i32
  }
  func.func @transform_4(%arg0: i32, %arg1: i32) -> (i32, i32) {
    %c0_i32 = arith.constant 0 : i32
    %c0_i32_0 = arith.constant 0 : i32
    %c0_i32_1 = arith.constant 0 : i32
    return %c0_i32, %c0_i32_0 : i32, i32
  }
  func.func @transform_5(%arg0: i32, %arg1: i32) -> (i32, i32, i32, i32, i32) {
    %c0_i32 = arith.constant 0 : i32
    %c0_i32_0 = arith.constant 0 : i32
    %c0_i32_1 = arith.constant 0 : i32
    %c0_i32_2 = arith.constant 0 : i32
    return %arg0, %arg1, %c0_i32, %c0_i32_0, %c0_i32_1 : i32, i32, i32, i32, i32
  }
}

module attributes {stable_mosaic.version = 11 : i64} {
  func.func @kernel(%arg0: i32, %arg1: i32, %arg2: i32, %arg3: memref<1x1x64x128xf32, #tpu.memory_space<vmem>>, %arg4: memref<64x64xf32, #tpu.memory_space<vmem>>, %arg5: memref<1x128x160xbf16, #tpu.memory_space<vmem>>, %arg6: memref<1x1x128xf32, #tpu.memory_space<vmem>>, %arg7: memref<1x16x128xf32, #tpu.memory_space<vmem>>, %arg8: memref<1x1x128xf32, #tpu.memory_space<vmem>>, %arg9: memref<1x1x64x128xf32, #tpu.memory_space<vmem>>, %arg10: memref<64x16x128xf32, #tpu.memory_space<vmem>>, %arg11: memref<64x16x128xf32, #tpu.memory_space<vmem>>, %arg12: memref<64x16xf32, #tpu.memory_space<vmem>>, %arg13: memref<64x128xf32, #tpu.memory_space<vmem>>, %arg14: memref<16x128xf32, #tpu.memory_space<vmem>>) attributes {dimension_semantics = [#tpu.dimension_semantics<parallel>, #tpu.dimension_semantics<parallel>, #tpu.dimension_semantics<arbitrary>], iteration_bounds = array<i64: 4, 2, 2>, scalar_prefetch = 0 : i64, scratch_operands = 5 : i64, tpu.core_type = #tpu.core_type<tc>, window_params = [{transform_indices = @transform_0, window_bounds = array<i64: 1, 1, 64, 128>}, {pipeline_mode = #tpu.pipeline_mode<synchronous>, transform_indices = @transform_1, window_bounds = array<i64: 64, 64>}, {transform_indices = @transform_2, window_bounds = array<i64: 1, 128, 160>}, {transform_indices = @transform_3, window_bounds = array<i64: 1, 1, 128>}, {transform_indices = @transform_4, window_bounds = array<i64: 1, 16, 128>}, {transform_indices = @transform_5, window_bounds = array<i64: 1, 1, 128>}, {transform_indices = @transform_6, window_bounds = array<i64: 1, 1, 64, 128>}]} {
    %c0_i32 = arith.constant 0 : i32
    %0 = arith.cmpi eq, %arg2, %c0_i32 : i32
    %1 = arith.extui %0 : i1 to i32
    %c0_i32_0 = arith.constant 0 : i32
    %2 = arith.cmpi ne, %1, %c0_i32_0 : i32
    scf.if %2 {
      %cst_42 = arith.constant 0.000000e+00 : f32
      %63 = vector.broadcast %cst_42 : f32 to vector<16x128xf32>
      %c0_43 = arith.constant 0 : index
      %c0_44 = arith.constant 0 : index
      %64 = vector.load %arg14[%c0_43, %c0_44] : memref<16x128xf32, #tpu.memory_space<vmem>>, vector<16x128xf32>
      tpu.vector_store %arg14[%c0_43, %c0_44], %63 {strides = array<i32>} : memref<16x128xf32, #tpu.memory_space<vmem>>, vector<16x128xf32>,
    } else {
    }
    %c0 = arith.constant 0 : index
    %c0_1 = arith.constant 0 : index
    %c0_2 = arith.constant 0 : index
    %c0_3 = arith.constant 0 : index
    %3 = vector.load %arg3[%c0, %c0_1, %c0_2, %c0_3] : memref<1x1x64x128xf32, #tpu.memory_space<vmem>>, vector<1x1x64x128xf32>
    %4 = vector.shape_cast %3 : vector<1x1x64x128xf32> to vector<64x128xf32>
    %c0_4 = arith.constant 0 : index
    %c0_5 = arith.constant 0 : index
    %5 = vector.load %arg13[%c0_4, %c0_5] : memref<64x128xf32, #tpu.memory_space<vmem>>, vector<64x128xf32>
    tpu.vector_store %arg13[%c0_4, %c0_5], %4 {strides = array<i32>} : memref<64x128xf32, #tpu.memory_space<vmem>>, vector<64x128xf32>,
    %c1_i32 = arith.constant 1 : i32
    %6 = arith.cmpi sge, %arg2, %c1_i32 : i32
    %7 = arith.extui %6 : i1 to i32
    %c0_i32_6 = arith.constant 0 : i32
    %8 = arith.cmpi ne, %7, %c0_i32_6 : i32
    scf.if %8 {
      %c0_42 = arith.constant 0 : index
      %c0_43 = arith.constant 0 : index
      %63 = vector.load %arg4[%c0_42, %c0_43] : memref<64x64xf32, #tpu.memory_space<vmem>>, vector<64x64xf32>
      %c0_44 = arith.constant 0 : index
      %c0_45 = arith.constant 0 : index
      %c0_46 = arith.constant 0 : index
      %c0_47 = arith.constant 0 : index
      %64 = vector.load %arg3[%c0_44, %c0_45, %c0_46, %c0_47] : memref<1x1x64x128xf32, #tpu.memory_space<vmem>>, vector<1x1x64x128xf32>
      %65 = vector.shape_cast %64 : vector<1x1x64x128xf32> to vector<64x128xf32>
      %cst_48 = arith.constant dense<0.000000e+00> : vector<64x128xf32>
      %66 = tpu.matmul %63, %65, %cst_48 {dimension_numbers = #tpu.dot_dimension_numbers<[1], [0], [0], [1], [0, 0, 1, 1], [], []>} : vector<64x64xf32>, vector<64x128xf32>, vector<64x128xf32> -> vector<64x128xf32>
      %c0_49 = arith.constant 0 : index
      %c0_50 = arith.constant 0 : index
      %67 = vector.load %arg13[%c0_49, %c0_50] : memref<64x128xf32, #tpu.memory_space<vmem>>, vector<64x128xf32>
      tpu.vector_store %arg13[%c0_49, %c0_50], %66 {strides = array<i32>} : memref<64x128xf32, #tpu.memory_space<vmem>>, vector<64x128xf32>,
    } else {
    }
    %c0_7 = arith.constant 0 : index
    %c0_8 = arith.constant 0 : index
    %9 = vector.load %arg13[%c0_7, %c0_8] : memref<64x128xf32, #tpu.memory_space<vmem>>, vector<64x128xf32>
    %10 = arith.truncf %9 : vector<64x128xf32> to vector<64x128xbf16>
    %c0_9 = arith.constant 0 : index
    %c0_10 = arith.constant 0 : index
    %c0_11 = arith.constant 0 : index
    %11 = vector.load %arg5[%c0_9, %c0_10, %c0_11] : memref<1x128x160xbf16, #tpu.memory_space<vmem>>, vector<1x128x160xbf16>
    %12 = vector.shape_cast %11 : vector<1x128x160xbf16> to vector<128x160xbf16>
    %cst = arith.constant dense<0.000000e+00> : vector<64x160xf32>
    %13 = tpu.matmul %10, %12, %cst {dimension_numbers = #tpu.dot_dimension_numbers<[1], [0], [0], [1], [0, 0, 1, 1], [], []>} : vector<64x128xbf16>, vector<128x160xbf16>, vector<64x160xf32> -> vector<64x160xf32>
    %14 = vector.extract_strided_slice %13 {offsets = [0, 0], sizes = [64, 128], strides = [1, 1]} : vector<64x160xf32> to vector<64x128xf32>
    %c0_12 = arith.constant 0 : index
    %c0_13 = arith.constant 0 : index
    %c0_14 = arith.constant 0 : index
    %15 = vector.load %arg6[%c0_12, %c0_13, %c0_14] : memref<1x1x128xf32, #tpu.memory_space<vmem>>, vector<1x1x128xf32>
    %16 = vector.shape_cast %15 : vector<1x1x128xf32> to vector<1x128xf32>
    %17 = vector.broadcast %16 : vector<1x128xf32> to vector<64x128xf32>
    %18 = arith.addf %14, %17 : vector<64x128xf32>
    %cst_15 = arith.constant 0.000000e+00 : f32
    %19 = vector.broadcast %cst_15 : f32 to vector<64x128xf32>
    %20 = arith.maximumf %18, %19 : vector<64x128xf32>
    %21 = vector.broadcast %cst_15 : f32 to vector<64x128xf32>
    %22 = arith.subf %18, %21 : vector<64x128xf32>
    %23 = arith.cmpf one, %22, %22 : vector<64x128xf32>
    %24 = vector.broadcast %cst_15 : f32 to vector<64x128xf32>
    %25 = arith.addf %18, %24 : vector<64x128xf32>
    %26 = math.absf %22 : vector<64x128xf32>
    %cst_16 = arith.constant 0.000000e+00 : f32
    %27 = vector.broadcast %cst_16 : f32 to vector<64x128xf32>
    %28 = arith.subf %27, %26 : vector<64x128xf32>
    %29 = math.exp %28 : vector<64x128xf32>
    %30 = math.log1p %29 : vector<64x128xf32>
    %31 = arith.addf %20, %30 : vector<64x128xf32>
    %32 = arith.select %23, %25, %31 : vector<64x128xi1>, vector<64x128xf32>
    %33 = vector.extract_strided_slice %13 {offsets = [0, 128], sizes = [64, 16], strides = [1, 1]} : vector<64x160xf32> to vector<64x16xf32>
    %34 = vector.extract_strided_slice %13 {offsets = [0, 144], sizes = [64, 16], strides = [1, 1]} : vector<64x160xf32> to vector<64x16xf32>
    %c0_17 = arith.constant 0 : index
    %c0_18 = arith.constant 0 : index
    %35 = vector.load %arg12[%c0_17, %c0_18] : memref<64x16xf32, #tpu.memory_space<vmem>>, vector<64x16xf32>
    tpu.vector_store %arg12[%c0_17, %c0_18], %34 {strides = array<i32>} : memref<64x16xf32, #tpu.memory_space<vmem>>, vector<64x16xf32>,
    %c0_19 = arith.constant 0 : index
    %c0_20 = arith.constant 0 : index
    %c0_21 = arith.constant 0 : index
    %36 = vector.load %arg7[%c0_19, %c0_20, %c0_21] : memref<1x16x128xf32, #tpu.memory_space<vmem>>, vector<1x16x128xf32>
    %37 = vector.shape_cast %36 : vector<1x16x128xf32> to vector<16x128xf32>
    %38 = vector.shape_cast %32 : vector<64x128xf32> to vector<64x1x128xf32>
    %39 = vector.shape_cast %37 : vector<16x128xf32> to vector<1x16x128xf32>
    %40 = vector.broadcast %38 : vector<64x1x128xf32> to vector<64x16x128xf32>
    %41 = vector.broadcast %39 : vector<1x16x128xf32> to vector<64x16x128xf32>
    %42 = arith.mulf %40, %41 : vector<64x16x128xf32>
    %43 = math.exp %42 : vector<64x16x128xf32>
    %c0_22 = arith.constant 0 : index
    %c0_23 = arith.constant 0 : index
    %c0_24 = arith.constant 0 : index
    %44 = vector.load %arg10[%c0_22, %c0_23, %c0_24] : memref<64x16x128xf32, #tpu.memory_space<vmem>>, vector<64x16x128xf32>
    tpu.vector_store %arg10[%c0_22, %c0_23, %c0_24], %43 {strides = array<i32>} : memref<64x16x128xf32, #tpu.memory_space<vmem>>, vector<64x16x128xf32>,
    %45 = arith.mulf %32, %9 : vector<64x128xf32>
    %46 = vector.shape_cast %45 : vector<64x128xf32> to vector<64x1x128xf32>
    %47 = vector.shape_cast %33 : vector<64x16xf32> to vector<64x16x1xf32>
    %48 = vector.broadcast %46 : vector<64x1x128xf32> to vector<64x16x128xf32>
    %49 = vector.broadcast %47 : vector<64x16x1xf32> to vector<64x16x128xf32>
    %50 = arith.mulf %48, %49 : vector<64x16x128xf32>
    %c0_25 = arith.constant 0 : index
    %c0_26 = arith.constant 0 : index
    %c0_27 = arith.constant 0 : index
    %51 = vector.load %arg11[%c0_25, %c0_26, %c0_27] : memref<64x16x128xf32, #tpu.memory_space<vmem>>, vector<64x16x128xf32>
    tpu.vector_store %arg11[%c0_25, %c0_26, %c0_27], %50 {strides = array<i32>} : memref<64x16x128xf32, #tpu.memory_space<vmem>>, vector<64x16x128xf32>,
    %c0_28 = arith.constant 0 : index
    %c0_29 = arith.constant 0 : index
    %c0_30 = arith.constant 0 : index
    %52 = vector.load %arg8[%c0_28, %c0_29, %c0_30] : memref<1x1x128xf32, #tpu.memory_space<vmem>>, vector<1x1x128xf32>
    %53 = vector.shape_cast %52 : vector<1x1x128xf32> to vector<1x128xf32>
    %54 = vector.broadcast %53 : vector<1x128xf32> to vector<64x128xf32>
    %55 = arith.mulf %9, %54 : vector<64x128xf32>
    %c0_31 = arith.constant 0 : index
    %c0_32 = arith.constant 0 : index
    %c0_33 = arith.constant 0 : index
    %c0_34 = arith.constant 0 : index
    %56 = vector.load %arg9[%c0_31, %c0_32, %c0_33, %c0_34] : memref<1x1x64x128xf32, #tpu.memory_space<vmem>>, vector<1x1x64x128xf32>
    %57 = vector.shape_cast %56 : vector<1x1x64x128xf32> to vector<64x128xf32>
    %58 = vector.shape_cast %55 : vector<64x128xf32> to vector<1x1x64x128xf32>
    tpu.vector_store %arg9[%c0_31, %c0_32, %c0_33, %c0_34], %58 {strides = array<i32>} : memref<1x1x64x128xf32, #tpu.memory_space<vmem>>, vector<1x1x64x128xf32>,
    %c0_35 = arith.constant 0 : index
    %c0_36 = arith.constant 0 : index
    %59 = vector.load %arg14[%c0_35, %c0_36] : memref<16x128xf32, #tpu.memory_space<vmem>>, vector<16x128xf32>
    %c0_i32_37 = arith.constant 0 : i32
    %c8_i32 = arith.constant 8 : i32
    %60 = arith.addi %c0_i32_37, %c8_i32 : i32
    %c1_i32_38 = arith.constant 1 : i32
    %61 = scf.for %arg15 = %c0_i32_37 to %60 step %c1_i32_38 iter_args(%arg16 = %59) -> (vector<16x128xf32>)  : i32 {
      %c8_i32_42 = arith.constant 8 : i32
      %63 = arith.muli %arg15, %c8_i32_42 : i32
      %64 = tpu.assume_multiple %63, 8 : i32
      %c0_i32_43 = arith.constant 0 : i32
      %65 = arith.addi %64, %c0_i32_43 : i32
      %66 = arith.index_cast %65 : i32 to index
      %c0_44 = arith.constant 0 : index
      %c0_45 = arith.constant 0 : index
      %67 = vector.load %arg10[%66, %c0_44, %c0_45] : memref<64x16x128xf32, #tpu.memory_space<vmem>>, vector<1x16x128xf32>
      %68 = vector.shape_cast %67 : vector<1x16x128xf32> to vector<16x128xf32>
      %69 = arith.mulf %68, %arg16 : vector<16x128xf32>
      %70 = arith.index_cast %65 : i32 to index
      %c0_46 = arith.constant 0 : index
      %c0_47 = arith.constant 0 : index
      %71 = vector.load %arg11[%70, %c0_46, %c0_47] : memref<64x16x128xf32, #tpu.memory_space<vmem>>, vector<1x16x128xf32>
      %72 = vector.shape_cast %71 : vector<1x16x128xf32> to vector<16x128xf32>
      %73 = arith.addf %69, %72 : vector<16x128xf32>
      %74 = arith.index_cast %65 : i32 to index
      %c0_48 = arith.constant 0 : index
      %75 = vector.load %arg12[%74, %c0_48] : memref<64x16xf32, #tpu.memory_space<vmem>>, vector<1x16xf32>
      %cst_49 = arith.constant dense<0.000000e+00> : vector<1x128xf32>
      %76 = tpu.matmul %75, %73, %cst_49 {dimension_numbers = #tpu.dot_dimension_numbers<[1], [0], [0], [1], [0, 0, 1, 1], [], []>} : vector<1x16xf32>, vector<16x128xf32>, vector<1x128xf32> -> vector<1x128xf32>
      %c1_i32_50 = arith.constant 1 : i32
      %77 = arith.addi %64, %c1_i32_50 : i32
      %78 = arith.index_cast %77 : i32 to index
      %c0_51 = arith.constant 0 : index
      %c0_52 = arith.constant 0 : index
      %79 = vector.load %arg10[%78, %c0_51, %c0_52] : memref<64x16x128xf32, #tpu.memory_space<vmem>>, vector<1x16x128xf32>
      %80 = vector.shape_cast %79 : vector<1x16x128xf32> to vector<16x128xf32>
      %81 = arith.mulf %80, %73 : vector<16x128xf32>
      %82 = arith.index_cast %77 : i32 to index
      %c0_53 = arith.constant 0 : index
      %c0_54 = arith.constant 0 : index
      %83 = vector.load %arg11[%82, %c0_53, %c0_54] : memref<64x16x128xf32, #tpu.memory_space<vmem>>, vector<1x16x128xf32>
      %84 = vector.shape_cast %83 : vector<1x16x128xf32> to vector<16x128xf32>
      %85 = arith.addf %81, %84 : vector<16x128xf32>
      %86 = arith.index_cast %77 : i32 to index
      %c0_55 = arith.constant 0 : index
      %87 = vector.load %arg12[%86, %c0_55] : memref<64x16xf32, #tpu.memory_space<vmem>>, vector<1x16xf32>
      %cst_56 = arith.constant dense<0.000000e+00> : vector<1x128xf32>
      %88 = tpu.matmul %87, %85, %cst_56 {dimension_numbers = #tpu.dot_dimension_numbers<[1], [0], [0], [1], [0, 0, 1, 1], [], []>} : vector<1x16xf32>, vector<16x128xf32>, vector<1x128xf32> -> vector<1x128xf32>
      %c2_i32 = arith.constant 2 : i32
      %89 = arith.addi %64, %c2_i32 : i32
      %90 = arith.index_cast %89 : i32 to index
      %c0_57 = arith.constant 0 : index
      %c0_58 = arith.constant 0 : index
      %91 = vector.load %arg10[%90, %c0_57, %c0_58] : memref<64x16x128xf32, #tpu.memory_space<vmem>>, vector<1x16x128xf32>
      %92 = vector.shape_cast %91 : vector<1x16x128xf32> to vector<16x128xf32>
      %93 = arith.mulf %92, %85 : vector<16x128xf32>
      %94 = arith.index_cast %89 : i32 to index
      %c0_59 = arith.constant 0 : index
      %c0_60 = arith.constant 0 : index
      %95 = vector.load %arg11[%94, %c0_59, %c0_60] : memref<64x16x128xf32, #tpu.memory_space<vmem>>, vector<1x16x128xf32>
      %96 = vector.shape_cast %95 : vector<1x16x128xf32> to vector<16x128xf32>
      %97 = arith.addf %93, %96 : vector<16x128xf32>
      %98 = arith.index_cast %89 : i32 to index
      %c0_61 = arith.constant 0 : index
      %99 = vector.load %arg12[%98, %c0_61] : memref<64x16xf32, #tpu.memory_space<vmem>>, vector<1x16xf32>
      %cst_62 = arith.constant dense<0.000000e+00> : vector<1x128xf32>
      %100 = tpu.matmul %99, %97, %cst_62 {dimension_numbers = #tpu.dot_dimension_numbers<[1], [0], [0], [1], [0, 0, 1, 1], [], []>} : vector<1x16xf32>, vector<16x128xf32>, vector<1x128xf32> -> vector<1x128xf32>
      %c3_i32 = arith.constant 3 : i32
      %101 = arith.addi %64, %c3_i32 : i32
      %102 = arith.index_cast %101 : i32 to index
      %c0_63 = arith.constant 0 : index
      %c0_64 = arith.constant 0 : index
      %103 = vector.load %arg10[%102, %c0_63, %c0_64] : memref<64x16x128xf32, #tpu.memory_space<vmem>>, vector<1x16x128xf32>
      %104 = vector.shape_cast %103 : vector<1x16x128xf32> to vector<16x128xf32>
      %105 = arith.mulf %104, %97 : vector<16x128xf32>
      %106 = arith.index_cast %101 : i32 to index
      %c0_65 = arith.constant 0 : index
      %c0_66 = arith.constant 0 : index
      %107 = vector.load %arg11[%106, %c0_65, %c0_66] : memref<64x16x128xf32, #tpu.memory_space<vmem>>, vector<1x16x128xf32>
      %108 = vector.shape_cast %107 : vector<1x16x128xf32> to vector<16x128xf32>
      %109 = arith.addf %105, %108 : vector<16x128xf32>
      %110 = arith.index_cast %101 : i32 to index
      %c0_67 = arith.constant 0 : index
      %111 = vector.load %arg12[%110, %c0_67] : memref<64x16xf32, #tpu.memory_space<vmem>>, vector<1x16xf32>
      %cst_68 = arith.constant dense<0.000000e+00> : vector<1x128xf32>
      %112 = tpu.matmul %111, %109, %cst_68 {dimension_numbers = #tpu.dot_dimension_numbers<[1], [0], [0], [1], [0, 0, 1, 1], [], []>} : vector<1x16xf32>, vector<16x128xf32>, vector<1x128xf32> -> vector<1x128xf32>
      %c4_i32 = arith.constant 4 : i32
      %113 = arith.addi %64, %c4_i32 : i32
      %114 = arith.index_cast %113 : i32 to index
      %c0_69 = arith.constant 0 : index
      %c0_70 = arith.constant 0 : index
      %115 = vector.load %arg10[%114, %c0_69, %c0_70] : memref<64x16x128xf32, #tpu.memory_space<vmem>>, vector<1x16x128xf32>
      %116 = vector.shape_cast %115 : vector<1x16x128xf32> to vector<16x128xf32>
      %117 = arith.mulf %116, %109 : vector<16x128xf32>
      %118 = arith.index_cast %113 : i32 to index
      %c0_71 = arith.constant 0 : index
      %c0_72 = arith.constant 0 : index
      %119 = vector.load %arg11[%118, %c0_71, %c0_72] : memref<64x16x128xf32, #tpu.memory_space<vmem>>, vector<1x16x128xf32>
      %120 = vector.shape_cast %119 : vector<1x16x128xf32> to vector<16x128xf32>
      %121 = arith.addf %117, %120 : vector<16x128xf32>
      %122 = arith.index_cast %113 : i32 to index
      %c0_73 = arith.constant 0 : index
      %123 = vector.load %arg12[%122, %c0_73] : memref<64x16xf32, #tpu.memory_space<vmem>>, vector<1x16xf32>
      %cst_74 = arith.constant dense<0.000000e+00> : vector<1x128xf32>
      %124 = tpu.matmul %123, %121, %cst_74 {dimension_numbers = #tpu.dot_dimension_numbers<[1], [0], [0], [1], [0, 0, 1, 1], [], []>} : vector<1x16xf32>, vector<16x128xf32>, vector<1x128xf32> -> vector<1x128xf32>
      %c5_i32 = arith.constant 5 : i32
      %125 = arith.addi %64, %c5_i32 : i32
      %126 = arith.index_cast %125 : i32 to index
      %c0_75 = arith.constant 0 : index
      %c0_76 = arith.constant 0 : index
      %127 = vector.load %arg10[%126, %c0_75, %c0_76] : memref<64x16x128xf32, #tpu.memory_space<vmem>>, vector<1x16x128xf32>
      %128 = vector.shape_cast %127 : vector<1x16x128xf32> to vector<16x128xf32>
      %129 = arith.mulf %128, %121 : vector<16x128xf32>
      %130 = arith.index_cast %125 : i32 to index
      %c0_77 = arith.constant 0 : index
      %c0_78 = arith.constant 0 : index
      %131 = vector.load %arg11[%130, %c0_77, %c0_78] : memref<64x16x128xf32, #tpu.memory_space<vmem>>, vector<1x16x128xf32>
      %132 = vector.shape_cast %131 : vector<1x16x128xf32> to vector<16x128xf32>
      %133 = arith.addf %129, %132 : vector<16x128xf32>
      %134 = arith.index_cast %125 : i32 to index
      %c0_79 = arith.constant 0 : index
      %135 = vector.load %arg12[%134, %c0_79] : memref<64x16xf32, #tpu.memory_space<vmem>>, vector<1x16xf32>
      %cst_80 = arith.constant dense<0.000000e+00> : vector<1x128xf32>
      %136 = tpu.matmul %135, %133, %cst_80 {dimension_numbers = #tpu.dot_dimension_numbers<[1], [0], [0], [1], [0, 0, 1, 1], [], []>} : vector<1x16xf32>, vector<16x128xf32>, vector<1x128xf32> -> vector<1x128xf32>
      %c6_i32 = arith.constant 6 : i32
      %137 = arith.addi %64, %c6_i32 : i32
      %138 = arith.index_cast %137 : i32 to index
      %c0_81 = arith.constant 0 : index
      %c0_82 = arith.constant 0 : index
      %139 = vector.load %arg10[%138, %c0_81, %c0_82] : memref<64x16x128xf32, #tpu.memory_space<vmem>>, vector<1x16x128xf32>
      %140 = vector.shape_cast %139 : vector<1x16x128xf32> to vector<16x128xf32>
      %141 = arith.mulf %140, %133 : vector<16x128xf32>
      %142 = arith.index_cast %137 : i32 to index
      %c0_83 = arith.constant 0 : index
      %c0_84 = arith.constant 0 : index
      %143 = vector.load %arg11[%142, %c0_83, %c0_84] : memref<64x16x128xf32, #tpu.memory_space<vmem>>, vector<1x16x128xf32>
      %144 = vector.shape_cast %143 : vector<1x16x128xf32> to vector<16x128xf32>
      %145 = arith.addf %141, %144 : vector<16x128xf32>
      %146 = arith.index_cast %137 : i32 to index
      %c0_85 = arith.constant 0 : index
      %147 = vector.load %arg12[%146, %c0_85] : memref<64x16xf32, #tpu.memory_space<vmem>>, vector<1x16xf32>
      %cst_86 = arith.constant dense<0.000000e+00> : vector<1x128xf32>
      %148 = tpu.matmul %147, %145, %cst_86 {dimension_numbers = #tpu.dot_dimension_numbers<[1], [0], [0], [1], [0, 0, 1, 1], [], []>} : vector<1x16xf32>, vector<16x128xf32>, vector<1x128xf32> -> vector<1x128xf32>
      %c7_i32 = arith.constant 7 : i32
      %149 = arith.addi %64, %c7_i32 : i32
      %150 = arith.index_cast %149 : i32 to index
      %c0_87 = arith.constant 0 : index
      %c0_88 = arith.constant 0 : index
      %151 = vector.load %arg10[%150, %c0_87, %c0_88] : memref<64x16x128xf32, #tpu.memory_space<vmem>>, vector<1x16x128xf32>
      %152 = vector.shape_cast %151 : vector<1x16x128xf32> to vector<16x128xf32>
      %153 = arith.mulf %152, %145 : vector<16x128xf32>
      %154 = arith.index_cast %149 : i32 to index
      %c0_89 = arith.constant 0 : index
      %c0_90 = arith.constant 0 : index
      %155 = vector.load %arg11[%154, %c0_89, %c0_90] : memref<64x16x128xf32, #tpu.memory_space<vmem>>, vector<1x16x128xf32>
      %156 = vector.shape_cast %155 : vector<1x16x128xf32> to vector<16x128xf32>
      %157 = arith.addf %153, %156 : vector<16x128xf32>
      %158 = arith.index_cast %149 : i32 to index
      %c0_91 = arith.constant 0 : index
      %159 = vector.load %arg12[%158, %c0_91] : memref<64x16xf32, #tpu.memory_space<vmem>>, vector<1x16xf32>
      %cst_92 = arith.constant dense<0.000000e+00> : vector<1x128xf32>
      %160 = tpu.matmul %159, %157, %cst_92 {dimension_numbers = #tpu.dot_dimension_numbers<[1], [0], [0], [1], [0, 0, 1, 1], [], []>} : vector<1x16xf32>, vector<16x128xf32>, vector<1x128xf32> -> vector<1x128xf32>
      %161 = tpu.concatenate %76, %88, %100, %112, %124, %136, %148, %160 in 0 : vector<1x128xf32>, vector<1x128xf32>, vector<1x128xf32>, vector<1x128xf32>, vector<1x128xf32>, vector<1x128xf32>, vector<1x128xf32>, vector<1x128xf32> -> vector<8x128xf32>
      %c0_93 = arith.constant 0 : index
      %c0_94 = arith.constant 0 : index
      %162 = arith.index_cast %64 : i32 to index
      %c0_95 = arith.constant 0 : index
      %163 = vector.load %arg9[%c0_93, %c0_94, %162, %c0_95] : memref<1x1x64x128xf32, #tpu.memory_space<vmem>>, vector<1x1x8x128xf32>
      %164 = vector.shape_cast %163 : vector<1x1x8x128xf32> to vector<8x128xf32>
      %165 = arith.addf %164, %161 : vector<8x128xf32>
      %c0_96 = arith.constant 0 : index
      %c0_97 = arith.constant 0 : index
      %166 = arith.index_cast %64 : i32 to index
      %c0_98 = arith.constant 0 : index
      %167 = vector.load %arg9[%c0_96, %c0_97, %166, %c0_98] : memref<1x1x64x128xf32, #tpu.memory_space<vmem>>, vector<1x1x8x128xf32>
      %168 = vector.shape_cast %167 : vector<1x1x8x128xf32> to vector<8x128xf32>
      %169 = vector.shape_cast %165 : vector<8x128xf32> to vector<1x1x8x128xf32>
      tpu.vector_store %arg9[%c0_96, %c0_97, %166, %c0_98], %169 {strides = array<i32>} : memref<1x1x64x128xf32, #tpu.memory_space<vmem>>, vector<1x1x8x128xf32>,
      scf.yield %157 : vector<16x128xf32>
    }
    %c8_i32_39 = arith.constant 8 : i32
    %c0_40 = arith.constant 0 : index
    %c0_41 = arith.constant 0 : index
    %62 = vector.load %arg14[%c0_40, %c0_41] : memref<16x128xf32, #tpu.memory_space<vmem>>, vector<16x128xf32>
    tpu.vector_store %arg14[%c0_40, %c0_41], %61 {strides = array<i32>} : memref<16x128xf32, #tpu.memory_space<vmem>>, vector<16x128xf32>,
    return
  }
  func.func @transform_0(%arg0: i32, %arg1: i32, %arg2: i32) -> (i32, i32, i32, i32) {
    %c1_i32 = arith.constant 1 : i32
    %0 = arith.subi %c1_i32, %arg2 : i32
    %1 = arith.minsi %arg2, %0 : i32
    %c0_i32 = arith.constant 0 : i32
    %c0_i32_0 = arith.constant 0 : i32
    return %arg0, %arg1, %1, %c0_i32 : i32, i32, i32, i32
  }
  func.func @transform_1(%arg0: i32, %arg1: i32, %arg2: i32) -> (i32, i32) {
    %c0_i32 = arith.constant 0 : i32
    %c0_i32_0 = arith.constant 0 : i32
    %c0_i32_1 = arith.constant 0 : i32
    return %c0_i32, %c0_i32_0 : i32, i32
  }
  func.func @transform_2(%arg0: i32, %arg1: i32, %arg2: i32) -> (i32, i32, i32) {
    %c0_i32 = arith.constant 0 : i32
    %c0_i32_0 = arith.constant 0 : i32
    %c0_i32_1 = arith.constant 0 : i32
    return %arg0, %c0_i32, %c0_i32_0 : i32, i32, i32
  }
  func.func @transform_3(%arg0: i32, %arg1: i32, %arg2: i32) -> (i32, i32, i32) {
    %c0_i32 = arith.constant 0 : i32
    %c0_i32_0 = arith.constant 0 : i32
    %c0_i32_1 = arith.constant 0 : i32
    return %arg0, %c0_i32, %c0_i32_0 : i32, i32, i32
  }
  func.func @transform_4(%arg0: i32, %arg1: i32, %arg2: i32) -> (i32, i32, i32) {
    %c0_i32 = arith.constant 0 : i32
    %c0_i32_0 = arith.constant 0 : i32
    %c0_i32_1 = arith.constant 0 : i32
    return %arg0, %c0_i32, %c0_i32_0 : i32, i32, i32
  }
  func.func @transform_5(%arg0: i32, %arg1: i32, %arg2: i32) -> (i32, i32, i32) {
    %c0_i32 = arith.constant 0 : i32
    %c0_i32_0 = arith.constant 0 : i32
    %c0_i32_1 = arith.constant 0 : i32
    return %arg0, %c0_i32, %c0_i32_0 : i32, i32, i32
  }
  func.func @transform_6(%arg0: i32, %arg1: i32, %arg2: i32) -> (i32, i32, i32, i32) {
    %c1_i32 = arith.constant 1 : i32
    %0 = arith.subi %arg2, %c1_i32 : i32
    %c0_i32 = arith.constant 0 : i32
    %1 = arith.maxsi %0, %c0_i32 : i32
    %c0_i32_0 = arith.constant 0 : i32
    %c0_i32_1 = arith.constant 0 : i32
    return %arg0, %arg1, %1, %c0_i32_0 : i32, i32, i32, i32
  }
}

module attributes {stable_mosaic.version = 11 : i64} {
  func.func @_norm_gate_proj_kernel(%arg0: i32, %arg1: memref<128x128xf32, #tpu.memory_space<vmem>>, %arg2: memref<128x128xf32, #tpu.memory_space<vmem>>, %arg3: memref<1x128xf32, #tpu.memory_space<vmem>>, %arg4: memref<1x128xf32, #tpu.memory_space<vmem>>, %arg5: memref<128x128xbf16, #tpu.memory_space<vmem>>, %arg6: memref<128x128xf32, #tpu.memory_space<vmem>>) attributes {dimension_semantics = [#tpu.dimension_semantics<parallel>], iteration_bounds = array<i64: 1>, scalar_prefetch = 0 : i64, scratch_operands = 0 : i64, tpu.core_type = #tpu.core_type<tc>, window_params = [{transform_indices = @transform_0, window_bounds = array<i64: 128, 128>}, {transform_indices = @transform_1, window_bounds = array<i64: 128, 128>}, {pipeline_mode = #tpu.pipeline_mode<synchronous>, transform_indices = @transform_2, window_bounds = array<i64: 1, 128>}, {pipeline_mode = #tpu.pipeline_mode<synchronous>, transform_indices = @transform_3, window_bounds = array<i64: 1, 128>}, {pipeline_mode = #tpu.pipeline_mode<synchronous>, transform_indices = @transform_4, window_bounds = array<i64: 128, 128>}, {transform_indices = @transform_5, window_bounds = array<i64: 128, 128>}]} {
    %c0 = arith.constant 0 : index
    %c0_0 = arith.constant 0 : index
    %0 = vector.load %arg1[%c0, %c0_0] : memref<128x128xf32, #tpu.memory_space<vmem>>, vector<128x128xf32>
    %cst = arith.constant dense<0.000000e+00> : vector<128xf32>
    %1 = vector.multi_reduction <add>, %0, %cst [1] : vector<128x128xf32> to vector<128xf32>
    %2 = vector.shape_cast %1 : vector<128xf32> to vector<128x1xf32>
    %cst_1 = arith.constant 3.125000e-02 : f32
    %3 = vector.broadcast %cst_1 : f32 to vector<128x1xf32>
    %4 = arith.mulf %2, %3 : vector<128x1xf32>
    %5 = tpu.iota {dimensions = array<i32: 1>} : vector<128x128xi32>
    %c32_i32 = arith.constant 32 : i32
    %6 = vector.broadcast %c32_i32 : i32 to vector<128x128xi32>
    %7 = arith.cmpi slt, %5, %6 : vector<128x128xi32>
    %8 = vector.broadcast %4 : vector<128x1xf32> to vector<128x128xf32>
    %9 = arith.subf %0, %8 : vector<128x128xf32>
    %cst_2 = arith.constant 0.000000e+00 : f32
    %10 = vector.broadcast %cst_2 : f32 to vector<128x128xf32>
    %11 = arith.select %7, %9, %10 : vector<128x128xi1>, vector<128x128xf32>
    %12 = arith.mulf %11, %11 : vector<128x128xf32>
    %cst_3 = arith.constant dense<0.000000e+00> : vector<128xf32>
    %13 = vector.multi_reduction <add>, %12, %cst_3 [1] : vector<128x128xf32> to vector<128xf32>
    %14 = vector.shape_cast %13 : vector<128xf32> to vector<128x1xf32>
    %cst_4 = arith.constant 3.125000e-02 : f32
    %15 = vector.broadcast %cst_4 : f32 to vector<128x1xf32>
    %16 = arith.mulf %14, %15 : vector<128x1xf32>
    %cst_5 = arith.constant 9.99999974E-6 : f32
    %17 = vector.broadcast %cst_5 : f32 to vector<128x1xf32>
    %18 = arith.addf %16, %17 : vector<128x1xf32>
    %19 = math.rsqrt %18 : vector<128x1xf32>
    %20 = vector.broadcast %19 : vector<128x1xf32> to vector<128x128xf32>
    %21 = arith.mulf %11, %20 : vector<128x128xf32>
    %c0_6 = arith.constant 0 : index
    %c0_7 = arith.constant 0 : index
    %22 = vector.load %arg3[%c0_6, %c0_7] : memref<1x128xf32, #tpu.memory_space<vmem>>, vector<1x128xf32>
    %23 = vector.broadcast %22 : vector<1x128xf32> to vector<128x128xf32>
    %24 = arith.mulf %21, %23 : vector<128x128xf32>
    %c0_8 = arith.constant 0 : index
    %c0_9 = arith.constant 0 : index
    %25 = vector.load %arg4[%c0_8, %c0_9] : memref<1x128xf32, #tpu.memory_space<vmem>>, vector<1x128xf32>
    %26 = vector.broadcast %25 : vector<1x128xf32> to vector<128x128xf32>
    %27 = arith.addf %24, %26 : vector<128x128xf32>
    %c0_10 = arith.constant 0 : index
    %c0_11 = arith.constant 0 : index
    %28 = vector.load %arg2[%c0_10, %c0_11] : memref<128x128xf32, #tpu.memory_space<vmem>>, vector<128x128xf32>
    %29 = arith.negf %28 : vector<128x128xf32>
    %30 = math.exp %29 : vector<128x128xf32>
    %cst_12 = arith.constant 1.000000e+00 : f32
    %31 = vector.broadcast %cst_12 : f32 to vector<128x128xf32>
    %32 = arith.addf %31, %30 : vector<128x128xf32>
    %33 = arith.divf %31, %32 : vector<128x128xf32>
    %34 = arith.mulf %28, %33 : vector<128x128xf32>
    %35 = arith.mulf %27, %34 : vector<128x128xf32>
    %36 = arith.truncf %35 : vector<128x128xf32> to vector<128x128xbf16>
    %c0_13 = arith.constant 0 : index
    %c0_14 = arith.constant 0 : index
    %37 = vector.load %arg5[%c0_13, %c0_14] : memref<128x128xbf16, #tpu.memory_space<vmem>>, vector<128x128xbf16>
    %cst_15 = arith.constant dense<0.000000e+00> : vector<128x128xf32>
    %38 = tpu.matmul %36, %37, %cst_15 {dimension_numbers = #tpu.dot_dimension_numbers<[1], [0], [0], [1], [0, 0, 1, 1], [], []>} : vector<128x128xbf16>, vector<128x128xbf16>, vector<128x128xf32> -> vector<128x128xf32>
    %c0_16 = arith.constant 0 : index
    %c0_17 = arith.constant 0 : index
    %39 = vector.load %arg6[%c0_16, %c0_17] : memref<128x128xf32, #tpu.memory_space<vmem>>, vector<128x128xf32>
    tpu.vector_store %arg6[%c0_16, %c0_17], %38 {strides = array<i32>} : memref<128x128xf32, #tpu.memory_space<vmem>>, vector<128x128xf32>,
    return
  }
  func.func @transform_0(%arg0: i32) -> (i32, i32) {
    %c0_i32 = arith.constant 0 : i32
    %c0_i32_0 = arith.constant 0 : i32
    return %arg0, %c0_i32 : i32, i32
  }
  func.func @transform_1(%arg0: i32) -> (i32, i32) {
    %c0_i32 = arith.constant 0 : i32
    %c0_i32_0 = arith.constant 0 : i32
    return %arg0, %c0_i32 : i32, i32
  }
  func.func @transform_2(%arg0: i32) -> (i32, i32) {
    %c0_i32 = arith.constant 0 : i32
    %c0_i32_0 = arith.constant 0 : i32
    %c0_i32_1 = arith.constant 0 : i32
    return %c0_i32, %c0_i32_0 : i32, i32
  }
  func.func @transform_3(%arg0: i32) -> (i32, i32) {
    %c0_i32 = arith.constant 0 : i32
    %c0_i32_0 = arith.constant 0 : i32
    %c0_i32_1 = arith.constant 0 : i32
    return %c0_i32, %c0_i32_0 : i32, i32
  }
  func.func @transform_4(%arg0: i32) -> (i32, i32) {
    %c0_i32 = arith.constant 0 : i32
    %c0_i32_0 = arith.constant 0 : i32
    %c0_i32_1 = arith.constant 0 : i32
    return %c0_i32, %c0_i32_0 : i32, i32
  }
  func.func @transform_5(%arg0: i32) -> (i32, i32) {
    %c0_i32 = arith.constant 0 : i32
    %c0_i32_0 = arith.constant 0 : i32
    return %arg0, %c0_i32 : i32, i32
  }
}

</mosaic_0001>

<bundles_post_ra>
// kernel: ss3d_forward.4
= control target key start
LH: loop header
LB: loop body
LE: loop exit
PB: predicated region body
PF: predicated region fallthrough
CT: control target
= control target key end

     0   :  { %v305_v1 = vmov 0   ;;  %vm92_vm0 = vcmask 261120   ;;  %s461_s1 = inlined_call_operand.vmem [shape: bf16[32,256], index: 1, kind: input, shape index: {}]   ;;  %s462_s0 = inlined_call_operand.vmem [shape: bf16[128,32], index: 0, kind: input, shape index: {}]   ;;  %s463_s2 = inlined_call_operand.vmem [shape: f32[128,256], index: 2, kind: output, shape index: {}]  }
   0x1   :  { %v291_v0 = vld [vmem:[%s461_s1 + $0x4] ss:$8 sps:$4 sm:$0xff]   ;;  %149 = vmatprep.mubr.bf16.mxu0 %v305_v1  ;;  %189 = vmatprep.mubr.bf16.mxu1 %v305_v1  ;;  %v293_v2 = vld [vmem:[%s461_s1] ss:$8 sps:$4 sm:$0xff]   ;;  %v294_v3 = vld [vmem:[%s461_s1 + $0x14] ss:$8 sps:$4 sm:$0xff]  }
   0x2   :  { %117 = vmatprep.subr.bf16.mxu0 %v291_v0  ;;  %286 = vmatprep.subr.bf16.mxu1 %v291_v0  ;;  %v296_v4 = vld [vmem:[%s461_s1 + $0x10] ss:$8 sps:$4 sm:$0xff]   ;;  %v297_v5 = vld [vmem:[%s462_s0] sm:$0xff]   ;;  %v299_v7 = vld [vmem:[%s462_s0 + $0x8] sm:$0xff]  }
   0x3   :  { %118 = vmatpush1.bf16.msra.mxu0 %v293_v2  ;;  %288 = vmatpush1.bf16.msra.mxu1 %v293_v2  ;;  %v298_v6 = vld [vmem:[%s462_s0 + $0x20] sm:$0xff]   ;;  %v300_v8 = vld [vmem:[%s462_s0 + $0x28] sm:$0xff]   ;;  %v301_v9 = vld [vmem:[%s462_s0 + $0x10] sm:$0xff]  }
   0x4   :  { %119 = vmatprep.subr.bf16.mxu0 %v294_v3  ;;  %287 = vmatprep.subr.bf16.mxu1 %v294_v3  ;;  %v302_v10 = vld [vmem:[%s462_s0 + $0x30] sm:$0xff]   ;;  %v303_v11 = vld [vmem:[%s462_s0 + $0x18] sm:$0xff]  }
   0x5   :  { %v304_v12 = vld [vmem:[%s462_s0 + $0x38] sm:$0xff]  }
   0x7   :  { %120 = vmatpush1.bf16.msra.mxu0 %v296_v4  ;;  %289 = vmatpush1.bf16.msra.mxu1 %v296_v4 }
   0xa   :  { %278 = vmatmul.mubr.msk.bf16.vlgmr.msra.gmra.mrb[0].mxu0 %vm92_vm0, %v297_v5  ;;  %282 = vmatmul.mubr.msk.bf16.vlgmr.msra.gmra.mrb[0].mxu1 %vm92_vm0, %v298_v6 }
   0xb   :  { %159 = vmatprep.mubr.bf16.mxu0 %v305_v1  ;;  %199 = vmatprep.mubr.bf16.mxu1 %v305_v1 }
  0x12   :  { %279 = vmatmul.mubr.msk.bf16.gmra.mrb[4].mxu0 %vm92_vm0, %v299_v7  ;;  %283 = vmatmul.mubr.msk.bf16.gmra.mrb[4].mxu1 %vm92_vm0, %v300_v8 }
  0x13   :  { %169 = vmatprep.mubr.bf16.mxu0 %v305_v1  ;;  %209 = vmatprep.mubr.bf16.mxu1 %v305_v1 }
  0x1a   :  { %280 = vmatmul.mubr.msk.bf16.gmra.mrb[8].mxu0 %vm92_vm0, %v301_v9  ;;  %284 = vmatmul.mubr.msk.bf16.gmra.mrb[8].mxu1 %vm92_vm0, %v302_v10 }
  0x1b   :  { %179 = vmatprep.mubr.bf16.mxu0 %v305_v1  ;;  %219 = vmatprep.mubr.bf16.mxu1 %v305_v1 }
  0x22   :  { %281 = vmatmul.mubr.msk.bf16.gmra.mrb[12].mxu0 %vm92_vm0, %v303_v11  ;;  %285 = vmatmul.mubr.msk.bf16.gmra.mrb[12].mxu1 %vm92_vm0, %v304_v12 }
  0xdd   :  { %v151_v13 = vpop.f32.mrb[0].mxu0  ;;  %v191_v14 = vpop.f32.mrb[0].mxu1 }
  0xde   :  { %230 = vst [vmem:[%s463_s2] sm:$0xff] %v151_v13  ;;  %246 = vst [vmem:[%s463_s2 + $0x80] sm:$0xff] %v191_v14  ;;  %v153_v15 = vpop.f32.mrb[1].mxu0  ;;  %v193_v16 = vpop.f32.mrb[1].mxu1 }
  0xdf   :  { %231 = vst [vmem:[%s463_s2 + $0x8] sm:$0xff] %v153_v15  ;;  %247 = vst [vmem:[%s463_s2 + $0x88] sm:$0xff] %v193_v16  ;;  %v155_v17 = vpop.f32.mrb[2].mxu0  ;;  %v195_v18 = vpop.f32.mrb[2].mxu1 }
  0xe0   :  { %232 = vst [vmem:[%s463_s2 + $0x10] sm:$0xff] %v155_v17  ;;  %248 = vst [vmem:[%s463_s2 + $0x90] sm:$0xff] %v195_v18  ;;  %v157_v19 = vpop.f32.mrb[3].mxu0  ;;  %v197_v20 = vpop.f32.mrb[3].mxu1 }
  0xe1   :  { %233 = vst [vmem:[%s463_s2 + $0x18] sm:$0xff] %v157_v19  ;;  %249 = vst [vmem:[%s463_s2 + $0x98] sm:$0xff] %v197_v20 }
  0xe5   :  { %v161_v21 = vpop.f32.mrb[4].mxu0  ;;  %v201_v22 = vpop.f32.mrb[4].mxu1 }
  0xe6   :  { %234 = vst [vmem:[%s463_s2 + $0x20] sm:$0xff] %v161_v21  ;;  %250 = vst [vmem:[%s463_s2 + $0xa0] sm:$0xff] %v201_v22  ;;  %v163_v23 = vpop.f32.mrb[5].mxu0  ;;  %v203_v24 = vpop.f32.mrb[5].mxu1 }
  0xe7   :  { %235 = vst [vmem:[%s463_s2 + $0x28] sm:$0xff] %v163_v23  ;;  %251 = vst [vmem:[%s463_s2 + $0xa8] sm:$0xff] %v203_v24  ;;  %v165_v25 = vpop.f32.mrb[6].mxu0  ;;  %v205_v26 = vpop.f32.mrb[6].mxu1 }
  0xe8   :  { %236 = vst [vmem:[%s463_s2 + $0x30] sm:$0xff] %v165_v25  ;;  %252 = vst [vmem:[%s463_s2 + $0xb0] sm:$0xff] %v205_v26  ;;  %v167_v27 = vpop.f32.mrb[7].mxu0  ;;  %v207_v28 = vpop.f32.mrb[7].mxu1 }
  0xe9   :  { %237 = vst [vmem:[%s463_s2 + $0x38] sm:$0xff] %v167_v27  ;;  %253 = vst [vmem:[%s463_s2 + $0xb8] sm:$0xff] %v207_v28 }
  0xed   :  { %v171_v29 = vpop.f32.mrb[8].mxu0  ;;  %v211_v30 = vpop.f32.mrb[8].mxu1 }
  0xee   :  { %238 = vst [vmem:[%s463_s2 + $0x40] sm:$0xff] %v171_v29  ;;  %254 = vst [vmem:[%s463_s2 + $0xc0] sm:$0xff] %v211_v30  ;;  %v173_v31 = vpop.f32.mrb[9].mxu0  ;;  %v213_v32 = vpop.f32.mrb[9].mxu1 }
  0xef   :  { %239 = vst [vmem:[%s463_s2 + $0x48] sm:$0xff] %v173_v31  ;;  %255 = vst [vmem:[%s463_s2 + $0xc8] sm:$0xff] %v213_v32  ;;  %v175_v33 = vpop.f32.mrb[10].mxu0  ;;  %v215_v34 = vpop.f32.mrb[10].mxu1 }
  0xf0   :  { %240 = vst [vmem:[%s463_s2 + $0x50] sm:$0xff] %v175_v33  ;;  %256 = vst [vmem:[%s463_s2 + $0xd0] sm:$0xff] %v215_v34  ;;  %v177_v35 = vpop.f32.mrb[11].mxu0  ;;  %v217_v36 = vpop.f32.mrb[11].mxu1 }
  0xf1   :  { %241 = vst [vmem:[%s463_s2 + $0x58] sm:$0xff] %v177_v35  ;;  %257 = vst [vmem:[%s463_s2 + $0xd8] sm:$0xff] %v217_v36 }
  0xf5   :  { %v181_v37 = vpop.f32.mrb[12].mxu0  ;;  %v221_v38 = vpop.f32.mrb[12].mxu1 }
  0xf6   :  { %242 = vst [vmem:[%s463_s2 + $0x60] sm:$0xff] %v181_v37  ;;  %258 = vst [vmem:[%s463_s2 + $0xe0] sm:$0xff] %v221_v38  ;;  %v183_v39 = vpop.f32.mrb[13].mxu0  ;;  %v223_v40 = vpop.f32.mrb[13].mxu1 }
  0xf7   :  { %243 = vst [vmem:[%s463_s2 + $0x68] sm:$0xff] %v183_v39  ;;  %259 = vst [vmem:[%s463_s2 + $0xe8] sm:$0xff] %v223_v40  ;;  %v185_v41 = vpop.f32.mrb[14].mxu0  ;;  %v225_v42 = vpop.f32.mrb[14].mxu1 }
  0xf8   :  { %244 = vst [vmem:[%s463_s2 + $0x70] sm:$0xff] %v185_v41  ;;  %260 = vst [vmem:[%s463_s2 + $0xf0] sm:$0xff] %v225_v42  ;;  %v187_v43 = vpop.f32.mrb[15].mxu0  ;;  %v227_v44 = vpop.f32.mrb[15].mxu1 }
  0xf9   :  { %245 = vst [vmem:[%s463_s2 + $0x78] sm:$0xff] %v187_v43  ;;  %261 = vst [vmem:[%s463_s2 + $0xf8] sm:$0xff] %v227_v44 }

// kernel: ss3d_forward.5
= control target key start
LH: loop header
LB: loop body
LE: loop exit
PB: predicated region body
PF: predicated region fallthrough
CT: control target
= control target key end

     0   :  { %s1235_s18 = smov 0   ;;  %s1237_s19 = smov 0   ;;  %s1531_s0 = inlined_call_operand.vmem [shape: f32[2,6,6,6,128], index: 0, kind: input, shape index: {}, may-alias: {0,1,2}]   ;;  %s1532_s1 = inlined_call_operand.vmem [shape: f32[2,6,6,6,128], index: 1, kind: input, shape index: {}, may-alias: {0,1,2}]   ;;  %s1533_s2 = inlined_call_operand.vmem [shape: f32[2,6,6,6,128], index: 2, kind: input, shape index: {}, may-alias: {0,1,2}]   ;;  %s1534_s3 = inlined_call_operand.vmem [shape: f32[27,128], index: 3, kind: input, shape index: {}]   ;;  %s1535_s4 = inlined_call_operand.vmem [shape: f32[1,128], index: 4, kind: input, shape index: {}]   ;;  %s1536_s5 = inlined_call_operand.vmem [shape: f32[2,4,4,4,128], index: 5, kind: output, shape index: {}]  }
   0x1   :  { %s1239_s20 = smov 0   ;;  %s1241_s21 = smov 0  }
   0x2   :  { %s1243_s22 = smov 0  }
   0x3 LB: > { %s24_s23 = sadd.s32 1, %s1195_s20  ;;  %s27_s24 = sadd.s32 1, %s1199_s21  ;;  %s1203_s22 = sphi %s1243_s22, %s15_s22   ;;  %s1199_s21 = sphi %s1241_s21, %s1541_s21   ;;  %s1195_s20 = sphi %s1239_s20, %s1540_s20   ;;  %s1191_s19 = sphi %s1237_s19, %s1539_s19   ;;  %s1187_s18 = sphi %s1235_s18, %s1538_s18  }
   0x4   : > { %p25_p0 = scmp.ge.s32.totalorder %s24_s23, 4  ;;  %p992_p1 = scmp.ge.s32.totalorder %s1203_s22, 1 }
   0x5   : > { %p247_p2 = scmp.lt.s32.totalorder %s1203_s22, 9 }
   0x6   : > { %s1543_s23 = smov (%p25_p0, %s24_s23), 0  ;;  %s1545_s24 = smov (!%p25_p0, %s27_s24), %s1199_s21 }
   0x7   : > { %p248_p3 = pnand %p992_p1, %p247_p2  ;;  %p29_p4 = scmp.ge.s32.totalorder %s1545_s24, 2 }
   0x8   : > { %p303_p5 = scmp.lt.s32.totalorder (!%p248_p3), %s1191_s19, 1  ;;  %p305_p6 = scmp.lt.s32.totalorder (!%p248_p3), %s1187_s18, 5  ;;  %v999_v0 = vld [vmem:[%s1534_s3] ss:$0 sm:$0xff] (!%p248_p3)  ;;  %v1000_v1 = vld [vmem:[%s1534_s3 + $0x1] ss:$0 sm:$0xff] (!%p248_p3) }
   0x9   : > { %s1547_s24 = smov (%p29_p4, %s1545_s24), 0  ;;  %251 = sbr.rel (%p248_p3) target bundleno = 114 (0x72), region = 40 }
   0xa   : > { %s312_s25 = sadd.s32 (!%p248_p3), 1, %s1187_s18  ;;  %v1001_v2 = vld [vmem:[%s1534_s3 + $0x2] ss:$0 sm:$0xff] (!%p248_p3)  ;;  %v1006_v21 = vld [vmem:[%s1534_s3 + $0x3] ss:$0 sm:$0xff] (!%p248_p3)  ;;  %s323_s9 = sadd.s32 (!%p248_p3), 2, %s1187_s18 }
   0xb   : > { %p315_p7 = scmp.lt.s32.totalorder (!%p248_p3), %s312_s25, 5  ;;  %v1011_v33 = vld [vmem:[%s1534_s3 + $0x4] ss:$0 sm:$0xff] (!%p248_p3)  ;;  %v1016_v40 = vld [vmem:[%s1534_s3 + $0x5] ss:$0 sm:$0xff] (!%p248_p3)  ;;  %p1352_p8 = scmp.lt.s32.totalorder (!%p248_p3), %s323_s9, 5 }
   0xc   : > { %v1021_v48 = vld [vmem:[%s1534_s3 + $0x6] ss:$0 sm:$0xff] (!%p248_p3)  ;;  %v1026_v62 = vld [vmem:[%s1534_s3 + $0x7] ss:$0 sm:$0xff] (!%p248_p3)  ;;  %p336_p9 = scmp.lt.s32.totalorder (!%p248_p3), %s1187_s18, 3 }
  0x10   : > { %s1549_s19 = smov (!%p303_p5, %s1191_s19), 1  ;;  %s1551_s25 = smov (!%p315_p7, %s312_s25), 5 }
  0x11   : > { %s306_s26 = scalar_select %p305_p6, %s1187_s18, 5 }
  0x12   : > { %s1273_s27 = smul.u32 36, %s1549_s19  ;;  %s1553_s9 = smov (!%p1352_p8, %s323_s9), 5 }
  0x13   : > { %s1105_s28 = smul.u32 6, %s306_s26  ;;  %s1555_s18 = smov (!%p336_p9, %s1187_s18), 3 }
  0x14   : > { %s1107_s15 = smul.u32 6, %s1551_s25 }
  0x15   : > { %s309_s29 = sadd.s32 %s1273_s27, %s1105_s28  ;;  %s1108_s7 = smul.u32 6, %s1553_s9 }
  0x16   : > { %s993_s30 = sshll.u32 %s309_s29, 3  ;;  %s1309_s25 = sadd.s32 %s1107_s15, %s1273_s27 }
  0x17   : > { %s1284_s10 = scalar_lea.vmem %s1531_s0, %s993_s30  ;;  %s994_s8 = sshll.u32 %s1309_s25, 3 }
  0x18   : > { %v343_v3 = vld [vmem:[%s1284_s10] sm:$0xf]  ;;  %v344_v4 = vld [vmem:[%s1284_s10 + $0x8] sm:$0xf]  ;;  %v345_v5 = vld [vmem:[%s1284_s10 + $0x10] sm:$0xf]  ;;  %s1348_s15 = scalar_lea.vmem %s1532_s1, %s994_s8  ;;  %s1406_s13 = sadd.s32 %s1108_s7, %s1273_s27 }
  0x19   : > { %v346_v6 = vld [vmem:[%s1284_s10 + $0x18] sm:$0xf]  ;;  %v352_v7 = vmul.f32 %v999_v0, %v343_v3  ;;  %v353_v8 = vmul.f32 %v999_v0, %v344_v4  ;;  %v354_v9 = vmul.f32 %v999_v0, %v345_v5  ;;  %v360_v10 = vld [vmem:[%s1284_s10 + $0x1] sm:$0xf]  ;;  %v361_v12 = vld [vmem:[%s1284_s10 + $0x9] sm:$0xf] }
  0x1a   : > { %v355_v11 = vmul.f32 %v999_v0, %v346_v6  ;;  %v362_v13 = vld [vmem:[%s1284_s10 + $0x11] sm:$0xf]  ;;  %v363_v14 = vld [vmem:[%s1284_s10 + $0x19] sm:$0xf]  ;;  %v369_v15 = vmul.f32 %v1000_v1, %v360_v10  ;;  %v370_v16 = vmul.f32 %v1000_v1, %v361_v12  ;;  %v377_v19 = vld [vmem:[%s1284_s10 + $0x2] sm:$0xf] }
  0x1b   : > { %v371_v17 = vmul.f32 %v1000_v1, %v362_v13  ;;  %v372_v18 = vmul.f32 %v1000_v1, %v363_v14  ;;  %v378_v20 = vld [vmem:[%s1284_s10 + $0xa] sm:$0xf]  ;;  %v379_v23 = vld [vmem:[%s1284_s10 + $0x12] sm:$0xf]  ;;  %v380_v24 = vld [vmem:[%s1284_s10 + $0x1a] sm:$0xf]  ;;  %v386_v25 = vmul.f32 %v1001_v2, %v377_v19 }
  0x1c   : > { %v373_v22 = vadd.f32 %v369_v15, %v352_v7  ;;  %v387_v26 = vmul.f32 %v1001_v2, %v378_v20  ;;  %v374_v27 = vadd.f32 %v370_v16, %v353_v8  ;;  %v388_v30 = vmul.f32 %v1001_v2, %v379_v23  ;;  %v1002_v31 = vld [vmem:[%s1284_s10 + $0x8] sm:$0xf]  ;;  %v1003_v32 = vld [vmem:[%s1284_s10 + $0x10] sm:$0xf]  ;;  %v1004_v36 = vld [vmem:[%s1284_s10 + $0x18] sm:$0xf] }
  0x1d   : > { %v375_v28 = vadd.f32 %v371_v17, %v354_v9  ;;  %v376_v29 = vadd.f32 %v372_v18, %v355_v11  ;;  %v389_v34 = vmul.f32 %v1001_v2, %v380_v24  ;;  %v1005_v37 = vld [vmem:[%s1284_s10 + $0x20] sm:$0xf]  ;;  %v404_v38 = vmul.f32 %v1006_v21, %v1002_v31  ;;  %v1007_v45 = vld [vmem:[%s1284_s10 + $0x9] sm:$0xf]  ;;  %v1008_v46 = vld [vmem:[%s1284_s10 + $0x11] sm:$0xf] }
  0x1e   : > { %v390_v35 = vadd.f32 %v386_v25, %v373_v22  ;;  %v405_v39 = vmul.f32 %v1006_v21, %v1003_v32  ;;  %v391_v41 = vadd.f32 %v387_v26, %v374_v27  ;;  %v406_v43 = vmul.f32 %v1006_v21, %v1004_v36  ;;  %v1009_v47 = vld [vmem:[%s1284_s10 + $0x19] sm:$0xf]  ;;  %v1010_v51 = vld [vmem:[%s1284_s10 + $0x21] sm:$0xf]  ;;  %v1012_v54 = vld [vmem:[%s1284_s10 + $0xa] sm:$0xf] }
  0x1f   : > { %v392_v42 = vadd.f32 %v388_v30, %v375_v28  ;;  %v407_v44 = vmul.f32 %v1006_v21, %v1005_v37  ;;  %v393_v49 = vadd.f32 %v389_v34, %v376_v29  ;;  %v421_v52 = vmul.f32 %v1011_v33, %v1007_v45  ;;  %v1013_v59 = vld [vmem:[%s1284_s10 + $0x12] sm:$0xf]  ;;  %v1014_v60 = vld [vmem:[%s1284_s10 + $0x1a] sm:$0xf]  ;;  %v1015_v61 = vld [vmem:[%s1284_s10 + $0x22] sm:$0xf] }
  0x20   : > { %v408_v50 = vadd.f32 %v404_v38, %v390_v35  ;;  %v422_v53 = vmul.f32 %v1011_v33, %v1008_v46  ;;  %v409_v55 = vadd.f32 %v405_v39, %v391_v41  ;;  %v423_v57 = vmul.f32 %v1011_v33, %v1009_v47  ;;  %v1017_v3 = vld [vmem:[%s1284_s10 + $0x10] sm:$0xf]  ;;  %v1018_v4 = vld [vmem:[%s1284_s10 + $0x18] sm:$0xf]  ;;  %v1019_v5 = vld [vmem:[%s1284_s10 + $0x20] sm:$0xf] }
  0x21   : > { %v410_v56 = vadd.f32 %v406_v43, %v392_v42  ;;  %v424_v58 = vmul.f32 %v1011_v33, %v1010_v51  ;;  %v411_v63 = vadd.f32 %v407_v44, %v393_v49  ;;  %v438_v1 = vmul.f32 %v1016_v40, %v1012_v54  ;;  %v1020_v10 = vld [vmem:[%s1284_s10 + $0x28] sm:$0xf]  ;;  %v1022_v11 = vld [vmem:[%s1284_s10 + $0x11] sm:$0xf]  ;;  %v1023_v12 = vld [vmem:[%s1284_s10 + $0x19] sm:$0xf] }
  0x22   : > { %v425_v0 = vadd.f32 %v421_v52, %v408_v50  ;;  %v439_v2 = vmul.f32 %v1016_v40, %v1013_v59  ;;  %v426_v6 = vadd.f32 %v422_v53, %v409_v55  ;;  %v440_v8 = vmul.f32 %v1016_v40, %v1014_v60  ;;  %v1024_v17 = vld [vmem:[%s1284_s10 + $0x21] sm:$0xf]  ;;  %v1025_v18 = vld [vmem:[%s1284_s10 + $0x29] sm:$0xf]  ;;  %v1027_v23 = vld [vmem:[%s1284_s10 + $0x12] sm:$0xf] }
  0x23   : > { %v427_v7 = vadd.f32 %v423_v57, %v410_v56  ;;  %v441_v9 = vmul.f32 %v1016_v40, %v1015_v61  ;;  %v428_v13 = vadd.f32 %v424_v58, %v411_v63  ;;  %v456_v15 = vmul.f32 %v1021_v48, %v1017_v3  ;;  %v1028_v24 = vld [vmem:[%s1284_s10 + $0x1a] sm:$0xf]  ;;  %v1031_v25 = vld [vmem:[%s1534_s3 + $0x8] ss:$0 sm:$0xff]  ;;  %v1029_v30 = vld [vmem:[%s1284_s10 + $0x22] sm:$0xf] }
  0x24   : > { %v442_v14 = vadd.f32 %v438_v1, %v425_v0  ;;  %v457_v16 = vmul.f32 %v1021_v48, %v1018_v4  ;;  %v443_v19 = vadd.f32 %v439_v2, %v426_v6  ;;  %v458_v21 = vmul.f32 %v1021_v48, %v1019_v5  ;;  %v1030_v31 = vld [vmem:[%s1284_s10 + $0x2a] sm:$0xf]  ;;  %v498_v36 = vld [vmem:[%s1348_s15] sm:$0xf]  ;;  %v1032_v38 = vld [vmem:[%s1534_s3 + $0x9] ss:$0 sm:$0xff] }
  0x25   : > { %v444_v20 = vadd.f32 %v440_v8, %v427_v7  ;;  %v459_v22 = vmul.f32 %v1021_v48, %v1020_v10  ;;  %v445_v26 = vadd.f32 %v441_v9, %v428_v13  ;;  %v473_v28 = vmul.f32 %v1026_v62, %v1022_v11  ;;  %v499_v37 = vld [vmem:[%s1348_s15 + $0x8] sm:$0xf]  ;;  %v500_v43 = vld [vmem:[%s1348_s15 + $0x10] sm:$0xf]  ;;  %v501_v44 = vld [vmem:[%s1348_s15 + $0x18] sm:$0xf] }
  0x26   : > { %v460_v27 = vadd.f32 %v456_v15, %v442_v14  ;;  %v474_v29 = vmul.f32 %v1026_v62, %v1023_v12  ;;  %v461_v32 = vadd.f32 %v457_v16, %v443_v19  ;;  %v475_v34 = vmul.f32 %v1026_v62, %v1024_v17  ;;  %v515_v49 = vld [vmem:[%s1348_s15 + $0x1] sm:$0xf]  ;;  %v516_v50 = vld [vmem:[%s1348_s15 + $0x9] sm:$0xf]  ;;  %v517_v56 = vld [vmem:[%s1348_s15 + $0x11] sm:$0xf] }
  0x27   : > { %v462_v33 = vadd.f32 %v458_v21, %v444_v20  ;;  %v476_v35 = vmul.f32 %v1026_v62, %v1025_v18  ;;  %v463_v39 = vadd.f32 %v459_v22, %v445_v26  ;;  %v490_v41 = vmul.f32 %v1031_v25, %v1027_v23  ;;  %v1033_v51 = vld [vmem:[%s1534_s3 + $0xa] ss:$0 sm:$0xff]  ;;  %v518_v57 = vld [vmem:[%s1348_s15 + $0x19] sm:$0xf]  ;;  %v532_v62 = vld [vmem:[%s1348_s15 + $0x2] sm:$0xf] }
  0x28   : > { %v477_v40 = vadd.f32 %v473_v28, %v460_v27  ;;  %v491_v42 = vmul.f32 %v1031_v25, %v1028_v24  ;;  %v478_v45 = vadd.f32 %v474_v29, %v461_v32  ;;  %v492_v47 = vmul.f32 %v1031_v25, %v1029_v30  ;;  %v533_v63 = vld [vmem:[%s1348_s15 + $0xa] sm:$0xf]  ;;  %v534_v5 = vld [vmem:[%s1348_s15 + $0x12] sm:$0xf]  ;;  %v535_v6 = vld [vmem:[%s1348_s15 + $0x1a] sm:$0xf] }
  0x29   : > { %v479_v46 = vadd.f32 %v475_v34, %v462_v33  ;;  %v493_v48 = vmul.f32 %v1031_v25, %v1030_v31  ;;  %v480_v52 = vadd.f32 %v476_v35, %v463_v39  ;;  %v507_v54 = vmul.f32 %v1032_v38, %v498_v36  ;;  %v1034_v0 = vld [vmem:[%s1534_s3 + $0xb] ss:$0 sm:$0xff]  ;;  %v1036_v12 = vld [vmem:[%s1348_s15 + $0x10] sm:$0xf]  ;;  %v1039_v13 = vld [vmem:[%s1534_s3 + $0xc] ss:$0 sm:$0xff] }
  0x2a   : > { %v494_v53 = vadd.f32 %v490_v41, %v477_v40  ;;  %v508_v55 = vmul.f32 %v1032_v38, %v499_v37  ;;  %v495_v58 = vadd.f32 %v491_v42, %v478_v45  ;;  %v509_v60 = vmul.f32 %v1032_v38, %v500_v43  ;;  %v1035_v11 = vld [vmem:[%s1348_s15 + $0x8] sm:$0xf]  ;;  %v1037_v18 = vld [vmem:[%s1348_s15 + $0x18] sm:$0xf]  ;;  %v1038_v19 = vld [vmem:[%s1348_s15 + $0x20] sm:$0xf] }
  0x2b   : > { %v496_v59 = vadd.f32 %v492_v47, %v479_v46  ;;  %v510_v61 = vmul.f32 %v1032_v38, %v501_v44  ;;  %v497_v1 = vadd.f32 %v493_v48, %v480_v52  ;;  %v524_v3 = vmul.f32 %v1033_v51, %v515_v49  ;;  %v1040_v24 = vld [vmem:[%s1348_s15 + $0x9] sm:$0xf]  ;;  %v1041_v25 = vld [vmem:[%s1348_s15 + $0x11] sm:$0xf]  ;;  %v1044_v26 = vld [vmem:[%s1534_s3 + $0xd] ss:$0 sm:$0xff] }
  0x2c   : > { %v511_v2 = vadd.f32 %v507_v54, %v494_v53  ;;  %v525_v4 = vmul.f32 %v1033_v51, %v516_v50  ;;  %v512_v7 = vadd.f32 %v508_v55, %v495_v58  ;;  %v526_v9 = vmul.f32 %v1033_v51, %v517_v56  ;;  %v1042_v31 = vld [vmem:[%s1348_s15 + $0x19] sm:$0xf]  ;;  %v1043_v32 = vld [vmem:[%s1348_s15 + $0x21] sm:$0xf]  ;;  %v1045_v37 = vld [vmem:[%s1348_s15 + $0xa] sm:$0xf] }
  0x2d   : > { %v513_v8 = vadd.f32 %v509_v60, %v496_v59  ;;  %v527_v10 = vmul.f32 %v1033_v51, %v518_v57  ;;  %v514_v14 = vadd.f32 %v510_v61, %v497_v1  ;;  %v541_v16 = vmul.f32 %v1034_v0, %v532_v62  ;;  %v1046_v38 = vld [vmem:[%s1348_s15 + $0x12] sm:$0xf]  ;;  %v1049_v39 = vld [vmem:[%s1534_s3 + $0xe] ss:$0 sm:$0xff]  ;;  %v1047_v44 = vld [vmem:[%s1348_s15 + $0x1a] sm:$0xf] }
  0x2e   : > { %v528_v15 = vadd.f32 %v524_v3, %v511_v2  ;;  %v542_v17 = vmul.f32 %v1034_v0, %v533_v63  ;;  %v529_v20 = vadd.f32 %v525_v4, %v512_v7  ;;  %v543_v22 = vmul.f32 %v1034_v0, %v534_v5  ;;  %v1048_v45 = vld [vmem:[%s1348_s15 + $0x22] sm:$0xf]  ;;  %v1054_v46 = vld [vmem:[%s1534_s3 + $0xf] ss:$0 sm:$0xff]  ;;  %s995_s25 = sshll.u32 %s1406_s13, 3  ;;  %s997_s9 = sshll.u32 %s1549_s19, 4 }
  0x2f   : > { %v530_v21 = vadd.f32 %v526_v9, %v513_v8  ;;  %v544_v23 = vmul.f32 %v1034_v0, %v535_v6  ;;  %v531_v27 = vadd.f32 %v527_v10, %v514_v14  ;;  %v559_v29 = vmul.f32 %v1039_v13, %v1035_v11  ;;  %v1050_v51 = vld [vmem:[%s1348_s15 + $0x10] sm:$0xf]  ;;  %v1051_v52 = vld [vmem:[%s1348_s15 + $0x18] sm:$0xf]  ;;  %v1052_v57 = vld [vmem:[%s1348_s15 + $0x20] sm:$0xf]  ;;  %s1433_s30 = scalar_lea.vmem %s1533_s2, %s995_s25 }
  0x30   : > { %v545_v28 = vadd.f32 %v541_v16, %v528_v15  ;;  %v560_v30 = vmul.f32 %v1039_v13, %v1036_v12  ;;  %v546_v33 = vadd.f32 %v542_v17, %v529_v20  ;;  %v561_v35 = vmul.f32 %v1039_v13, %v1037_v18  ;;  %v1053_v58 = vld [vmem:[%s1348_s15 + $0x28] sm:$0xf]  ;;  %v1055_v63 = vld [vmem:[%s1348_s15 + $0x11] sm:$0xf]  ;;  %v1056_v0 = vld [vmem:[%s1348_s15 + $0x19] sm:$0xf] }
  0x31   : > { %v547_v34 = vadd.f32 %v543_v22, %v530_v21  ;;  %v562_v36 = vmul.f32 %v1039_v13, %v1038_v19  ;;  %v548_v40 = vadd.f32 %v544_v23, %v531_v27  ;;  %v576_v42 = vmul.f32 %v1044_v26, %v1040_v24  ;;  %v1059_v1 = vld [vmem:[%s1534_s3 + $0x10] ss:$0 sm:$0xff]  ;;  %v1057_v6 = vld [vmem:[%s1348_s15 + $0x21] sm:$0xf]  ;;  %v1058_v7 = vld [vmem:[%s1348_s15 + $0x29] sm:$0xf] }
  0x32   : > { %v563_v41 = vadd.f32 %v559_v29, %v545_v28  ;;  %v577_v43 = vmul.f32 %v1044_v26, %v1041_v25  ;;  %v564_v47 = vadd.f32 %v560_v30, %v546_v33  ;;  %v578_v49 = vmul.f32 %v1044_v26, %v1042_v31  ;;  %v1060_v12 = vld [vmem:[%s1348_s15 + $0x12] sm:$0xf]  ;;  %v1061_v13 = vld [vmem:[%s1348_s15 + $0x1a] sm:$0xf]  ;;  %v1064_v14 = vld [vmem:[%s1534_s3 + $0x11] ss:$0 sm:$0xff] }
  0x33   : > { %v565_v48 = vadd.f32 %v561_v35, %v547_v34  ;;  %v579_v50 = vmul.f32 %v1044_v26, %v1043_v32  ;;  %v566_v53 = vadd.f32 %v562_v36, %v548_v40  ;;  %v593_v55 = vmul.f32 %v1049_v39, %v1045_v37  ;;  %v1062_v19 = vld [vmem:[%s1348_s15 + $0x22] sm:$0xf]  ;;  %v1063_v20 = vld [vmem:[%s1348_s15 + $0x2a] sm:$0xf]  ;;  %v1065_v27 = vld [vmem:[%s1534_s3 + $0x12] ss:$0 sm:$0xff] }
  0x34   : > { %v580_v54 = vadd.f32 %v576_v42, %v563_v41  ;;  %v594_v56 = vmul.f32 %v1049_v39, %v1046_v38  ;;  %v581_v59 = vadd.f32 %v577_v43, %v564_v47  ;;  %v595_v61 = vmul.f32 %v1049_v39, %v1047_v44  ;;  %v653_v25 = vld [vmem:[%s1433_s30] sm:$0xf]  ;;  %v654_v26 = vld [vmem:[%s1433_s30 + $0x8] sm:$0xf]  ;;  %v655_v32 = vld [vmem:[%s1433_s30 + $0x10] sm:$0xf] }
  0x35   : > { %v582_v60 = vadd.f32 %v578_v49, %v565_v48  ;;  %v596_v62 = vmul.f32 %v1049_v39, %v1048_v45  ;;  %v583_v2 = vadd.f32 %v579_v50, %v566_v53  ;;  %v611_v4 = vmul.f32 %v1054_v46, %v1050_v51  ;;  %v656_v33 = vld [vmem:[%s1433_s30 + $0x18] sm:$0xf]  ;;  %v670_v38 = vld [vmem:[%s1433_s30 + $0x1] sm:$0xf]  ;;  %v671_v39 = vld [vmem:[%s1433_s30 + $0x9] sm:$0xf] }
  0x36   : > { %v597_v3 = vadd.f32 %v593_v55, %v580_v54  ;;  %v612_v5 = vmul.f32 %v1054_v46, %v1051_v52  ;;  %v598_v8 = vadd.f32 %v594_v56, %v581_v59  ;;  %v613_v10 = vmul.f32 %v1054_v46, %v1052_v57  ;;  %v1066_v40 = vld [vmem:[%s1534_s3 + $0x13] ss:$0 sm:$0xff]  ;;  %v687_v51 = vld [vmem:[%s1433_s30 + $0x2] sm:$0xf]  ;;  %v688_v52 = vld [vmem:[%s1433_s30 + $0xa] sm:$0xf] }
  0x37   : > { %v599_v9 = vadd.f32 %v595_v61, %v582_v60  ;;  %v614_v11 = vmul.f32 %v1054_v46, %v1053_v58  ;;  %v600_v15 = vadd.f32 %v596_v62, %v583_v2  ;;  %v628_v17 = vmul.f32 %v1059_v1, %v1055_v63  ;;  %v672_v45 = vld [vmem:[%s1433_s30 + $0x11] sm:$0xf]  ;;  %v673_v46 = vld [vmem:[%s1433_s30 + $0x19] sm:$0xf]  ;;  %v1072_v2 = vld [vmem:[%s1534_s3 + $0x15] ss:$0 sm:$0xff] }
  0x38   : > { %v615_v16 = vadd.f32 %v611_v4, %v597_v3  ;;  %v629_v18 = vmul.f32 %v1059_v1, %v1056_v0  ;;  %v616_v21 = vadd.f32 %v612_v5, %v598_v8  ;;  %v630_v23 = vmul.f32 %v1059_v1, %v1057_v6  ;;  %v1067_v53 = vld [vmem:[%s1534_s3 + $0x14] ss:$0 sm:$0xff]  ;;  %v690_v59 = vld [vmem:[%s1433_s30 + $0x1a] sm:$0xf]  ;;  %v1068_v0 = vld [vmem:[%s1433_s30 + $0x8] sm:$0xf] }
  0x39   : > { %v617_v22 = vadd.f32 %v613_v10, %v599_v9  ;;  %v631_v24 = vmul.f32 %v1059_v1, %v1058_v7  ;;  %v618_v28 = vadd.f32 %v614_v11, %v600_v15  ;;  %v645_v30 = vmul.f32 %v1064_v14, %v1060_v12  ;;  %v689_v58 = vld [vmem:[%s1433_s30 + $0x12] sm:$0xf]  ;;  %v1070_v7 = vld [vmem:[%s1433_s30 + $0x18] sm:$0xf]  ;;  %v1071_v8 = vld [vmem:[%s1433_s30 + $0x20] sm:$0xf] }
  0x3a   : > { %v632_v29 = vadd.f32 %v628_v17, %v615_v16  ;;  %v646_v31 = vmul.f32 %v1064_v14, %v1061_v13  ;;  %v633_v34 = vadd.f32 %v629_v18, %v616_v21  ;;  %v647_v36 = vmul.f32 %v1064_v14, %v1062_v19  ;;  %v1069_v1 = vld [vmem:[%s1433_s30 + $0x10] sm:$0xf]  ;;  %v1073_v13 = vld [vmem:[%s1433_s30 + $0x9] sm:$0xf]  ;;  %v1077_v15 = vld [vmem:[%s1534_s3 + $0x16] ss:$0 sm:$0xff] }
  0x3b   : > { %v634_v35 = vadd.f32 %v630_v23, %v617_v22  ;;  %v648_v37 = vmul.f32 %v1064_v14, %v1063_v20  ;;  %v635_v41 = vadd.f32 %v631_v24, %v618_v28  ;;  %v662_v43 = vmul.f32 %v1065_v27, %v653_v25  ;;  %v1074_v14 = vld [vmem:[%s1433_s30 + $0x11] sm:$0xf]  ;;  %v1075_v20 = vld [vmem:[%s1433_s30 + $0x19] sm:$0xf]  ;;  %v1076_v21 = vld [vmem:[%s1433_s30 + $0x21] sm:$0xf] }
  0x3c   : > { %v649_v42 = vadd.f32 %v645_v30, %v632_v29  ;;  %v663_v44 = vmul.f32 %v1065_v27, %v654_v26  ;;  %v650_v47 = vadd.f32 %v646_v31, %v633_v34  ;;  %v664_v49 = vmul.f32 %v1065_v27, %v655_v32  ;;  %v1078_v26 = vld [vmem:[%s1433_s30 + $0xa] sm:$0xf]  ;;  %v1082_v28 = vld [vmem:[%s1534_s3 + $0x17] ss:$0 sm:$0xff]  ;;  %v1081_v34 = vld [vmem:[%s1433_s30 + $0x22] sm:$0xf] }
  0x3d   : > { %v651_v48 = vadd.f32 %v647_v36, %v634_v35  ;;  %v665_v50 = vmul.f32 %v1065_v27, %v656_v33  ;;  %v652_v54 = vadd.f32 %v648_v37, %v635_v41  ;;  %v679_v56 = vmul.f32 %v1066_v40, %v670_v38  ;;  %v1079_v27 = vld [vmem:[%s1433_s30 + $0x12] sm:$0xf]  ;;  %v1080_v33 = vld [vmem:[%s1433_s30 + $0x1a] sm:$0xf]  ;;  %v1087_v41 = vld [vmem:[%s1534_s3 + $0x18] ss:$0 sm:$0xff] }
  0x3e   : > { %v666_v55 = vadd.f32 %v662_v43, %v649_v42  ;;  %v680_v57 = vmul.f32 %v1066_v40, %v671_v39  ;;  %v667_v60 = vadd.f32 %v663_v44, %v650_v47  ;;  %v681_v62 = vmul.f32 %v1066_v40, %v672_v45  ;;  %v1083_v39 = vld [vmem:[%s1433_s30 + $0x10] sm:$0xf]  ;;  %v1086_v47 = vld [vmem:[%s1433_s30 + $0x28] sm:$0xf] }
  0x3f   : > { %v668_v61 = vadd.f32 %v664_v49, %v651_v48  ;;  %v682_v63 = vmul.f32 %v1066_v40, %v673_v46  ;;  %v669_v3 = vadd.f32 %v665_v50, %v652_v54  ;;  %v696_v5 = vmul.f32 %v1067_v53, %v687_v51  ;;  %v1084_v40 = vld [vmem:[%s1433_s30 + $0x18] sm:$0xf]  ;;  %v1085_v46 = vld [vmem:[%s1433_s30 + $0x20] sm:$0xf] }
  0x40   : > { %v683_v4 = vadd.f32 %v679_v56, %v666_v55  ;;  %v697_v6 = vmul.f32 %v1067_v53, %v688_v52  ;;  %v684_v9 = vadd.f32 %v680_v57, %v667_v60  ;;  %v698_v11 = vmul.f32 %v1067_v53, %v689_v58  ;;  %v1088_v52 = vld [vmem:[%s1433_s30 + $0x11] sm:$0xf]  ;;  %v1092_v54 = vld [vmem:[%s1534_s3 + $0x19] ss:$0 sm:$0xff]  ;;  %v1091_v60 = vld [vmem:[%s1433_s30 + $0x29] sm:$0xf] }
  0x41   : > { %v685_v10 = vadd.f32 %v681_v62, %v668_v61  ;;  %v699_v12 = vmul.f32 %v1067_v53, %v690_v59  ;;  %v686_v16 = vadd.f32 %v682_v63, %v669_v3  ;;  %v714_v18 = vmul.f32 %v1072_v2, %v1068_v0  ;;  %v1089_v53 = vld [vmem:[%s1433_s30 + $0x19] sm:$0xf]  ;;  %v1090_v59 = vld [vmem:[%s1433_s30 + $0x21] sm:$0xf] }
  0x42   : > { %v700_v17 = vadd.f32 %v696_v5, %v683_v4  ;;  %v715_v19 = vmul.f32 %v1072_v2, %v1069_v1  ;;  %v701_v22 = vadd.f32 %v697_v6, %v684_v9  ;;  %v716_v24 = vmul.f32 %v1072_v2, %v1070_v7  ;;  %v1093_v1 = vld [vmem:[%s1433_s30 + $0x12] sm:$0xf]  ;;  %v1097_v3 = vld [vmem:[%s1534_s3 + $0x1a] ss:$0 sm:$0xff]  ;;  %v1096_v9 = vld [vmem:[%s1433_s30 + $0x2a] sm:$0xf] }
  0x43   : > { %v702_v23 = vadd.f32 %v698_v11, %v685_v10  ;;  %v717_v25 = vmul.f32 %v1072_v2, %v1071_v8  ;;  %v703_v29 = vadd.f32 %v699_v12, %v686_v16  ;;  %v731_v31 = vmul.f32 %v1077_v15, %v1073_v13  ;;  %v1094_v2 = vld [vmem:[%s1433_s30 + $0x1a] sm:$0xf]  ;;  %v1095_v8 = vld [vmem:[%s1433_s30 + $0x22] sm:$0xf]  ;;  %s996_s30 = sshll.u32 %s1555_s18, 2 }
  0x44   : > { %v718_v30 = vadd.f32 %v714_v18, %v700_v17  ;;  %v732_v32 = vmul.f32 %v1077_v15, %v1074_v14  ;;  %v719_v35 = vadd.f32 %v715_v19, %v701_v22  ;;  %v733_v37 = vmul.f32 %v1077_v15, %v1075_v20  ;;  %v1098_v22 = vld [vmem:[%s1535_s4] ss:$0 sm:$0xff]  ;;  %s340_s12 = sadd.s32 %s997_s9, %s996_s30 }
  0x45   : > { %v720_v36 = vadd.f32 %v716_v24, %v702_v23  ;;  %v734_v38 = vmul.f32 %v1077_v15, %v1076_v21  ;;  %v721_v42 = vadd.f32 %v717_v25, %v703_v29  ;;  %v748_v44 = vmul.f32 %v1082_v28, %v1078_v26  ;;  %s998_s13 = sshll.u32 %s340_s12, 2 }
  0x46   : > { %v735_v43 = vadd.f32 %v731_v31, %v718_v30  ;;  %v749_v45 = vmul.f32 %v1082_v28, %v1079_v27  ;;  %v736_v48 = vadd.f32 %v732_v32, %v719_v35  ;;  %v750_v50 = vmul.f32 %v1082_v28, %v1080_v33  ;;  %s342_s16 = scalar_lea.vmem %s1536_s5, %s998_s13 }
  0x47   : > { %v737_v49 = vadd.f32 %v733_v37, %v720_v36  ;;  %v751_v51 = vmul.f32 %v1082_v28, %v1081_v34  ;;  %v738_v55 = vadd.f32 %v734_v38, %v721_v42  ;;  %v766_v57 = vmul.f32 %v1087_v41, %v1083_v39 }
  0x48   : > { %v752_v56 = vadd.f32 %v748_v44, %v735_v43  ;;  %v767_v58 = vmul.f32 %v1087_v41, %v1084_v40  ;;  %v753_v61 = vadd.f32 %v749_v45, %v736_v48  ;;  %v768_v63 = vmul.f32 %v1087_v41, %v1085_v46 }
  0x49   : > { %v754_v62 = vadd.f32 %v750_v50, %v737_v49  ;;  %v769_v0 = vmul.f32 %v1087_v41, %v1086_v47  ;;  %v755_v4 = vadd.f32 %v751_v51, %v738_v55  ;;  %v783_v6 = vmul.f32 %v1092_v54, %v1088_v52 }
  0x4a   : > { %v770_v5 = vadd.f32 %v766_v57, %v752_v56  ;;  %v784_v7 = vmul.f32 %v1092_v54, %v1089_v53  ;;  %v771_v10 = vadd.f32 %v767_v58, %v753_v61  ;;  %v785_v12 = vmul.f32 %v1092_v54, %v1090_v59 }
  0x4b   : > { %v772_v11 = vadd.f32 %v768_v63, %v754_v62  ;;  %v786_v13 = vmul.f32 %v1092_v54, %v1091_v60  ;;  %v773_v14 = vadd.f32 %v769_v0, %v755_v4  ;;  %v800_v16 = vmul.f32 %v1097_v3, %v1093_v1 }
  0x4c   : > { %v787_v15 = vadd.f32 %v783_v6, %v770_v5  ;;  %v801_v17 = vmul.f32 %v1097_v3, %v1094_v2  ;;  %v788_v18 = vadd.f32 %v784_v7, %v771_v10  ;;  %v802_v20 = vmul.f32 %v1097_v3, %v1095_v8 }
  0x4d   : > { %v789_v19 = vadd.f32 %v785_v12, %v772_v11  ;;  %v803_v21 = vmul.f32 %v1097_v3, %v1096_v9  ;;  %v790_v23 = vadd.f32 %v786_v13, %v773_v14 }
  0x4e   : > { %v804_v24 = vadd.f32 %v800_v16, %v787_v15  ;;  %v805_v25 = vadd.f32 %v801_v17, %v788_v18 }
  0x4f   : > { %v806_v26 = vadd.f32 %v802_v20, %v789_v19  ;;  %v807_v27 = vadd.f32 %v803_v21, %v790_v23 }
  0x50   : > { %v815_v28 = vadd.f32 %v1098_v22, %v804_v24  ;;  %v816_v29 = vadd.f32 %v1098_v22, %v805_v25 }
  0x51   : > { %v817_v30 = vadd.f32 %v1098_v22, %v806_v26  ;;  %v818_v31 = vadd.f32 %v1098_v22, %v807_v27 }
  0x52   : > { %v1099_v32 = vmul.f32 -1.442695, %v815_v28  ;;  %v1100_v33 = vmul.f32 -1.442695, %v816_v29 }
  0x53   : > { %v1101_v34 = vmul.f32 -1.442695, %v817_v30  ;;  %v1102_v35 = vmul.f32 -1.442695, %v818_v31 }
  0x54   : > { %1149 = vpow2.f32 %v1099_v32 }
  0x55   : > { %1151 = vpow2.f32 %v1100_v33 }
  0x56   : > { %1153 = vpow2.f32 %v1101_v34 }
  0x57   : > { %1155 = vpow2.f32 %v1102_v35 }
  0x5e   : > { %v1150_v36 = vpop.eup %1149 }
  0x5f   : > { %v1152_v37 = vpop.eup %1151  ;;  %v831_v38 = vadd.f32 1.0, %v1150_v36 }
  0x60   : > { %v1154_v39 = vpop.eup %1153  ;;  %v832_v40 = vadd.f32 1.0, %v1152_v37 }
  0x61   : > { %v1156_v41 = vpop.eup %1155  ;;  %v833_v42 = vadd.f32 1.0, %v1154_v39  ;;  %1157 = vrcp.f32 %v831_v38 }
  0x62   : > { %v834_v43 = vadd.f32 1.0, %v1156_v41  ;;  %1159 = vrcp.f32 %v832_v40 }
  0x63   : > { %1161 = vrcp.f32 %v833_v42 }
  0x64   : > { %1163 = vrcp.f32 %v834_v43 }
  0x6b   : > { %v1158_v44 = vpop.eup %1157 }
  0x6c   : > { %v1160_v45 = vpop.eup %1159  ;;  %v843_v46 = vmul.f32 %v1158_v44, %v815_v28 }
  0x6d   : > { %v1162_v47 = vpop.eup %1161  ;;  %v844_v48 = vmul.f32 %v1160_v45, %v816_v29 }
  0x6e   : > { %v1164_v49 = vpop.eup %1163  ;;  %v845_v50 = vmul.f32 %v1162_v47, %v817_v30  ;;  %847 = vst [vmem:[%s342_s16] sm:$0xf] %v843_v46 }
  0x6f   : > { %v846_v51 = vmul.f32 %v1164_v49, %v818_v31  ;;  %848 = vst [vmem:[%s342_s16 + $0x4] sm:$0xf] %v844_v48 }
  0x70   : > { %849 = vst [vmem:[%s342_s16 + $0x8] sm:$0xf] %v845_v50 }
  0x71   : > { %850 = vst [vmem:[%s342_s16 + $0xc] sm:$0xf] %v846_v51 }
  0x72 PF: > { %s15_s22 = sadd.s32 1, %s1203_s22   ;;  %s1538_s18 = smov %s1195_s20 }
  0x73   : > { %p12_p10 = scmp.ge.s32.totalorder %s15_s22, 10   ;;  %s1539_s19 = smov %s1199_s21 }
  0x74   : > { %s1540_s20 = smov %s1543_s23  ;;  %s1541_s21 = smov %s1547_s24 }
  0x75   :  { %14 = sbr.rel (!%p12_p10) target bundleno = 3 (0x3), region = 82 }

// kernel: ss3d_forward.7
= control target key start
LH: loop header
LB: loop body
LE: loop exit
PB: predicated region body
PF: predicated region fallthrough
CT: control target
= control target key end

     0   :  { %s1299_s0 = inlined_call_operand.vmem [shape: f32[128,128], index: 0, kind: input, shape index: {}]   ;;  %s1300_s1 = inlined_call_operand.vmem [shape: f32[128,128], index: 1, kind: input, shape index: {}]   ;;  %s1301_s2 = inlined_call_operand.vmem [shape: f32[1,128], index: 2, kind: input, shape index: {}]   ;;  %s1302_s3 = inlined_call_operand.vmem [shape: f32[1,128], index: 3, kind: input, shape index: {}]   ;;  %s1303_s4 = inlined_call_operand.vmem [shape: bf16[128,128], index: 4, kind: input, shape index: {}]   ;;  %s1304_s5 = inlined_call_operand.hbm [shape: f32[128,128], index: 5, kind: output, shape index: {}]  }
   0x1   :  { %v22_v0 = vld [vmem:[%s1299_s0] sm:$0xff]  ;;  %v23_v2 = vld [vmem:[%s1299_s0 + $0x8] sm:$0xff]  ;;  %v893_v4 = vld [vmem:[%s1299_s0 + $0x10] sm:$0xff] }
   0x2   :  { %v30_v1 = vld [vmem:[%s1299_s0 + $0x40] sm:$0xff]  ;;  %38 = vadd.xlane.f32.xlu0 %v22_v0  ;;  %v31_v3 = vld [vmem:[%s1299_s0 + $0x48] sm:$0xff]  ;;  %v25_v5 = vld [vmem:[%s1299_s0 + $0x18] sm:$0xff] }
   0x3   :  { %54 = vadd.xlane.f32.xlu1 %v30_v1  ;;  %v901_v6 = vld [vmem:[%s1299_s0 + $0x50] sm:$0xff]  ;;  %v906_v7 = vld [vmem:[%s1299_s0 + $0x58] sm:$0xff] }
   0x6   :  { %40 = vadd.xlane.f32.xlu0 %v23_v2 }
   0x7   :  { %56 = vadd.xlane.f32.xlu1 %v31_v3 }
   0xa   :  { %42 = vadd.xlane.f32.xlu0 %v893_v4 }
   0xb   :  { %44 = vadd.xlane.f32.xlu1 %v25_v5 }
   0xc   :  { %10 = vsyncpa [#allocation3], 0  ;;  %v914_v8 = vld [vmem:[%s1299_s0 + $0x20] sm:$0xff]  ;;  %v919_v9 = vld [vmem:[%s1299_s0 + $0x28] sm:$0xff]  ;;  %v86_v16 = vlaneseq }
   0xd   :  { %v926_v10 = vld [vmem:[%s1299_s0 + $0x60] sm:$0xff]  ;;  %v931_v11 = vld [vmem:[%s1299_s0 + $0x68] sm:$0xff]  ;;  %v938_v12 = vld [vmem:[%s1299_s0 + $0x30] sm:$0xff] }
   0xe   :  { %58 = vadd.xlane.f32.xlu0 %v901_v6  ;;  %v943_v13 = vld [vmem:[%s1299_s0 + $0x38] sm:$0xff]  ;;  %v950_v14 = vld [vmem:[%s1299_s0 + $0x70] sm:$0xff]  ;;  %v959_v17 = vand.u32 127, %v86_v16 }
   0xf   :  { %60 = vadd.xlane.f32.xlu1 %v906_v7  ;;  %v955_v15 = vld [vmem:[%s1299_s0 + $0x78] sm:$0xff] }
  0x10   :  { %vm88_vm0 = vcmp.lt.s32.totalorder %v959_v17, 32  ;;  %v720_v17 = vld [vmem:[%s1303_s4 + $0x18] sm:$0xff]  }
  0x12   :  { %46 = vadd.xlane.f32.xlu0 %v914_v8 }
  0x13   :  { %48 = vadd.xlane.f32.xlu1 %v919_v9 }
  0x16   :  { %62 = vadd.xlane.f32.xlu0 %v926_v10 }
  0x17   :  { %64 = vadd.xlane.f32.xlu1 %v931_v11 }
  0x1a   :  { %50 = vadd.xlane.f32.xlu0 %v938_v12 }
  0x1b   :  { %52 = vadd.xlane.f32.xlu1 %v943_v13 }
  0x1e   :  { %66 = vadd.xlane.f32.xlu0 %v950_v14 }
  0x1f   :  { %68 = vadd.xlane.f32.xlu1 %v955_v15 }
  0x8f   :  { %v39_v18 = vpop.xlane.xlu0 %38 }
  0x90   :  { %v55_v19 = vpop.xlane.xlu1 %54  ;;  %v70_v20 = vmul.f32 0.03125, %v39_v18 }
  0x91   :  { %v78_v21 = vmul.f32 0.03125, %v55_v19 }
  0x92   :  { %v89_v22 = vsub.f32 %v22_v0, %v70_v20 }
  0x93   :  { %v97_v23 = vsub.f32 %v30_v1, %v78_v21  ;;  %v41_v24 = vpop.xlane.xlu0 %40 }
  0x94   :  { %v57_v25 = vpop.xlane.xlu1 %56  ;;  %v71_v26 = vmul.f32 0.03125, %v41_v24  ;;  %v964_v28 = vsel %vm88_vm0, %v89_v22, 0.0 }
  0x95   :  { %v79_v27 = vmul.f32 0.03125, %v57_v25  ;;  %v968_v29 = vsel %vm88_vm0, %v97_v23, 0.0  ;;  %v121_v30 = vmul.f32 %v964_v28, %v964_v28 }
  0x96   :  { %v90_v31 = vsub.f32 %v23_v2, %v71_v26  ;;  %v129_v35 = vmul.f32 %v968_v29, %v968_v29 }
  0x97   :  { %v98_v32 = vsub.f32 %v31_v3, %v79_v27  ;;  %137 = vadd.xlane.f32.xlu0 %v121_v30  ;;  %v43_v33 = vpop.xlane.xlu0 %42 }
  0x98   :  { %v45_v34 = vpop.xlane.xlu1 %44  ;;  %v72_v36 = vmul.f32 0.03125, %v43_v33  ;;  %v976_v38 = vsel %vm88_vm0, %v90_v31, 0.0 }
  0x99   :  { %v73_v37 = vmul.f32 0.03125, %v45_v34  ;;  %v980_v39 = vsel %vm88_vm0, %v98_v32, 0.0  ;;  %v122_v40 = vmul.f32 %v976_v38, %v976_v38 }
  0x9a   :  { %v91_v41 = vsub.f32 %v893_v4, %v72_v36  ;;  %v130_v45 = vmul.f32 %v980_v39, %v980_v39 }
  0x9b   :  { %v92_v42 = vsub.f32 %v25_v5, %v73_v37  ;;  %153 = vadd.xlane.f32.xlu0 %v129_v35  ;;  %139 = vadd.xlane.f32.xlu1 %v122_v40  ;;  %v59_v43 = vpop.xlane.xlu0 %58 }
  0x9c   :  { %v61_v44 = vpop.xlane.xlu1 %60  ;;  %v80_v46 = vmul.f32 0.03125, %v59_v43  ;;  %v989_v48 = vsel %vm88_vm0, %v91_v41, 0.0  ;;  %v722_v43 = vld [vmem:[%s1303_s4 + $0x28] sm:$0xff]  }
  0x9d   :  { %v81_v47 = vmul.f32 0.03125, %v61_v44  ;;  %v993_v49 = vsel %vm88_vm0, %v92_v42, 0.0  ;;  %v123_v50 = vmul.f32 %v989_v48, %v989_v48  ;;  %v721_v42 = vld [vmem:[%s1303_s4 + $0x20] sm:$0xff]   ;;  %v723_v44 = vld [vmem:[%s1303_s4 + $0x30] sm:$0xff]  }
  0x9e   :  { %v99_v51 = vsub.f32 %v901_v6, %v80_v46  ;;  %v124_v55 = vmul.f32 %v993_v49, %v993_v49  ;;  %v1096_v46 = vld [vmem:[%s1300_s1] sm:$0xff] }
  0x9f   :  { %v100_v52 = vsub.f32 %v906_v7, %v81_v47  ;;  %155 = vadd.xlane.f32.xlu1 %v130_v45  ;;  %141 = vadd.xlane.f32.xlu0 %v123_v50  ;;  %v47_v53 = vpop.xlane.xlu0 %46  ;;  %v724_v45 = vld [vmem:[%s1303_s4 + $0x38] sm:$0xff]   ;;  %v1101_v47 = vld [vmem:[%s1300_s1 + $0x8] sm:$0xff]  ;;  %v626_v50 = vmul.f32 -1.442695, %v1096_v46 }
  0xa0   :  { %v49_v54 = vpop.xlane.xlu1 %48  ;;  %v74_v56 = vmul.f32 0.03125, %v47_v53  ;;  %v1003_v58 = vsel %vm88_vm0, %v99_v51, 0.0  ;;  %v1107_v51 = vld [vmem:[%s1300_s1 + $0x40] sm:$0xff]  ;;  %v627_v53 = vmul.f32 -1.442695, %v1101_v47 }
  0xa1   :  { %v75_v57 = vmul.f32 0.03125, %v49_v54  ;;  %v1007_v59 = vsel %vm88_vm0, %v100_v52, 0.0  ;;  %v131_v60 = vmul.f32 %v1003_v58, %v1003_v58  ;;  %v1112_v52 = vld [vmem:[%s1300_s1 + $0x48] sm:$0xff]  ;;  %v634_v54 = vmul.f32 -1.442695, %v1107_v51 }
  0xa2   :  { %v93_v61 = vsub.f32 %v914_v8, %v74_v56  ;;  %v132_v1 = vmul.f32 %v1007_v59, %v1007_v59  ;;  %725 = vpow2.f32 %v626_v50  ;;  %v1120_v56 = vld [vmem:[%s1300_s1 + $0x10] sm:$0xff] }
  0xa3   :  { %v94_v62 = vsub.f32 %v919_v9, %v75_v57  ;;  %143 = vadd.xlane.f32.xlu1 %v124_v55  ;;  %157 = vadd.xlane.f32.xlu0 %v131_v60  ;;  %v63_v63 = vpop.xlane.xlu0 %62  ;;  %v635_v55 = vmul.f32 -1.442695, %v1112_v52  ;;  %727 = vpow2.f32 %v627_v53  ;;  %v1125_v57 = vld [vmem:[%s1300_s1 + $0x18] sm:$0xff]  ;;  %v628_v60 = vmul.f32 -1.442695, %v1120_v56 }
  0xa4   :  { %v65_v0 = vpop.xlane.xlu1 %64  ;;  %v82_v2 = vmul.f32 0.03125, %v63_v63  ;;  %v1017_v4 = vsel %vm88_vm0, %v93_v61, 0.0  ;;  %729 = vpow2.f32 %v634_v54  ;;  %v1131_v61 = vld [vmem:[%s1300_s1 + $0x50] sm:$0xff] }
  0xa5   :  { %v83_v3 = vmul.f32 0.03125, %v65_v0  ;;  %v1021_v5 = vsel %vm88_vm0, %v94_v62, 0.0  ;;  %v125_v6 = vmul.f32 %v1017_v4, %v1017_v4  ;;  %731 = vpow2.f32 %v635_v55  ;;  %v1138_v0 = vld [vmem:[%s1300_s1 + $0x58] sm:$0xff] }
  0xa6   :  { %v101_v7 = vsub.f32 %v926_v10, %v82_v2  ;;  %v126_v18 = vmul.f32 %v1021_v5, %v1021_v5  ;;  %v629_v62 = vmul.f32 -1.442695, %v1125_v57  ;;  %733 = vpow2.f32 %v628_v60 }
  0xa7   :  { %v102_v8 = vsub.f32 %v931_v11, %v83_v3  ;;  %159 = vadd.xlane.f32.xlu1 %v132_v1  ;;  %145 = vadd.xlane.f32.xlu0 %v125_v6  ;;  %v51_v9 = vpop.xlane.xlu0 %50  ;;  %v717_v11 = vld [vmem:[%s1303_s4] sm:$0xff]   ;;  %v636_v63 = vmul.f32 -1.442695, %v1131_v61  ;;  %v637_v2 = vmul.f32 -1.442695, %v1138_v0 }
  0xa8   :  { %v53_v16 = vpop.xlane.xlu1 %52  ;;  %v76_v19 = vmul.f32 0.03125, %v51_v9  ;;  %v1031_v21 = vsel %vm88_vm0, %v101_v7, 0.0  ;;  %666 = vmatprep.subr.bf16.mxu0 %v717_v11  ;;  %698 = vmatprep.subr.bf16.mxu1 %v717_v11  ;;  %735 = vpow2.f32 %v629_v62  ;;  %v1144_v3 = vld [vmem:[%s1300_s1 + $0x20] sm:$0xff] }
  0xa9   :  { %v77_v20 = vmul.f32 0.03125, %v53_v16  ;;  %v1035_v22 = vsel %vm88_vm0, %v102_v8, 0.0  ;;  %v133_v10 = vmul.f32 %v1031_v21, %v1031_v21  ;;  %667 = vmatpush3.bf16.msra.mxu0 %v717_v11  ;;  %706 = vmatpush3.bf16.msra.mxu1 %v717_v11  ;;  %737 = vpow2.f32 %v636_v63 }
  0xaa   :  { %v95_v23 = vsub.f32 %v938_v12, %v76_v19  ;;  %v134_v27 = vmul.f32 %v1035_v22, %v1035_v22  ;;  %v630_v16 = vmul.f32 -1.442695, %v1144_v3  ;;  %739 = vpow2.f32 %v637_v2  ;;  %v1150_v19 = vld [vmem:[%s1300_s1 + $0x28] sm:$0xff]  ;;  %v1188_v2 = vld [vmem:[%s1300_s1 + $0x78] sm:$0xff] }
  0xab   :  { %v96_v24 = vsub.f32 %v943_v13, %v77_v20  ;;  %147 = vadd.xlane.f32.xlu1 %v126_v18  ;;  %161 = vadd.xlane.f32.xlu0 %v133_v10  ;;  %v67_v25 = vpop.xlane.xlu0 %66  ;;  %v718_v13 = vld [vmem:[%s1303_s4 + $0x8] sm:$0xff]   ;;  %v1155_v10 = vld [vmem:[%s1300_s1 + $0x60] sm:$0xff] }
  0xac   :  { %v69_v26 = vpop.xlane.xlu1 %68  ;;  %v84_v30 = vmul.f32 0.03125, %v67_v25  ;;  %v1048_v32 = vsel %vm88_vm0, %v95_v23, 0.0  ;;  %668 = vmatprep.subr.bf16.mxu0 %v718_v13  ;;  %699 = vmatprep.subr.bf16.mxu1 %v718_v13  ;;  %v726_v1 = vpop.eup %725  ;;  %v1161_v25 = vld [vmem:[%s1300_s1 + $0x68] sm:$0xff] }
  0xad   :  { %v85_v31 = vmul.f32 0.03125, %v69_v26  ;;  %v1052_v33 = vsel %vm88_vm0, %v96_v24, 0.0  ;;  %v127_v12 = vmul.f32 %v1048_v32, %v1048_v32  ;;  %669 = vmatpush3.bf16.msra.mxu0 %v718_v13  ;;  %707 = vmatpush3.bf16.msra.mxu1 %v718_v13  ;;  %v728_v6 = vpop.eup %727  ;;  %v343_v8 = vadd.f32 1.0, %v726_v1 }
  0xae   :  { %v103_v34 = vsub.f32 %v950_v14, %v84_v30  ;;  %v128_v36 = vmul.f32 %v1052_v33, %v1052_v33  ;;  %v730_v7 = vpop.eup %729  ;;  %v344_v18 = vadd.f32 1.0, %v728_v6  ;;  %v631_v24 = vmul.f32 -1.442695, %v1150_v19 }
  0xaf   :  { %v104_v35 = vsub.f32 %v955_v15, %v85_v31  ;;  %163 = vadd.xlane.f32.xlu1 %v134_v27  ;;  %149 = vadd.xlane.f32.xlu0 %v127_v12  ;;  %v719_v15 = vld [vmem:[%s1303_s4 + $0x10] sm:$0xff]   ;;  %v732_v9 = vpop.eup %731  ;;  %v351_v20 = vadd.f32 1.0, %v730_v7  ;;  %741 = vrcp.f32 %v343_v8  ;;  %v638_v26 = vmul.f32 -1.442695, %v1155_v10 }
  0xb0   :  { %v1065_v37 = vsel %vm88_vm0, %v103_v34, 0.0  ;;  %670 = vmatprep.subr.bf16.mxu0 %v719_v15  ;;  %700 = vmatprep.subr.bf16.mxu1 %v719_v15  ;;  %v734_v11 = vpop.eup %733  ;;  %v352_v23 = vadd.f32 1.0, %v732_v9  ;;  %743 = vpow2.f32 %v630_v16  ;;  %v1167_v27 = vld [vmem:[%s1300_s1 + $0x30] sm:$0xff]  ;;  %v639_v13 = vmul.f32 -1.442695, %v1161_v25 }
  0xb1   :  { %v1069_v40 = vsel %vm88_vm0, %v104_v35, 0.0  ;;  %v135_v14 = vmul.f32 %v1065_v37, %v1065_v37  ;;  %671 = vmatpush3.bf16.msra.mxu0 %v719_v15  ;;  %708 = vmatpush3.bf16.msra.mxu1 %v719_v15  ;;  %745 = vrcp.f32 %v344_v18  ;;  %v345_v31 = vadd.f32 1.0, %v734_v11 }
  0xb2   :  { %v136_v41 = vmul.f32 %v1069_v40, %v1069_v40  ;;  %672 = vmatprep.subr.bf16.mxu0 %v720_v17  ;;  %701 = vmatprep.subr.bf16.mxu1 %v720_v17  ;;  %v736_v30 = vpop.eup %735  ;;  %747 = vrcp.f32 %v351_v20  ;;  %v632_v34 = vmul.f32 -1.442695, %v1167_v27 }
  0xb3   :  { %151 = vadd.xlane.f32.xlu1 %v128_v36  ;;  %165 = vadd.xlane.f32.xlu0 %v135_v14  ;;  %v738_v12 = vpop.eup %737  ;;  %749 = vrcp.f32 %v352_v23  ;;  %v346_v35 = vadd.f32 1.0, %v736_v30  ;;  %v1174_v36 = vld [vmem:[%s1300_s1 + $0x38] sm:$0xff]  ;;  %v641_v23 = vmul.f32 -1.442695, %v1188_v2 }
  0xb4   :  { %751 = vpow2.f32 %v631_v24  ;;  %v353_v15 = vadd.f32 1.0, %v738_v12 }
  0xb5   :  { %673 = vmatpush3.bf16.msra.mxu0 %v720_v17  ;;  %709 = vmatpush3.bf16.msra.mxu1 %v720_v17  ;;  %753 = vpow2.f32 %v638_v26  ;;  %v740_v17 = vpop.eup %739 }
  0xb6   :  { %674 = vmatprep.subr.bf16.mxu0 %v721_v42  ;;  %702 = vmatprep.subr.bf16.mxu1 %v721_v42  ;;  %755 = vrcp.f32 %v345_v31  ;;  %v354_v60 = vadd.f32 1.0, %v740_v17 }
  0xb7   :  { %167 = vadd.xlane.f32.xlu1 %v136_v41  ;;  %v1179_v41 = vld [vmem:[%s1300_s1 + $0x70] sm:$0xff]  ;;  %757 = vpow2.f32 %v639_v13 }
  0xb8   :  { %759 = vpow2.f32 %v632_v34  ;;  %v640_v50 = vmul.f32 -1.442695, %v1179_v41 }
  0xb9   :  { %675 = vmatpush3.bf16.msra.mxu0 %v721_v42  ;;  %710 = vmatpush3.bf16.msra.mxu1 %v721_v42  ;;  %761 = vrcp.f32 %v346_v35 }
  0xba   :  { %676 = vmatprep.subr.bf16.mxu0 %v722_v43  ;;  %703 = vmatprep.subr.bf16.mxu1 %v722_v43  ;;  %763 = vrcp.f32 %v353_v15 }
  0xbd   :  { %677 = vmatpush3.bf16.msra.mxu0 %v722_v43  ;;  %711 = vmatpush3.bf16.msra.mxu1 %v722_v43  ;;  %v633_v43 = vmul.f32 -1.442695, %v1174_v36 }
  0xbe   :  { %678 = vmatprep.subr.bf16.mxu0 %v723_v44  ;;  %704 = vmatprep.subr.bf16.mxu1 %v723_v44 }
  0xc1   :  { %679 = vmatpush3.bf16.msra.mxu0 %v723_v44  ;;  %712 = vmatpush3.bf16.msra.mxu1 %v723_v44  ;;  %v1182_v44 = vpop.eup %741 }
  0xc2   :  { %680 = vmatprep.subr.bf16.mxu0 %v724_v45  ;;  %705 = vmatprep.subr.bf16.mxu1 %v724_v45  ;;  %v744_v53 = vpop.eup %743 }
  0xc3   :  { %v746_v62 = vpop.eup %745  ;;  %v347_v16 = vadd.f32 1.0, %v744_v53 }
  0xc4   :  { %v748_v6 = vpop.eup %747 }
  0xc5   :  { %681 = vmatpush3.bf16.msra.mxu0 %v724_v45  ;;  %713 = vmatpush3.bf16.msra.mxu1 %v724_v45  ;;  %v750_v7 = vpop.eup %749 }
  0xc6   :  { %v752_v18 = vpop.eup %751 }
  0xc7   :  { %v754_v24 = vpop.eup %753  ;;  %v348_v35 = vadd.f32 1.0, %v752_v18 }
  0xc8   :  { %v756_v31 = vpop.eup %755 }
  0xc9   :  { %v758_v12 = vpop.eup %757 }
 0x124   :  { %v138_v14 = vpop.xlane.xlu0 %137 }
 0x125   :  { %v169_v42 = vmul.f32 0.03125, %v138_v14  ;;  %v760_v14 = vpop.eup %759 }
 0x127   :  { %v185_v45 = vadd.f32 1e-05, %v169_v42  ;;  %v355_v42 = vadd.f32 1.0, %v754_v24 }
 0x128   :  { %v140_v54 = vpop.xlane.xlu1 %139  ;;  %v154_v55 = vpop.xlane.xlu0 %153 }
 0x129   :  { %765 = vrsqrt.f32 %v185_v45  ;;  %v170_v63 = vmul.f32 0.03125, %v140_v54  ;;  %v177_v1 = vmul.f32 0.03125, %v154_v55  ;;  %v1194_v54 = vld [vmem:[%s1301_s2] ss:$0 sm:$0xff]  ;;  %s845_s2 = smov [#allocation2]  }
 0x12a   :  { %767 = vpow2.f32 %v633_v43  ;;  %v762_v43 = vpop.eup %761 }
 0x12b   :  { %v186_v8 = vadd.f32 1e-05, %v170_v63  ;;  %v193_v9 = vadd.f32 1e-05, %v177_v1  ;;  %769 = vpow2.f32 %v640_v50  ;;  %v764_v53 = vpop.eup %763  ;;  %v356_v1 = vadd.f32 1.0, %v758_v12 }
 0x12c   :  { %v156_v20 = vpop.xlane.xlu1 %155  ;;  %v142_v11 = vpop.xlane.xlu0 %141  ;;  %771 = vrcp.f32 %v354_v60 }
 0x12d   :  { %773 = vrsqrt.f32 %v186_v8  ;;  %v178_v26 = vmul.f32 0.03125, %v156_v20  ;;  %v171_v30 = vmul.f32 0.03125, %v142_v11  ;;  %v349_v20 = vadd.f32 1.0, %v760_v14 }
 0x12e   :  { %775 = vrsqrt.f32 %v193_v9 }
 0x12f   :  { %v194_v13 = vadd.f32 1e-05, %v178_v26  ;;  %v187_v34 = vadd.f32 1e-05, %v171_v30  ;;  %777 = vrcp.f32 %v347_v16  ;;  %v1200_v26 = vld [vmem:[%s1302_s3] ss:$0 sm:$0xff]  ;;  %v391_v30 = vmul.f32 %v1182_v44, %v1096_v46 }
 0x130   :  { %v144_v15 = vpop.xlane.xlu1 %143  ;;  %v158_v17 = vpop.xlane.xlu0 %157  ;;  %779 = vpow2.f32 %v641_v23  ;;  %v1211_v44 = vmul.f32 %v756_v31, %v1120_v56  ;;  %s613_s3 = sshll.u32 %s845_s2, 4  ;;  %s614_s3 = int_to_ptr.vmem [resolvable:$true] %s613_s3 }
 0x131   :  { %781 = vrsqrt.f32 %v194_v13  ;;  %v172_v45 = vmul.f32 0.03125, %v144_v15  ;;  %v179_v50 = vmul.f32 0.03125, %v158_v17  ;;  %v400_v17 = vmul.f32 %v750_v7, %v1112_v52  ;;  %s821_s22 = scalar_lea.vmem %s614_s3, 2048  ;;  %p826_p1 = scmp.lt.s32.totalorder %s614_s3, %s614_s3 }
 0x132   :  { %783 = vrsqrt.f32 %v187_v34  ;;  %v399_v34 = vmul.f32 %v748_v6, %v1107_v51  ;;  %p822_p0 = scmp.ne.s32.totalorder %s614_s3, %s821_s22  ;;  %p827_p2 = scmp.lt.s32.totalorder %s821_s22, %s821_s22 }
 0x133   :  { %v766_v55 = vpop.eup %765  ;;  %v188_v60 = vadd.f32 1e-05, %v172_v45  ;;  %v195_v63 = vadd.f32 1e-05, %v179_v50  ;;  %785 = vrcp.f32 %v348_v35 }
 0x134   :  { %v768_v8 = vpop.eup %767  ;;  %v160_v9 = vpop.xlane.xlu1 %159  ;;  %v217_v18 = vmul.f32 %v766_v55, %v964_v28  ;;  %787 = vrcp.f32 %v355_v42  ;;  %v392_v28 = vmul.f32 %v746_v62, %v1101_v47  ;;  %p828_p3 = por %p827_p2, %p826_p1 }
 0x135   :  { %v146_v16 = vpop.xlane.xlu0 %145  ;;  %v770_v11 = vpop.eup %769  ;;  %789 = vrsqrt.f32 %v188_v60  ;;  %v180_v23 = vmul.f32 0.03125, %v160_v9  ;;  %v1218_v60 = vmul.f32 %v762_v43, %v1125_v57  ;;  %v350_v9 = vadd.f32 1.0, %v768_v8 }
 0x136   :  { %v173_v24 = vmul.f32 0.03125, %v146_v16  ;;  %v772_v12 = vpop.eup %771  ;;  %791 = vrsqrt.f32 %v195_v63  ;;  %v240_v13 = vmul.f32 %v1194_v54, %v217_v18  ;;  %p829_p4 = pnand %p828_p3, %p822_p0 }
 0x137   :  { %v774_v35 = vpop.eup %773  ;;  %v196_v14 = vadd.f32 1e-05, %v180_v23  ;;  %793 = vrcp.f32 %v356_v1 }
 0x138   :  { %v189_v15 = vadd.f32 1e-05, %v173_v24  ;;  %v776_v42 = vpop.eup %775  ;;  %v148_v45 = vpop.xlane.xlu1 %147  ;;  %v218_v55 = vmul.f32 %v774_v35, %v976_v38  ;;  %v263_v46 = vadd.f32 %v1200_v26, %v240_v13  ;;  %795 = vrcp.f32 %v349_v20 }
 0x139   :  { %v162_v50 = vpop.xlane.xlu0 %161  ;;  %v1213_v47 = vpop.eup %777  ;;  %797 = vrsqrt.f32 %v196_v14  ;;  %v174_v51 = vmul.f32 0.03125, %v148_v45  ;;  %v225_v6 = vmul.f32 %v776_v42, %v968_v29  ;;  %v1221_v38 = vmul.f32 %v764_v53, %v1131_v61 }
 0x13a   :  { %v181_v62 = vmul.f32 0.03125, %v162_v50  ;;  %v780_v52 = vpop.eup %779  ;;  %799 = vrsqrt.f32 %v189_v15  ;;  %v241_v7 = vmul.f32 %v1194_v54, %v218_v55  ;;  %v407_v23 = vmul.f32 %v391_v30, %v263_v46 }
 0x13b   :  { %v782_v56 = vpop.eup %781  ;;  %v190_v31 = vadd.f32 1e-05, %v174_v51  ;;  %v248_v1 = vmul.f32 %v1194_v54, %v225_v6  ;;  %v357_v13 = vadd.f32 1.0, %v770_v11  ;;  %v402_v11 = vmul.f32 %v772_v12, %v1138_v0 }
 0x13c   :  { %v197_v63 = vadd.f32 1e-05, %v181_v62  ;;  %v784_v16 = vpop.eup %783  ;;  %v164_v18 = vpop.xlane.xlu1 %163  ;;  %v264_v29 = vadd.f32 %v1200_v26, %v241_v7  ;;  %v226_v24 = vmul.f32 %v782_v56, %v980_v39 }
 0x13d   :  { %v150_v20 = vpop.xlane.xlu0 %149  ;;  %v1226_v57 = vpop.eup %785  ;;  %801 = vrsqrt.f32 %v190_v31  ;;  %v182_v61 = vmul.f32 0.03125, %v164_v18  ;;  %v271_v53 = vadd.f32 %v1200_v26, %v248_v1  ;;  %v219_v15 = vmul.f32 %v784_v16, %v989_v48 }
 0x13e   :  { %v175_v43 = vmul.f32 0.03125, %v150_v20  ;;  %v1229_v35 = vpop.eup %787  ;;  %803 = vrsqrt.f32 %v197_v63  ;;  %v408_v8 = vmul.f32 %v392_v28, %v264_v29  ;;  %v249_v14 = vmul.f32 %v1194_v54, %v226_v24 }
 0x13f   :  { %v790_v42 = vpop.eup %789  ;;  %v198_v30 = vadd.f32 1e-05, %v182_v61  ;;  %v415_v39 = vmul.f32 %v399_v34, %v271_v53  ;;  %v242_v28 = vmul.f32 %v1194_v54, %v219_v15  ;;  %v358_v61 = vadd.f32 1.0, %v780_v52 }
 0x140   :  { %v191_v45 = vadd.f32 1e-05, %v175_v43  ;;  %v792_v50 = vpop.eup %791  ;;  %v152_v55 = vpop.xlane.xlu1 %151  ;;  %v423_v51 = vpack.c.bf16 %v408_v8, %v407_v23  ;;  %v272_v62 = vadd.f32 %v1200_v26, %v249_v14  ;;  %v220_v6 = vmul.f32 %v790_v42, %v993_v49 }
 0x141   :  { %v166_v46 = vpop.xlane.xlu0 %165  ;;  %v794_v7 = vpop.eup %793  ;;  %805 = vrsqrt.f32 %v198_v30  ;;  %v176_v56 = vmul.f32 0.03125, %v152_v55  ;;  %v227_v31 = vmul.f32 %v792_v50, %v1003_v58  ;;  %v265_v34 = vadd.f32 %v1200_v26, %v242_v28 }
 0x142   :  { %v183_v48 = vmul.f32 0.03125, %v166_v46  ;;  %v1238_v63 = vpop.eup %795  ;;  %807 = vrsqrt.f32 %v191_v45  ;;  %682 = vmatprep.mubr.bf16.mxu0 %v423_v51  ;;  %v416_v0 = vmul.f32 %v400_v17, %v272_v62  ;;  %v243_v12 = vmul.f32 %v1194_v54, %v220_v6 }
 0x143   :  { %v798_v1 = vpop.eup %797  ;;  %v192_v16 = vadd.f32 1e-05, %v176_v56  ;;  %v250_v18 = vmul.f32 %v1194_v54, %v227_v31  ;;  %809 = vrcp.f32 %v350_v9  ;;  %v409_v43 = vmul.f32 %v1211_v44, %v265_v34 }
 0x144   :  { %v199_v49 = vadd.f32 1e-05, %v183_v48  ;;  %v800_v20 = vpop.eup %799  ;;  %v168_v29 = vpop.xlane.xlu1 %167  ;;  %v427_v23 = vpack.c.bf16 %v416_v0, %v415_v39  ;;  %v266_v58 = vadd.f32 %v1200_v26, %v243_v12  ;;  %v228_v24 = vmul.f32 %v798_v1, %v1007_v59 }
 0x145   :  { %811 = vrsqrt.f32 %v192_v16  ;;  %v184_v17 = vmul.f32 0.03125, %v168_v29  ;;  %v221_v53 = vmul.f32 %v800_v20, %v1017_v4  ;;  %v273_v14 = vadd.f32 %v1200_v26, %v250_v18 }
 0x146   :  { %813 = vrsqrt.f32 %v199_v49  ;;  %690 = vmatprep.mubr.bf16.mxu1 %v427_v23  ;;  %v410_v8 = vmul.f32 %v1218_v60, %v266_v58  ;;  %v251_v9 = vmul.f32 %v1194_v54, %v228_v24  ;;  %v395_v4 = vmul.f32 %v1213_v47, %v1144_v3 }
 0x147   :  { %v802_v15 = vpop.eup %801  ;;  %v200_v42 = vadd.f32 1e-05, %v184_v17  ;;  %v244_v30 = vmul.f32 %v1194_v54, %v221_v53  ;;  %815 = vrcp.f32 %v357_v13  ;;  %v396_v60 = vmul.f32 %v1226_v57, %v1150_v19 }
 0x148   :  { %v804_v59 = vpop.eup %803  ;;  %v424_v52 = vpack.c.bf16 %v410_v8, %v409_v43  ;;  %v274_v45 = vadd.f32 %v1200_v26, %v251_v9  ;;  %v222_v44 = vmul.f32 %v802_v15, %v1021_v5  ;;  %817 = vrcp.f32 %v358_v61 }
 0x149   :  { %819 = vrsqrt.f32 %v200_v42  ;;  %v229_v39 = vmul.f32 %v804_v59, %v1031_v21  ;;  %v417_v50 = vmul.f32 %v1221_v38, %v273_v14  ;;  %v267_v46 = vadd.f32 %v1200_v26, %v244_v30 }
 0x14a   :  { %683 = vmatmul.mubr.bf16.vlgmr.msra.gmra.mrb[0].mxu0 %v424_v52  ;;  %v418_v13 = vmul.f32 %v402_v11, %v274_v45  ;;  %v245_v55 = vmul.f32 %v1194_v54, %v222_v44  ;;  %v403_v21 = vmul.f32 %v1229_v35, %v1155_v10  ;;  %v404_v38 = vmul.f32 %v794_v7, %v1161_v25 }
 0x14b   :  { %v806_v51 = vpop.eup %805  ;;  %v252_v5 = vmul.f32 %v1194_v54, %v229_v39  ;;  %v411_v11 = vmul.f32 %v395_v4, %v267_v46 }
 0x14c   :  { %v808_v62 = vpop.eup %807  ;;  %v428_v6 = vpack.c.bf16 %v418_v13, %v417_v50  ;;  %v268_v3 = vadd.f32 %v1200_v26, %v245_v55  ;;  %v230_v47 = vmul.f32 %v806_v51, %v1035_v22 }
 0x14d   :  { %v810_v19 = vpop.eup %809  ;;  %v223_v57 = vmul.f32 %v808_v62, %v1048_v32  ;;  %v275_v48 = vadd.f32 %v1200_v26, %v252_v5  ;;  %v397_v32 = vmul.f32 %v1238_v63, %v1167_v27 }
 0x14e   :  { %691 = vmatmul.mubr.bf16.vlgmr.msra.gmra.mrb[0].mxu1 %v428_v6  ;;  %v412_v28 = vmul.f32 %v396_v60, %v268_v3  ;;  %v253_v56 = vmul.f32 %v1194_v54, %v230_v47  ;;  %v398_v7 = vmul.f32 %v810_v19, %v1174_v36 }
 0x14f   :  { %v812_v31 = vpop.eup %811  ;;  %v246_v0 = vmul.f32 %v1194_v54, %v223_v57  ;;  %v419_v16 = vmul.f32 %v403_v21, %v275_v48 }
 0x150   :  { %v814_v12 = vpop.eup %813  ;;  %v425_v22 = vpack.c.bf16 %v412_v28, %v411_v11  ;;  %v276_v34 = vadd.f32 %v1200_v26, %v253_v56  ;;  %v224_v10 = vmul.f32 %v812_v31, %v1052_v33 }
 0x151   :  { %v816_v35 = vpop.eup %815  ;;  %v231_v25 = vmul.f32 %v814_v12, %v1065_v37  ;;  %v269_v20 = vadd.f32 %v1200_v26, %v246_v0 }
 0x152   :  { %v818_v1 = vpop.eup %817  ;;  %686 = vmatprep.mubr.bf16.mxu0 %v425_v22  ;;  %v420_v49 = vmul.f32 %v404_v38, %v276_v34  ;;  %v247_v18 = vmul.f32 %v1194_v54, %v224_v10  ;;  %v405_v27 = vmul.f32 %v816_v35, %v1179_v41 }
 0x153   :  { %v820_v29 = vpop.eup %819  ;;  %v254_v23 = vmul.f32 %v1194_v54, %v231_v25  ;;  %v406_v36 = vmul.f32 %v818_v1, %v1188_v2  ;;  %v413_v63 = vmul.f32 %v397_v32, %v269_v20 }
 0x154   :  { %v232_v33 = vmul.f32 %v820_v29, %v1069_v40  ;;  %v429_v58 = vpack.c.bf16 %v420_v49, %v419_v16  ;;  %v270_v37 = vadd.f32 %v1200_v26, %v247_v18 }
 0x155   :  { %v277_v17 = vadd.f32 %v1200_v26, %v254_v23 }
 0x156   :  { %694 = vmatprep.mubr.bf16.mxu1 %v429_v58  ;;  %v414_v24 = vmul.f32 %v398_v7, %v270_v37  ;;  %v255_v61 = vmul.f32 %v1194_v54, %v232_v33 }
 0x157   :  { %v421_v8 = vmul.f32 %v405_v27, %v277_v17 }
 0x158   :  { %v426_v43 = vpack.c.bf16 %v414_v24, %v413_v63  ;;  %v278_v53 = vadd.f32 %v1200_v26, %v255_v61 }
 0x15a   :  { %687 = vmatmul.mubr.bf16.gmra.mrb[4].mxu0 %v426_v43  ;;  %v422_v40 = vmul.f32 %v406_v36, %v278_v53 }
 0x15c   :  { %v430_v9 = vpack.c.bf16 %v422_v40, %v421_v8 }
 0x15e   :  { %695 = vmatmul.mubr.bf16.gmra.mrb[4].mxu1 %v430_v9 }
 0x21d   :  { %v684_v14 = vpop.f32.mrb[0].mxu0 }
 0x21e   :  { %594 = vst [vmem:[#allocation2 + $0x10] sm:$0xff] %v684_v14  ;;  %v529_v41 = vpop.f32.mrb[1].mxu0 }
 0x21f   :  { %592 = vst [vmem:[#allocation2] sm:$0xff] %v529_v41  ;;  %v685_v2 = vpop.f32.mrb[2].mxu0 }
 0x220   :  { %595 = vst [vmem:[#allocation2 + $0x18] sm:$0xff] %v685_v2  ;;  %v532_v15 = vpop.f32.mrb[3].mxu0 }
 0x221   :  { %593 = vst [vmem:[#allocation2 + $0x8] sm:$0xff] %v532_v15  ;;  %v692_v42 = vpop.f32.mrb[0].mxu1 }
 0x222   :  { %602 = vst [vmem:[#allocation2 + $0x50] sm:$0xff] %v692_v42  ;;  %v561_v54 = vpop.f32.mrb[1].mxu1 }
 0x223   :  { %600 = vst [vmem:[#allocation2 + $0x40] sm:$0xff] %v561_v54  ;;  %v693_v30 = vpop.f32.mrb[2].mxu1 }
 0x224   :  { %603 = vst [vmem:[#allocation2 + $0x58] sm:$0xff] %v693_v30  ;;  %v564_v26 = vpop.f32.mrb[3].mxu1 }
 0x225   :  { %601 = vst [vmem:[#allocation2 + $0x48] sm:$0xff] %v564_v26 }
 0x22d   :  { %v688_v59 = vpop.f32.mrb[4].mxu0 }
 0x22e   :  { %598 = vst [vmem:[#allocation2 + $0x30] sm:$0xff] %v688_v59  ;;  %v545_v52 = vpop.f32.mrb[5].mxu0 }
 0x22f   :  { %596 = vst [vmem:[#allocation2 + $0x20] sm:$0xff] %v545_v52  ;;  %v689_v45 = vpop.f32.mrb[6].mxu0 }
 0x230   :  { %599 = vst [vmem:[#allocation2 + $0x38] sm:$0xff] %v689_v45  ;;  %v548_v44 = vpop.f32.mrb[7].mxu0 }
 0x231   :  { %597 = vst [vmem:[#allocation2 + $0x28] sm:$0xff] %v548_v44  ;;  %v696_v4 = vpop.f32.mrb[4].mxu1 }
 0x232   :  { %606 = vst [vmem:[#allocation2 + $0x70] sm:$0xff] %v696_v4  ;;  %v577_v60 = vpop.f32.mrb[5].mxu1 }
 0x233   :  { %604 = vst [vmem:[#allocation2 + $0x60] sm:$0xff] %v577_v60  ;;  %v697_v39 = vpop.f32.mrb[6].mxu1 }
 0x234   :  { %607 = vst [vmem:[#allocation2 + $0x78] sm:$0xff] %v697_v39  ;;  %v580_v50 = vpop.f32.mrb[7].mxu1 }
 0x235   :  { %605 = vst [vmem:[#allocation2 + $0x68] sm:$0xff] %v580_v50 }
 0x236   :  { %832 = shalt.err (!%p829_p4)
}
 0x237   :  { %s833_s0 = scalar_lea.hbm %s1304_s5, 2048 }
 0x238   :  { %p834_p5 = scmp.ne.s32.totalorder %s1304_s5, %s833_s0  ;;  %p837_p6 = scmp.lt.u32.totalorder %s833_s0, %s1304_s5 }
 0x23a   :  { %p839_p7 = pnand %p837_p6, %p834_p5 }
 0x23c   :  { %842 = shalt.err (!%p839_p7)
}
 0x23d   :  { %s846_s29 = smov 128   ;;  %s847_s30 = smov 8  }
 0x23e   :  { %619 = dma.vmem_to_hbm [thread:$0]  %s614_s3, 2048, %s1304_s5, [#allocation3], %s846_s29, %s846_s29, %s847_s30  }
 0x23f   :  { %843 = dma.done.wait [#allocation3], 2048  }
 0x240   :  { %844 = vsyncadd [#allocation3], 4294965248 }
 0x241   :  { %623 = vsyncpa [#allocation3], 1 }

// kernel: ss3d_forward.6
= control target key start
LH: loop header
LB: loop body
LE: loop exit
PB: predicated region body
PF: predicated region fallthrough
CT: control target
= control target key end

     0   :  { %s5814_s21 = smov 0   ;;  %s5816_s22 = smov 0   ;;  %s7272_s0 = inlined_call_operand.vmem [shape: f32[4,2,64,128], index: 0, kind: input, shape index: {}]   ;;  %s7273_s1 = inlined_call_operand.vmem [shape: f32[64,64], index: 1, kind: input, shape index: {}]   ;;  %s7274_s2 = inlined_call_operand.vmem [shape: bf16[4,128,160], index: 2, kind: input, shape index: {}]   ;;  %s7275_s3 = inlined_call_operand.vmem [shape: f32[4,1,128], index: 3, kind: input, shape index: {}]   ;;  %s7276_s4 = inlined_call_operand.vmem [shape: f32[4,16,128], index: 4, kind: input, shape index: {}]   ;;  %s7277_s5 = inlined_call_operand.vmem [shape: f32[4,1,128], index: 5, kind: input, shape index: {}]   ;;  %s7278_s6 = inlined_call_operand.vmem [shape: f32[4,2,64,128], index: 6, kind: output, shape index: {}]  }
   0x1   :  { %7306 = sst [smem:[#allocation26_spill]] %s7274_s2  ;;  %s5818_s23 = smov 0  }
   0x2   :  { %7307 = sst [smem:[#allocation27_spill]] %s7275_s3  ;;  %s5820_s24 = smov 0  }
   0x3   :  { %s5822_s25 = smov 0   ;;  %s5824_s26 = smov 0  }
   0x4   :  { %s5826_s27 = smov 0  }
   0x5 LB: > { %7308 = sst [smem:[#allocation7_spill]] %s5754_s26  ;;  %s28_s28 = sadd.s32 1, %s5746_s24  ;;  %s5758_s27 = sphi %s5826_s27, %s16_s27   ;;  %s5754_s26 = sphi %s5824_s26, %s7372_s26   ;;  %s5750_s25 = sphi %s5822_s25, %s7376_s25   ;;  %s5746_s24 = sphi %s5820_s24, %s7375_s24   ;;  %s5742_s23 = sphi %s5818_s23, %s7369_s23   ;;  %s5738_s22 = sphi %s5816_s22, %s7374_s22   ;;  %s5734_s21 = sphi %s5814_s21, %s7373_s21  }
   0x6   : > { %p29_p0 = scmp.ge.s32.totalorder %s28_s28, 2  ;;  %s31_s29 = sadd.s32 1, %s5750_s25 }
   0x7   : > { %p4951_p1 = scmp.ge.s32.totalorder %s5758_s27, 1  ;;  %p302_p2 = scmp.lt.s32.totalorder %s5758_s27, 17 }
   0x8   : > { %s7378_s28 = smov (%p29_p0, %s28_s28), 0  ;;  %s7380_s29 = smov (!%p29_p0, %s31_s29), %s5750_s25 }
   0x9   : > { %7309 = sst [smem:[#allocation8_spill]] %s7378_s28  ;;  %p303_p3 = pnand %p4951_p1, %p302_p2 }
   0xa   : > { %p33_p4 = scmp.ge.s32.totalorder %s7380_s29, 2  ;;  %s35_s30 = sadd.s32 1, %s5754_s26 }
   0xb   : > { %306 = sbr.rel (%p303_p3) target bundleno = 1197 (0x4ad), region = 44 }
   0xc   : > { %s7382_s29 = smov (%p33_p4, %s7380_s29), 0  ;;  %s7384_s30 = smov (!%p33_p4, %s35_s30), %s5754_s26 }
   0xd   : > { %7310 = sst [smem:[#allocation9_spill]] %s7382_s29  ;;  %p37_p5 = scmp.ge.s32.totalorder %s7384_s30, 4 }
   0xf   : > { %s7386_s30 = smov (%p37_p5, %s7384_s30), 0 }
  0x10   : > { %7311 = sst [smem:[#allocation10_spill]] %s7386_s30 }
  0x12   : > { %s370_s7 = ssub.s32 1, %s5734_s21  ;;  %p374_p6 = scmp.lt.s32.totalorder %s5742_s23, 3 }
  0x13   : > { %p371_p7 = scmp.lt.s32.totalorder %s5734_s21, %s370_s7  ;;  %p376_p8 = scmp.lt.s32.totalorder %s5738_s22, 1 }
  0x14   : > { %s7388_s23 = smov (!%p374_p6, %s5742_s23), 3  ;;  %s7312_s3 = sld [smem:[#allocation27_spill]] }
  0x15   : > { %s372_s8 = scalar_select %p371_p7, %s5734_s21, %s370_s7 }
  0x16   : > { %s7390_s22 = smov (!%p376_p8, %s5738_s22), 1  ;;  %s4954_s10 = sshll.u32 %s7388_s23, 4 }
  0x17   : > { %s4952_s9 = sshll.u32 %s372_s8, 3  ;;  %s4953_s11 = sshll.u32 %s7390_s22, 3 }
  0x18   : > { %p378_p9 = scmp.lt.s32.totalorder %s4952_s9, 7  ;;  %s5075_s12 = sshll.u32 %s7388_s23, 7 }
  0x19   : > { %s7313_s2 = sld [smem:[#allocation26_spill]]  ;;  %s5879_s7 = scalar_lea.vmem %s7276_s4, %s4954_s10 }
  0x1a   : > { %s5869_s15 = scalar_lea.vmem %s7312_s3, %s7388_s23  ;;  %s7392_s9 = smov (!%p378_p9, %s4952_s9), 7 }
  0x1b   : > { %s381_s8 = sadd.s32 %s4953_s11, %s7392_s9  ;;  %s405_s29 = scalar_lea.vmem %s7277_s5, %s7388_s23 }
  0x1c   : > { %s383_s28 = sadd.s32 %s4954_s10, %s381_s8  ;;  %s4960_s13 = sadd.s32 4294967295, %s5734_s21 }
  0x1d   : > { %s4955_s14 = sshll.u32 %s383_s28, 3  ;;  %p407_p10 = scmp.gt.s32.totalorder %s4960_s13, 0 }
  0x1e   : > { %s5889_s16 = scalar_lea.vmem %s7272_s0, %s4955_s14  ;;  %p4965_p12 = scmp.ne.s32.totalorder %s5734_s21, 0 }
  0x1f   : > { %s5874_s18 = scalar_lea.vmem %s7313_s2, %s5075_s12  ;;  %s7394_s13 = smov (!%p407_p10, %s4960_s13), 0  ;;  %v5772_v0 = vmov (!%p4965_p12), 0.0  }
  0x20   : > { %s4961_s12 = sshll.u32 %s7394_s13, 3  ;;  %431 = vst [vmem:[#allocation6] sm:$0xff] (!%p4965_p12), %v5772_v0  ;;  %432 = vst [vmem:[#allocation6 + $0x8] sm:$0xff] (!%p4965_p12), %v5772_v0 }
  0x21   : > { %p414_p11 = scmp.lt.s32.totalorder %s4961_s12, 7  ;;  %430 = sbr.rel (%p4965_p12) target bundleno = 40 (0x28), region = 48 }
  0x23   : > { %s7396_s12 = smov (!%p414_p11, %s4961_s12), 7 }
  0x24   : > { %s417_s17 = sadd.s32 %s4953_s11, %s7396_s12 }
  0x25   : > { %s419_s19 = sadd.s32 %s4954_s10, %s417_s17 }
  0x26   : > { %s4964_s9 = sshll.u32 %s419_s19, 3 }
  0x27   : > { %s5894_s30 = scalar_lea.vmem %s7278_s6, %s4964_s9 }
  0x28 PF: > { %v433_v1 = vld [vmem:[%s5889_s16] sm:$0xff]  ;;  %v434_v2 = vld [vmem:[%s5889_s16 + $0x8] sm:$0xff]  ;;  %v435_v3 = vld [vmem:[%s5889_s16 + $0x10] sm:$0xff]  ;;  %p4966_p13 = scmp.lt.s32.totalorder %s5734_s21, 1 }
  0x29   : > { %441 = vst [vmem:[#allocation5] sm:$0xff] %v433_v1  ;;  %442 = vst [vmem:[#allocation5 + $0x8] sm:$0xff] %v434_v2  ;;  %v436_v4 = vld [vmem:[%s5889_s16 + $0x18] sm:$0xff]  ;;  %v437_v5 = vld [vmem:[%s5889_s16 + $0x20] sm:$0xff]  ;;  %vm469_vm0 = vcmask (!%p4966_p13), 523264  }
  0x2a   : > { %443 = vst [vmem:[#allocation5 + $0x10] sm:$0xff] %v435_v3  ;;  %v438_v6 = vld [vmem:[%s5889_s16 + $0x28] sm:$0xff]  ;;  %444 = vst [vmem:[#allocation5 + $0x18] sm:$0xff] %v436_v4  ;;  %v439_v7 = vld [vmem:[%s5889_s16 + $0x30] sm:$0xff]  ;;  %452 = sbr.rel (%p4966_p13) target bundleno = 281 (0x119), region = 52 }
  0x2b   : > { %445 = vst [vmem:[#allocation5 + $0x20] sm:$0xff] %v437_v5  ;;  %446 = vst [vmem:[#allocation5 + $0x28] sm:$0xff] %v438_v6  ;;  %v440_v8 = vld [vmem:[%s5889_s16 + $0x38] sm:$0xff]  ;;  %v461_v9 = vld [vmem:[%s5889_s16] sm:$0xff] (!%p4966_p13) }
  0x2c   : > { %447 = vst [vmem:[#allocation5 + $0x30] sm:$0xff] %v439_v7  ;;  %448 = vst [vmem:[#allocation5 + $0x38] sm:$0xff] %v440_v8  ;;  %v462_v10 = vld [vmem:[%s5889_s16 + $0x8] sm:$0xff] (!%p4966_p13)  ;;  %v463_v11 = vld [vmem:[%s5889_s16 + $0x10] sm:$0xff] (!%p4966_p13) }
  0x2d   : > { %v5216_v12 = vpack.c.bf16 (!%p4966_p13), %v462_v10, %v461_v9  ;;  %v464_v13 = vld [vmem:[%s5889_s16 + $0x18] sm:$0xff] (!%p4966_p13)  ;;  %v465_v15 = vld [vmem:[%s5889_s16 + $0x20] sm:$0xff] (!%p4966_p13)  ;;  %v466_v16 = vld [vmem:[%s5889_s16 + $0x28] sm:$0xff] (!%p4966_p13) }
  0x2e   : > { %v5220_v14 = vpack.c.bf16 (!%p4966_p13), %v464_v13, %v463_v11  ;;  %v453_v17 = vld [vmem:[%s7273_s1] sm:$0xff] (!%p4966_p13)  ;;  %v5224_v19 = vpack.c.bf16 (!%p4966_p13), %v466_v16, %v465_v15  ;;  %v467_v20 = vld [vmem:[%s5889_s16 + $0x30] sm:$0xff] (!%p4966_p13)  ;;  %v468_v21 = vld [vmem:[%s5889_s16 + $0x38] sm:$0xff] (!%p4966_p13) }
  0x2f   : > { %5217 = vmatprep.subr.bf16.mxu0 (!%p4966_p13), %v5216_v12  ;;  %5256 = vmatprep.subr.bf16.mxu1 (!%p4966_p13), %v5216_v12  ;;  %v457_v18 = vld [vmem:[%s7273_s1 + $0x20] sm:$0xff] (!%p4966_p13)  ;;  %v5228_v22 = vpack.c.bf16 (!%p4966_p13), %v468_v21, %v467_v20  ;;  %v454_v23 = vld [vmem:[%s7273_s1 + $0x8] sm:$0xff] (!%p4966_p13)  ;;  %v455_v25 = vld [vmem:[%s7273_s1 + $0x10] sm:$0xff] (!%p4966_p13) }
  0x30   : > { %5219 = vmatpush3.bf16.msra.mxu0 (!%p4966_p13), %v5216_v12  ;;  %5260 = vmatpush3.bf16.msra.mxu1 (!%p4966_p13), %v5216_v12  ;;  %v458_v24 = vld [vmem:[%s7273_s1 + $0x28] sm:$0xff] (!%p4966_p13)  ;;  %v459_v26 = vld [vmem:[%s7273_s1 + $0x30] sm:$0xff] (!%p4966_p13)  ;;  %v456_v27 = vld [vmem:[%s7273_s1 + $0x18] sm:$0xff] (!%p4966_p13) }
  0x31   : > { %5221 = vmatprep.subr.bf16.mxu0 %v5220_v14  ;;  %5257 = vmatprep.subr.bf16.mxu1 %v5220_v14  ;;  %v460_v28 = vld [vmem:[%s7273_s1 + $0x38] sm:$0xff] }
  0x32   : > { %5148 = vmatprep.mubr.msk.f32.mxu0 %vm469_vm0, %v453_v17  ;;  %5154 = vmatprep.mubr.msk.f32.mxu1 %vm469_vm0, %v457_v18 }
  0x34   : > { %5223 = vmatpush3.bf16.msra.mxu0 %v5220_v14  ;;  %5261 = vmatpush3.bf16.msra.mxu1 %v5220_v14 }
  0x35   : > { %5225 = vmatprep.subr.bf16.mxu0 %v5224_v19  ;;  %5258 = vmatprep.subr.bf16.mxu1 %v5224_v19 }
  0x38   : > { %5227 = vmatpush3.bf16.msra.mxu0 %v5224_v19  ;;  %5262 = vmatpush3.bf16.msra.mxu1 %v5224_v19 }
  0x39   : > { %5229 = vmatprep.subr.bf16.mxu0 %v5228_v22  ;;  %5259 = vmatprep.subr.bf16.mxu1 %v5228_v22 }
  0x3c   : > { %5231 = vmatpush3.bf16.msra.mxu0 %v5228_v22  ;;  %5263 = vmatpush3.bf16.msra.mxu1 %v5228_v22 }
  0x3f   : > { %5149 = vmatmul.mubr.msk.f32.vlgmr.msra.gmra.mrb[0].mxu0 %vm469_vm0, %v454_v23  ;;  %5155 = vmatmul.mubr.msk.f32.vlgmr.msra.gmra.mrb[0].mxu1 %vm469_vm0, %v458_v24 }
  0x40   : > { %5151 = vmatprep.mubr.msk.f32.mxu0 %vm469_vm0, %v455_v25  ;;  %5157 = vmatprep.mubr.msk.f32.mxu1 %vm469_vm0, %v459_v26 }
  0x43   : > { %5152 = vmatmul.mubr.msk.f32.gmra.mrb[2].mxu0 %vm469_vm0, %v456_v27  ;;  %5158 = vmatmul.mubr.msk.f32.gmra.mrb[2].mxu1 %vm469_vm0, %v460_v28 }
 0x112   : > { %v5150_v29 = vpop.f32.mrb[0].mxu0  ;;  %v5156_v30 = vpop.f32.mrb[0].mxu1 }
 0x113   : > { %600 = vst [vmem:[#allocation5 + $0x8] sm:$0xff] %v5150_v29  ;;  %604 = vst [vmem:[#allocation5 + $0x28] sm:$0xff] %v5156_v30  ;;  %v560_v31 = vpop.f32.mrb[1].mxu0  ;;  %v580_v32 = vpop.f32.mrb[1].mxu1 }
 0x114   : > { %599 = vst [vmem:[#allocation5] sm:$0xff] %v560_v31  ;;  %603 = vst [vmem:[#allocation5 + $0x20] sm:$0xff] %v580_v32 }
 0x116   : > { %v5153_v33 = vpop.f32.mrb[2].mxu0  ;;  %v5159_v34 = vpop.f32.mrb[2].mxu1 }
 0x117   : > { %602 = vst [vmem:[#allocation5 + $0x18] sm:$0xff] %v5153_v33  ;;  %606 = vst [vmem:[#allocation5 + $0x38] sm:$0xff] %v5159_v34  ;;  %v570_v35 = vpop.f32.mrb[3].mxu0  ;;  %v590_v36 = vpop.f32.mrb[3].mxu1 }
 0x118   : > { %601 = vst [vmem:[#allocation5 + $0x10] sm:$0xff] %v570_v35  ;;  %605 = vst [vmem:[#allocation5 + $0x30] sm:$0xff] %v590_v36 }
 0x119 PF: > { %v5367_v37 = vld [vmem:[%s5874_s18 + $0x4] ss:$8 sps:$4 sm:$0xff]   ;;  %v5369_v38 = vld [vmem:[%s5874_s18] ss:$8 sps:$4 sm:$0xff]   ;;  %v5773_v39 = vmov 0   ;;  %v1002_v11 = vlaneseq  ;;  %s5774_s23 = smov 112  }
 0x11a   : > { %747 = vmatprep.mubr.bf16.mxu0 %v5773_v39  ;;  %767 = vmatprep.mubr.bf16.mxu1 %v5773_v39  ;;  %v5370_v40 = vld [vmem:[%s5874_s18 + $0x14] ss:$8 sps:$4 sm:$0xff]   ;;  %v5372_v41 = vld [vmem:[%s5874_s18 + $0x10] ss:$8 sps:$4 sm:$0xff]   ;;  %v5373_v42 = vld [vmem:[%s5874_s18 + $0x24] ss:$8 sps:$4 sm:$0xff]  }
 0x11b   : > { %715 = vmatprep.subr.bf16.mxu0 %v5367_v37  ;;  %5264 = vmatprep.subr.bf16.mxu1 %v5367_v37  ;;  %v5375_v43 = vld [vmem:[%s5874_s18 + $0x20] ss:$8 sps:$4 sm:$0xff]   ;;  %v5376_v44 = vld [vmem:[%s5874_s18 + $0x34] ss:$8 sps:$4 sm:$0xff]   ;;  %v5378_v45 = vld [vmem:[%s5874_s18 + $0x30] ss:$8 sps:$4 sm:$0xff]  }
 0x11c   : > { %716 = vmatpush1.bf16.msra.mxu0 %v5369_v38  ;;  %5272 = vmatpush1.bf16.msra.mxu1 %v5369_v38  ;;  %v607_v46 = vld [vmem:[#allocation5] sm:$0xff]  ;;  %v608_v47 = vld [vmem:[#allocation5 + $0x8] sm:$0xff]  ;;  %v5382_v1 = vld [vmem:[%s5874_s18 + $0x54] ss:$8 sps:$4 sm:$0xff]   ;;  %v5982_v13 = vshrl.u32 %v1002_v11, 7  ;;  %vm979_vm13 = vcmask 130048  }
 0x11d   : > { %717 = vmatprep.subr.bf16.mxu0 %v5370_v40  ;;  %5265 = vmatprep.subr.bf16.mxu1 %v5370_v40  ;;  %v4992_v48 = vld [vmem:[%s405_s29] ss:$0 sm:$0xff]  ;;  %v5379_v49 = vld [vmem:[%s5874_s18 + $0x44] ss:$8 sps:$4 sm:$0xff]   ;;  %v5384_v2 = vld [vmem:[%s5874_s18 + $0x50] ss:$8 sps:$4 sm:$0xff]   ;;  %v615_v7 = vpack.c.bf16 %v608_v47, %v607_v46 }
 0x11e   : > { %v3917_v50 = vmul.f32 %v4992_v48, %v607_v46  ;;  %v3918_v51 = vmul.f32 %v4992_v48, %v608_v47  ;;  %v611_v52 = vld [vmem:[#allocation5 + $0x20] sm:$0xff]  ;;  %v612_v53 = vld [vmem:[#allocation5 + $0x28] sm:$0xff]  ;;  %v610_v57 = vld [vmem:[#allocation5 + $0x18] sm:$0xff]  ;;  %v5995_v20 = vsub.s32 0, %v5982_v13  ;;  %v6019_v33 = vsub.s32 1, %v5982_v13  ;;  %s7152_s29 = smov 0  }
 0x11f   : > { %v3921_v54 = vmul.f32 %v4992_v48, %v611_v52  ;;  %v3922_v55 = vmul.f32 %v4992_v48, %v612_v53  ;;  %v609_v56 = vld [vmem:[#allocation5 + $0x10] sm:$0xff]  ;;  %v3920_v60 = vmul.f32 %v4992_v48, %v610_v57  ;;  %v614_v61 = vld [vmem:[#allocation5 + $0x38] sm:$0xff]  ;;  %v5381_v63 = vld [vmem:[%s5874_s18 + $0x40] ss:$8 sps:$4 sm:$0xff]   ;;  %v617_v8 = vpack.c.bf16 %v612_v53, %v611_v52 }
 0x120   : > { %718 = vmatpush1.bf16.msra.mxu0 %v5372_v41  ;;  %5273 = vmatpush1.bf16.msra.mxu1 %v5372_v41  ;;  %v613_v58 = vld [vmem:[#allocation5 + $0x30] sm:$0xff]  ;;  %3925 = vst [vmem:[%s5894_s30] sm:$0xff] %v3917_v50  ;;  %3926 = vst [vmem:[%s5894_s30 + $0x8] sm:$0xff] %v3918_v51  ;;  %v3919_v59 = vmul.f32 %v4992_v48, %v609_v56  ;;  %v3924_v0 = vmul.f32 %v4992_v48, %v614_v61  ;;  %v5385_v3 = vld [vmem:[%s5874_s18 + $0x64] ss:$8 sps:$4 sm:$0xff]   ;;  %v5775_v47 = vmov 1966171168  }
 0x121   : > { %719 = vmatprep.subr.bf16.mxu0 %v5373_v42  ;;  %5266 = vmatprep.subr.bf16.mxu1 %v5373_v42  ;;  %v3923_v62 = vmul.f32 %v4992_v48, %v613_v58  ;;  %3929 = vst [vmem:[%s5894_s30 + $0x20] sm:$0xff] %v3921_v54  ;;  %3930 = vst [vmem:[%s5894_s30 + $0x28] sm:$0xff] %v3922_v55  ;;  %v5387_v4 = vld [vmem:[%s5874_s18 + $0x60] ss:$8 sps:$4 sm:$0xff]   ;;  %v5388_v5 = vld [vmem:[%s5874_s18 + $0x74] ss:$8 sps:$4 sm:$0xff]   ;;  %v616_v9 = vpack.c.bf16 %v610_v57, %v609_v56  ;;  %v1000_v48 = vunpack.c.l.s4 %v5775_v47 }
 0x122   : > { %3927 = vst [vmem:[%s5894_s30 + $0x10] sm:$0xff] %v3919_v59  ;;  %3928 = vst [vmem:[%s5894_s30 + $0x18] sm:$0xff] %v3920_v60  ;;  %v5390_v6 = vld [vmem:[%s5874_s18 + $0x70] ss:$8 sps:$4 sm:$0xff]   ;;  %v618_v10 = vpack.c.bf16 %v614_v61, %v613_v58  ;;  %v5980_v12 = vld [vmem:[%s5869_s15] ss:$0 sm:$0xff] }
 0x123   : > { %3931 = vst [vmem:[%s5894_s30 + $0x30] sm:$0xff] %v3923_v62  ;;  %3932 = vst [vmem:[%s5894_s30 + $0x38] sm:$0xff] %v3924_v0  ;;  %v6027_v42 = vsub.s32 2, %v5982_v13  ;;  %v6041_v51 = vsub.s32 4, %v5982_v13  ;;  %v1001_v55 = vunpack.c.0.s8 %v1000_v48  ;;  %v6050_v57 = vsub.s32 5, %v5982_v13 }
 0x124   : > { %720 = vmatpush1.bf16.msra.mxu0 %v5375_v43  ;;  %5274 = vmatpush1.bf16.msra.mxu1 %v5375_v43  ;;  %7314 = vst [vmem:[#allocation11_spill] sm:$0xff] %v6019_v33  ;;  %v6057_v61 = vsub.s32 6, %v5982_v13  ;;  %v6063_v0 = vsub.s32 7, %v5982_v13 }
 0x125   : > { %721 = vmatprep.subr.bf16.mxu0 %v5376_v44  ;;  %5267 = vmatprep.subr.bf16.mxu1 %v5376_v44  ;;  %7315 = vst [vmem:[#allocation12_spill] sm:$0xff] %v6027_v42  ;;  %7317 = vst [vmem:[#allocation14_spill] sm:$0xff] %v6041_v51 }
 0x126   : > { %7318 = vst [vmem:[#allocation15_spill] sm:$0xff] %v6050_v57  ;;  %7319 = vst [vmem:[#allocation16_spill] sm:$0xff] %v6057_v61 }
 0x127   : > { %7320 = vst [vmem:[#allocation17_spill] sm:$0xff] %v6063_v0 }
 0x128   : > { %722 = vmatpush1.bf16.msra.mxu0 %v5378_v45  ;;  %5275 = vmatpush1.bf16.msra.mxu1 %v5378_v45  ;;  %v6032_v45 = vsub.s32 3, %v5982_v13 }
 0x129   : > { %723 = vmatprep.subr.bf16.mxu0 %v5379_v49  ;;  %5268 = vmatprep.subr.bf16.mxu1 %v5379_v49 }
 0x12a   : > { %7316 = vst [vmem:[#allocation13_spill] sm:$0xff] %v6032_v45 }
 0x12c   : > { %724 = vmatpush1.bf16.msra.mxu0 %v5381_v63  ;;  %5276 = vmatpush1.bf16.msra.mxu1 %v5381_v63 }
 0x12d   : > { %725 = vmatprep.subr.bf16.mxu0 %v5382_v1  ;;  %5269 = vmatprep.subr.bf16.mxu1 %v5382_v1 }
 0x130   : > { %726 = vmatpush1.bf16.msra.mxu0 %v5384_v2  ;;  %5277 = vmatpush1.bf16.msra.mxu1 %v5384_v2 }
 0x131   : > { %727 = vmatprep.subr.bf16.mxu0 %v5385_v3  ;;  %5270 = vmatprep.subr.bf16.mxu1 %v5385_v3  ;;  %v6069_v3 = vsub.s32 %v1001_v55, %v5982_v13 }
 0x134   : > { %728 = vmatpush1.bf16.msra.mxu0 %v5387_v4  ;;  %5278 = vmatpush1.bf16.msra.mxu1 %v5387_v4 }
 0x135   : > { %729 = vmatprep.subr.bf16.mxu0 %v5388_v5  ;;  %5271 = vmatprep.subr.bf16.mxu1 %v5388_v5 }
 0x138   : > { %730 = vmatpush1.bf16.msra.mxu0 %v5390_v6  ;;  %5279 = vmatpush1.bf16.msra.mxu1 %v5390_v6 }
 0x13b   : > { %748 = vmatmul.mubr.bf16.vlgmr.msra.gmra.mrb[0].mxu0 %v615_v7  ;;  %768 = vmatmul.mubr.bf16.vlgmr.msra.gmra.mrb[0].mxu1 %v617_v8 }
 0x13c   : > { %757 = vmatprep.mubr.bf16.mxu0 %v5773_v39  ;;  %777 = vmatprep.mubr.bf16.mxu1 %v5773_v39 }
 0x143   : > { %758 = vmatmul.mubr.bf16.gmra.mrb[4].mxu0 %v616_v9  ;;  %778 = vmatmul.mubr.bf16.gmra.mrb[4].mxu1 %v618_v10 }
 0x20e   : > { %v749_v14 = vpop.f32.mrb[0].mxu0  ;;  %v769_v15 = vpop.f32.mrb[0].mxu1 }
 0x20f   : > { %v5985_v16 = vadd.f32 %v5980_v12, %v749_v14  ;;  %v5988_v17 = vadd.f32 %v5980_v12, %v769_v15  ;;  %v5990_v18 = vpop.f32.mrb[1].mxu0  ;;  %v5992_v19 = vpop.f32.mrb[1].mxu1 }
 0x210   : > { %v773_v21 = vpop.f32.mrb[2].mxu1  ;;  %955 = vrot.lane.b32.xlu0 %v5990_v18, %s5774_s23  ;;  %v753_v22 = vpop.f32.mrb[2].mxu0  ;;  %v2633_v32 = vrot.slane %v5990_v18, %v5995_v20  ;;  %v2644_v41 = vrot.slane %v5990_v18, %v6019_v33  ;;  %v2655_v44 = vrot.slane %v5990_v18, %v6027_v42  ;;  %v2666_v50 = vrot.slane %v5990_v18, %v6032_v45 }
 0x211   : > { %v827_v23 = vand.u32 2147483647, %v5985_v16  ;;  %v6000_v24 = vpop.f32.mrb[3].mxu0  ;;  %v6002_v25 = vpop.f32.mrb[3].mxu1  ;;  %v831_v26 = vand.u32 2147483647, %v5988_v17  ;;  %v6006_v27 = vadd.f32 %v5980_v12, %v773_v21  ;;  %v6009_v28 = vadd.f32 %v5980_v12, %v753_v22 }
 0x212   : > { %965 = vrot.lane.b32.xlu1 %v6002_v25, %s5774_s23  ;;  %v2677_v60 = vrot.slane %v5990_v18, %v6041_v51  ;;  %v803_v2 = vmax.f32 %v5985_v16, 0.0  ;;  %v807_v4 = vmax.f32 %v5988_v17, 0.0  ;;  %v2688_v8 = vrot.slane %v5990_v18, %v6050_v57 }
 0x213   : > { %v835_v29 = vsub.f32 0.0, %v827_v23  ;;  %v839_v30 = vsub.f32 0.0, %v831_v26  ;;  %v832_v31 = vand.u32 2147483647, %v6006_v27  ;;  %v828_v35 = vand.u32 2147483647, %v6009_v28 }
 0x214   : > { %963 = vrot.lane.b32.xlu0 %v5992_v19, %s5774_s23  ;;  %v808_v11 = vmax.f32 %v6006_v27, 0.0  ;;  %v2699_v14 = vrot.slane %v5990_v18, %v6057_v61  ;;  %v6083_v15 = vrot.slane %v5990_v18, %v6063_v0  ;;  %v6087_v21 = vrot.slane %v5992_v19, %v5995_v20 }
 0x215   : > { %v843_v34 = vmul.f32 1.442695, %v835_v29  ;;  %v851_v36 = vmul.f32 1.442695, %v839_v30  ;;  %v840_v37 = vsub.f32 0.0, %v832_v31  ;;  %v836_v39 = vsub.f32 0.0, %v828_v35 }
 0x216   : > { %2639 = vbcast.lane.b32.xlu1 %v2633_v32, 264  ;;  %v759_v38 = vpop.f32.mrb[4].mxu0  ;;  %v6091_v22 = vrot.slane %v5992_v19, %v6019_v33  ;;  %v6095_v23 = vrot.slane %v5992_v19, %v6027_v42  ;;  %v6099_v26 = vrot.slane %v5992_v19, %v6032_v45  ;;  %v6103_v18 = vrot.slane %v5992_v19, %v6041_v51 }
 0x217   : > { %5391 = vpow2.f32 %v843_v34  ;;  %v853_v40 = vmul.f32 1.442695, %v840_v37  ;;  %v845_v43 = vmul.f32 1.442695, %v836_v39  ;;  %v6035_v46 = vadd.f32 %v5980_v12, %v759_v38  ;;  %v6065_v1 = vpop.f32.mrb[5].mxu0 }
 0x218   : > { %5393 = vpow2.f32 %v851_v36  ;;  %957 = vrot.lane.b32.xlu0 %v6000_v24, %s5774_s23  ;;  %7321 = vst [vmem:[#allocation18_spill] sm:$0xff] %v6065_v1  ;;  %v763_v6 = vpop.f32.mrb[6].mxu0  ;;  %v6107_v29 = vrot.slane %v5992_v19, %v6050_v57  ;;  %vm811_vm1 = vcmp.ne.f32.partialorder %v5985_v16, %v5985_v16  ;;  %vm815_vm2 = vcmp.ne.f32.partialorder %v5988_v17, %v5988_v17 }
 0x219   : > { %5395 = vpow2.f32 %v853_v40  ;;  %v829_v49 = vand.u32 2147483647, %v6035_v46  ;;  %v6117_v35 = vrot.slane %v5992_v19, %v6057_v61  ;;  %v6121_v36 = vrot.slane %v5992_v19, %v6063_v0 }
 0x21a   : > { %2650 = vbcast.lane.b32.xlu1 %v2644_v41, 264  ;;  %5397 = vpow2.f32 %v845_v43  ;;  %v6125_v37 = vrot.slane %v6000_v24, %v5995_v20  ;;  %v6130_v39 = vrot.slane %v6000_v24, %v6019_v33  ;;  %v6134_v40 = vrot.slane %v6000_v24, %v6027_v42 }
 0x21b   : > { %v837_v58 = vsub.f32 0.0, %v829_v49  ;;  %v6142_v43 = vrot.slane %v6000_v24, %v6041_v51  ;;  %v6150_v47 = vrot.slane %v6000_v24, %v6057_v61  ;;  %v6153_v48 = vadd.f32 %v5980_v12, %v763_v6 }
 0x21c   : > { %2635 = vbcast.lane.b32.xlu0 %v2633_v32, 256  ;;  %v6162_v6 = vrot.slane %v6000_v24, %v6063_v0  ;;  %vm816_vm5 = vcmp.ne.f32.partialorder %v6006_v27, %v6006_v27  ;;  %vm812_vm8 = vcmp.ne.f32.partialorder %v6009_v28, %v6009_v28  ;;  %vm813_vm9 = vcmp.ne.f32.partialorder %v6035_v46, %v6035_v46 }
 0x21d   : > { %v847_v9 = vmul.f32 1.442695, %v837_v58  ;;  %vm814_vm12 = vcmp.ne.f32.partialorder %v6153_v48, %v6153_v48 }
 0x21e   : > { %2661 = vbcast.lane.b32.xlu1 %v2655_v44, 264 }
 0x220   : > { %2646 = vbcast.lane.b32.xlu0 %v2644_v41, 256  ;;  %v6138_v41 = vrot.slane %v6000_v24, %v6032_v45 }
 0x221   : > { %v6043_v52 = vpop.eup %5391 }
 0x222   : > { %v6045_v53 = vpop.eup %5393  ;;  %v859_v54 = vadd.f32 1.0, %v6043_v52  ;;  %2672 = vbcast.lane.b32.xlu1 %v2666_v50, 264  ;;  %v862_v7 = vmul.f32 -0.5, %v6043_v52  ;;  %v865_v31 = vand.u32 2147483647, %v6043_v52 }
 0x223   : > { %v895_v56 = vadd.f32 1.0, %v6045_v53  ;;  %v6052_v59 = vpop.eup %5395  ;;  %v898_v10 = vmul.f32 -0.5, %v6045_v53  ;;  %v901_v38 = vand.u32 2147483647, %v6045_v53 }
 0x224   : > { %5399 = vlog2.f32 %v859_v54  ;;  %2657 = vbcast.lane.b32.xlu0 %v2655_v44, 256  ;;  %v6059_v62 = vpop.eup %5397  ;;  %v904_v63 = vadd.f32 1.0, %v6052_v59  ;;  %v863_v30 = vadd.f32 1.0, %v862_v7  ;;  %v907_v32 = vmul.f32 -0.5, %v6052_v59 }
 0x225   : > { %5401 = vlog2.f32 %v895_v56  ;;  %v868_v5 = vadd.f32 1.0, %v6059_v62  ;;  %v899_v34 = vadd.f32 1.0, %v898_v10  ;;  %v6146_v44 = vrot.slane %v6000_v24, %v6050_v57 }
 0x226   : > { %2683 = vbcast.lane.b32.xlu1 %v2677_v60, 264  ;;  %5403 = vlog2.f32 %v904_v63  ;;  %v864_v54 = vmul.f32 %v6043_v52, %v863_v30  ;;  %vm866_vm3 = vcmp.lt.f32.partialorder %v865_v31, 0.0004427343  ;;  %v908_v55 = vadd.f32 1.0, %v907_v32 }
 0x227   : > { %5405 = vlog2.f32 %v868_v5  ;;  %v900_v58 = vmul.f32 %v6045_v53, %v899_v34  ;;  %v871_v63 = vmul.f32 -0.5, %v6059_v62  ;;  %vm902_vm4 = vcmp.lt.f32.partialorder %v901_v38, 0.0004427343  ;;  %v6189_v34 = vpop.f32.mrb[4].mxu1 }
 0x228   : > { %2668 = vbcast.lane.b32.xlu0 %v2666_v50, 256  ;;  %5407 = vpow2.f32 %v847_v9  ;;  %v874_v12 = vand.u32 2147483647, %v6059_v62  ;;  %v830_v53 = vand.u32 2147483647, %v6153_v48  ;;  %v6173_v31 = vrot.slane %v6002_v25, %v5995_v20 }
 0x229   : > { %v6177_v24 = vrot.slane %v6002_v25, %v6019_v33  ;;  %v6193_v38 = vrot.slane %v6002_v25, %v6027_v42 }
 0x22a   : > { %2694 = vbcast.lane.b32.xlu1 %v2688_v8, 264  ;;  %vm6211_vm7 = vcmp.lt.f32.partialorder %v874_v12, 0.0004427343 }
 0x22b   : > { %7325 = vst [vmem:[#allocation20_spill] sm:$0xff] %v6193_v38 }
 0x22c   : > { %2679 = vbcast.lane.b32.xlu0 %v2677_v60, 256  ;;  %v910_v60 = vand.u32 2147483647, %v6052_v59 }
 0x22e   : > { %v5400_v19 = vpop.eup %5399  ;;  %2705 = vbcast.lane.b32.xlu1 %v2699_v14, 264  ;;  %vm6185_vm6 = vcmp.lt.f32.partialorder %v910_v60, 0.0004427343 }
 0x22f   : > { %v5402_v49 = vpop.eup %5401  ;;  %v861_v50 = vmul.f32 0.6931472, %v5400_v19 }
 0x230   : > { %v897_v56 = vmul.f32 0.6931472, %v5402_v49  ;;  %2690 = vbcast.lane.b32.xlu0 %v2688_v8, 256  ;;  %v5404_v5 = vpop.eup %5403  ;;  %v909_v8 = vmul.f32 %v6052_v59, %v908_v55  ;;  %v872_v59 = vadd.f32 1.0, %v871_v63 }
 0x231   : > { %v867_v7 = vsel %vm866_vm3, %v864_v54, %v861_v50  ;;  %v906_v10 = vmul.f32 0.6931472, %v5404_v5  ;;  %v6209_v54 = vpop.f32.mrb[5].mxu1 }
 0x232   : > { %v931_v52 = vadd.f32 %v867_v7, %v803_v2  ;;  %v903_v9 = vsel %vm902_vm4, %v900_v58, %v897_v56  ;;  %2716 = vbcast.lane.b32.xlu1 %v6083_v15, 264  ;;  %v5406_v2 = vpop.eup %5405  ;;  %7327 = vst [vmem:[#allocation22_spill] sm:$0xff] %v6209_v54  ;;  %v838_v58 = vsub.f32 0.0, %v830_v53  ;;  %v6217_v60 = vpop.f32.mrb[6].mxu1 }
 0x233   : > { %v935_v30 = vadd.f32 %v903_v9, %v807_v4  ;;  %v6195_v19 = vpop.eup %5407  ;;  %v6225_v12 = vmul.f32 0.6931472, %v5406_v2 }
 0x234   : > { %v6183_v32 = vsel %vm811_vm1, %v5985_v16, %v931_v52  ;;  %2701 = vbcast.lane.b32.xlu0 %v2699_v14, 256  ;;  %v912_v14 = vsel %vm6185_vm6, %v909_v8, %v906_v10  ;;  %v6232_v10 = vmul.f32 %v6059_v62, %v872_v59  ;;  %v877_v53 = vadd.f32 1.0, %v6195_v19  ;;  %v6251_v59 = vld [vmem:[%s5879_s7 + $0x8] sm:$0xff] }
 0x235   : > { %7322 = vst [vmem:[#allocation19_spill] sm:$0xff] %v6183_v32  ;;  %v998_v49 = vcombine.high %v6183_v32, %v6183_v32  ;;  %v1005_v16 = vrot.slane %v6183_v32, %v6069_v3  ;;  %v6205_v50 = vsel %vm815_vm2, %v5988_v17, %v935_v30  ;;  %v6221_v17 = vrot.slane %v6002_v25, %v6032_v45 }
 0x236   : > { %7326 = vst [vmem:[#allocation21_spill] sm:$0xff] %v6205_v50  ;;  %2991 = vbcast.lane.b32.xlu1 %v6087_v21, 264  ;;  %v1194_v52 = vcombine.high %v6205_v50, %v6205_v50  ;;  %v936_v9 = vadd.f32 %v912_v14, %v808_v11  ;;  %v1201_v11 = vrot.slane %v6205_v50, %v6069_v3  ;;  %v6246_v62 = vmul.f32 -0.5, %v6195_v19 }
 0x237   : > { %7330 = vst [vmem:[#allocation23_spill] sm:$0xff] %v6221_v17  ;;  %v1012_v63 = vrot.slane %v998_v49, %v6069_v3  ;;  %v1013_v5 = vcombine.high %v1005_v16, %v1005_v16  ;;  %v1021_v7 = vrot.slane %v1005_v16, %v6069_v3  ;;  %v6239_v49 = vld [vmem:[%s5879_s7] sm:$0xff]  ;;  %5409 = vlog2.f32 %v877_v53 }
 0x238   : > { %2712 = vbcast.lane.b32.xlu0 %v6083_v15, 256  ;;  %v6248_v15 = vmul.f32 1.442695, %v838_v58  ;;  %v1208_v13 = vrot.slane %v1194_v52, %v6069_v3  ;;  %v6265_v58 = vsel %vm816_vm5, %v6006_v27, %v936_v9  ;;  %v1209_v54 = vcombine.high %v1201_v11, %v1201_v11 }
 0x239   : > { %v1014_v30 = vcombine.high %v1012_v63, %v1012_v63  ;;  %v1028_v8 = vrot.slane %v1012_v63, %v6069_v3  ;;  %v1035_v2 = vrot.slane %v1013_v5, %v6069_v3  ;;  %v1043_v4 = vcombine.high %v1021_v7, %v1021_v7 }
 0x23a   : > { %v1393_v16 = vrot.slane %v1021_v7, %v5995_v20  ;;  %3002 = vbcast.lane.b32.xlu1 %v6091_v22, 264  ;;  %v1217_v9 = vrot.slane %v1201_v11, %v6069_v3  ;;  %v1210_v50 = vcombine.high %v1208_v13, %v1208_v13  ;;  %v6282_v33 = vrot.slane %v1208_v13, %v6069_v3 }
 0x23b   : > { %v1042_v14 = vrot.slane %v1014_v30, %v6069_v3  ;;  %v1045_v63 = vcombine.high %v1035_v2, %v1035_v2  ;;  %v1397_v5 = vrot.slane %v1035_v2, %v5995_v20  ;;  %v1401_v56 = vrot.slane %v1043_v4, %v5995_v20 }
 0x23c   : > { %2987 = vbcast.lane.b32.xlu0 %v6087_v21, 256  ;;  %v1044_v30 = vcombine.high %v1028_v8, %v1028_v8  ;;  %v1710_v42 = vmul.f32 %v1393_v16, %v6239_v49  ;;  %v1711_v7 = vmul.f32 %v1393_v16, %v6251_v59  ;;  %v1409_v27 = vrot.slane %v1028_v8, %v5995_v20 }
 0x23d   : > { %v1046_v2 = vcombine.high %v1042_v14, %v1042_v14  ;;  %v1405_v45 = vrot.slane %v1045_v63, %v5995_v20  ;;  %v1712_v4 = vmul.f32 %v1397_v5, %v6239_v49  ;;  %v1713_v52 = vmul.f32 %v1397_v5, %v6251_v59 }
 0x23e   : > { %3013 = vbcast.lane.b32.xlu1 %v6095_v23, 264  ;;  %v1714_v21 = vmul.f32 %v1401_v56, %v6239_v49  ;;  %v1413_v63 = vrot.slane %v1042_v14, %v5995_v20  ;;  %v1715_v16 = vmul.f32 %v1401_v56, %v6251_v59  ;;  %v1417_v5 = vrot.slane %v1044_v30, %v5995_v20 }
 0x23f   : > { %v1421_v8 = vrot.slane %v1046_v2, %v5995_v20  ;;  %v1716_v1 = vmul.f32 %v1405_v45, %v6239_v49  ;;  %v1838_v11 = vmul.f32 1.442695, %v1710_v42  ;;  %v1717_v0 = vmul.f32 %v1405_v45, %v6251_v59 }
 0x240   : > { %2998 = vbcast.lane.b32.xlu0 %v6091_v22, 256  ;;  %v1840_v53 = vmul.f32 1.442695, %v1711_v7  ;;  %v1842_v17 = vmul.f32 1.442695, %v1712_v4  ;;  %v1718_v56 = vmul.f32 %v1409_v27, %v6239_v49  ;;  %v1231_v13 = vrot.slane %v1209_v54, %v6069_v3 }
 0x241   : > { %v1844_v14 = vmul.f32 1.442695, %v1713_v52  ;;  %5411 = vpow2.f32 %v1838_v11  ;;  %v1846_v32 = vmul.f32 1.442695, %v1714_v21  ;;  %v1719_v22 = vmul.f32 %v1409_v27, %v6251_v59  ;;  %v6295_v7 = vpop.eup %5409 }
 0x242   : > { %v1720_v30 = vmul.f32 %v1413_v63, %v6239_v49  ;;  %5413 = vpow2.f32 %v1840_v53  ;;  %v1848_v2 = vmul.f32 1.442695, %v1715_v16  ;;  %v1721_v38 = vmul.f32 %v1413_v63, %v6251_v59  ;;  %3024 = vbcast.lane.b32.xlu1 %v6099_v26, 264 }
 0x243   : > { %v1722_v42 = vmul.f32 %v1417_v5, %v6239_v49  ;;  %5415 = vpow2.f32 %v1842_v17  ;;  %v1850_v45 = vmul.f32 1.442695, %v1716_v1  ;;  %v1723_v4 = vmul.f32 %v1417_v5, %v6251_v59 }
 0x244   : > { %v1724_v52 = vmul.f32 %v1421_v8, %v6239_v49  ;;  %5417 = vpow2.f32 %v1844_v14  ;;  %v1852_v54 = vmul.f32 1.442695, %v1717_v0  ;;  %v1854_v27 = vmul.f32 1.442695, %v1718_v56  ;;  %3009 = vbcast.lane.b32.xlu0 %v6095_v23, 256 }
 0x245   : > { %5419 = vpow2.f32 %v1846_v32  ;;  %v1238_v21 = vrot.slane %v1210_v50, %v6069_v3  ;;  %v1239_v53 = vcombine.high %v1217_v9, %v1217_v9  ;;  %v1725_v17 = vmul.f32 %v1421_v8, %v6251_v59 }
 0x246   : > { %5421 = vpow2.f32 %v1848_v2  ;;  %v1856_v1 = vmul.f32 1.442695, %v1719_v22  ;;  %v1521_v63 = vrot.slane %v1217_v9, %v5995_v20  ;;  %v1858_v16 = vmul.f32 1.442695, %v1720_v30  ;;  %3035 = vbcast.lane.b32.xlu1 %v6103_v18, 264 }
 0x247   : > { %5423 = vpow2.f32 %v1850_v45  ;;  %v1241_v5 = vcombine.high %v1231_v13, %v1231_v13  ;;  %v1525_v0 = vrot.slane %v1231_v13, %v5995_v20  ;;  %v1860_v32 = vmul.f32 1.442695, %v1721_v38 }
 0x248   : > { %5425 = vpow2.f32 %v1852_v54  ;;  %v1862_v11 = vmul.f32 1.442695, %v1722_v42  ;;  %v1864_v50 = vmul.f32 1.442695, %v1723_v4  ;;  %v1240_v14 = vcombine.high %v6282_v33, %v6282_v33  ;;  %3020 = vbcast.lane.b32.xlu0 %v6099_v26, 256 }
 0x249   : > { %5427 = vpow2.f32 %v1854_v27  ;;  %v1242_v23 = vcombine.high %v1238_v21, %v1238_v21  ;;  %v1529_v8 = vrot.slane %v1239_v53, %v5995_v20  ;;  %v1866_v9 = vmul.f32 1.442695, %v1724_v52 }
 0x24a   : > { %5429 = vpow2.f32 %v1856_v1  ;;  %v1774_v56 = vmul.f32 %v1521_v63, %v6239_v49  ;;  %v1775_v13 = vmul.f32 %v1521_v63, %v6251_v59  ;;  %v1868_v22 = vmul.f32 1.442695, %v1725_v17  ;;  %3046 = vbcast.lane.b32.xlu1 %v6107_v29, 264 }
 0x24b   : > { %v5412_v38 = vpop.eup %5411  ;;  %5431 = vpow2.f32 %v1858_v16  ;;  %v1533_v30 = vrot.slane %v1241_v5, %v5995_v20  ;;  %v1776_v2 = vmul.f32 %v1525_v0, %v6239_v49  ;;  %v1537_v45 = vrot.slane %v6282_v33, %v5995_v20 }
 0x24c   : > { %v5414_v42 = vpop.eup %5413  ;;  %5433 = vpow2.f32 %v1860_v32  ;;  %2094 = vst [vmem:[#allocation2] sm:$0xff] %v5412_v38  ;;  %v1541_v26 = vrot.slane %v1238_v21, %v5995_v20  ;;  %v1777_v4 = vmul.f32 %v1525_v0, %v6251_v59  ;;  %v1545_v54 = vrot.slane %v1240_v14, %v5995_v20  ;;  %3031 = vbcast.lane.b32.xlu0 %v6103_v18, 256 }
 0x24d   : > { %v5416_v52 = vpop.eup %5415  ;;  %5435 = vpow2.f32 %v1862_v11  ;;  %2095 = vst [vmem:[#allocation2 + $0x8] sm:$0xff] %v5414_v42  ;;  %v1549_v27 = vrot.slane %v1242_v23, %v5995_v20  ;;  %v1778_v53 = vmul.f32 %v1529_v8, %v6239_v49  ;;  %v1779_v33 = vmul.f32 %v1529_v8, %v6251_v59 }
 0x24e   : > { %v5418_v17 = vpop.eup %5417  ;;  %5437 = vpow2.f32 %v1864_v50  ;;  %2096 = vst [vmem:[#allocation2 + $0x10] sm:$0xff] %v5416_v52  ;;  %v1966_v21 = vmul.f32 1.442695, %v1774_v56  ;;  %v1968_v1 = vmul.f32 1.442695, %v1775_v13  ;;  %v1780_v16 = vmul.f32 %v1533_v30, %v6239_v49  ;;  %3057 = vbcast.lane.b32.xlu1 %v6117_v35, 264 }
 0x24f   : > { %v5420_v63 = vpop.eup %5419  ;;  %5439 = vpow2.f32 %v1866_v9  ;;  %2097 = vst [vmem:[#allocation2 + $0x18] sm:$0xff] %v5418_v17  ;;  %v1781_v5 = vmul.f32 %v1533_v30, %v6251_v59  ;;  %v1970_v0 = vmul.f32 1.442695, %v1776_v2  ;;  %v1782_v18 = vmul.f32 %v1537_v45, %v6239_v49 }
 0x250   : > { %v5422_v32 = vpop.eup %5421  ;;  %5441 = vpow2.f32 %v1868_v22  ;;  %2098 = vst [vmem:[#allocation2 + $0x20] sm:$0xff] %v5420_v63  ;;  %v1783_v11 = vmul.f32 %v1537_v45, %v6251_v59  ;;  %v1972_v50 = vmul.f32 1.442695, %v1777_v4  ;;  %v1784_v23 = vmul.f32 %v1541_v26, %v6239_v49  ;;  %3042 = vbcast.lane.b32.xlu0 %v6107_v29, 256 }
 0x251   : > { %v5424_v14 = vpop.eup %5423  ;;  %2099 = vst [vmem:[#allocation2 + $0x28] sm:$0xff] %v5422_v32  ;;  %v1785_v8 = vmul.f32 %v1541_v26, %v6251_v59  ;;  %5443 = vpow2.f32 %v1966_v21  ;;  %v1974_v9 = vmul.f32 1.442695, %v1778_v53  ;;  %v1786_v13 = vmul.f32 %v1545_v54, %v6239_v49 }
 0x252   : > { %v5426_v56 = vpop.eup %5425  ;;  %2100 = vst [vmem:[#allocation2 + $0x30] sm:$0xff] %v5424_v14  ;;  %v1787_v38 = vmul.f32 %v1545_v54, %v6251_v59  ;;  %5445 = vpow2.f32 %v1968_v1  ;;  %v1976_v22 = vmul.f32 1.442695, %v1779_v33  ;;  %v1788_v2 = vmul.f32 %v1549_v27, %v6239_v49  ;;  %3068 = vbcast.lane.b32.xlu1 %v6121_v36, 264 }
 0x253   : > { %v5428_v30 = vpop.eup %5427  ;;  %2101 = vst [vmem:[#allocation2 + $0x38] sm:$0xff] %v5426_v56  ;;  %5447 = vpow2.f32 %v1970_v0  ;;  %v1978_v42 = vmul.f32 1.442695, %v1780_v16  ;;  %v1250_v45 = vrot.slane %v6265_v58, %v6069_v3  ;;  %v1789_v4 = vmul.f32 %v1549_v27, %v6251_v59 }
 0x254   : > { %v5430_v26 = vpop.eup %5429  ;;  %2102 = vst [vmem:[#allocation2 + $0x40] sm:$0xff] %v5428_v30  ;;  %5449 = vpow2.f32 %v1972_v50  ;;  %v1980_v52 = vmul.f32 1.442695, %v1781_v5  ;;  %v7331_v54 = vcombine.high %v6265_v58, %v6265_v58  ;;  %v1982_v33 = vmul.f32 1.442695, %v1782_v18  ;;  %3053 = vbcast.lane.b32.xlu0 %v6117_v35, 256 }
 0x255   : > { %v5432_v17 = vpop.eup %5431  ;;  %2103 = vst [vmem:[#allocation2 + $0x48] sm:$0xff] %v5430_v26  ;;  %5451 = vpow2.f32 %v1974_v9  ;;  %v1258_v21 = vcombine.high %v1250_v45, %v1250_v45  ;;  %v1266_v1 = vrot.slane %v1250_v45, %v6069_v3  ;;  %v1984_v27 = vmul.f32 1.442695, %v1783_v11 }
 0x256   : > { %v1257_v53 = vrot.slane %v7331_v54, %v6069_v3  ;;  %v5434_v29 = vpop.eup %5433  ;;  %2104 = vst [vmem:[#allocation2 + $0x50] sm:$0xff] %v5432_v17  ;;  %5453 = vpow2.f32 %v1976_v22  ;;  %v1986_v63 = vmul.f32 1.442695, %v1784_v23  ;;  %v1988_v0 = vmul.f32 1.442695, %v1785_v8  ;;  %2727 = vbcast.lane.b32.xlu1 %v6125_v37, 264 }
 0x257   : > { %v5436_v5 = vpop.eup %5435  ;;  %2105 = vst [vmem:[#allocation2 + $0x58] sm:$0xff] %v5434_v29  ;;  %5455 = vpow2.f32 %v1978_v42  ;;  %v1280_v32 = vrot.slane %v1258_v21, %v6069_v3  ;;  %v1288_v50 = vcombine.high %v1266_v1, %v1266_v1  ;;  %v1990_v14 = vmul.f32 1.442695, %v1786_v13 }
 0x258   : > { %v1259_v16 = vcombine.high %v1257_v53, %v1257_v53  ;;  %v5438_v18 = vpop.eup %5437  ;;  %2106 = vst [vmem:[#allocation2 + $0x60] sm:$0xff] %v5436_v5  ;;  %5457 = vpow2.f32 %v1980_v52  ;;  %v1273_v9 = vrot.slane %v1257_v53, %v6069_v3  ;;  %v1553_v8 = vrot.slane %v1266_v1, %v5995_v20  ;;  %3064 = vbcast.lane.b32.xlu0 %v6121_v36, 256 }
 0x259   : > { %v5440_v23 = vpop.eup %5439  ;;  %2107 = vst [vmem:[#allocation2 + $0x68] sm:$0xff] %v5438_v18  ;;  %5459 = vpow2.f32 %v1982_v33  ;;  %v1290_v56 = vcombine.high %v1280_v32, %v1280_v32  ;;  %v1557_v22 = vrot.slane %v1280_v32, %v5995_v20  ;;  %v1992_v35 = vmul.f32 1.442695, %v1787_v38 }
 0x25a   : > { %v1287_v11 = vrot.slane %v1259_v16, %v6069_v3  ;;  %v5442_v30 = vpop.eup %5441  ;;  %2108 = vst [vmem:[#allocation2 + $0x70] sm:$0xff] %v5440_v23  ;;  %5461 = vpow2.f32 %v1984_v27  ;;  %v1994_v42 = vmul.f32 1.442695, %v1788_v2  ;;  %v7332_v45 = vmax.f32 %v6009_v28, 0.0  ;;  %2738 = vbcast.lane.b32.xlu1 %v6130_v39, 264 }
 0x25b   : > { %v7333_v13 = vsel %vm6211_vm7, %v6232_v10, %v6225_v12  ;;  %v5444_v52 = vpop.eup %5443  ;;  %2109 = vst [vmem:[#allocation2 + $0x78] sm:$0xff] %v5442_v30  ;;  %5463 = vpow2.f32 %v1986_v63  ;;  %v1996_v54 = vmul.f32 1.442695, %v1789_v4  ;;  %v1561_v53 = vrot.slane %v1288_v50, %v5995_v20 }
 0x25c   : > { %v932_v26 = vadd.f32 %v7333_v13, %v7332_v45  ;;  %v6363_v38 = vmul.f32 0.6931472, %v6295_v7  ;;  %v5446_v2 = vpop.eup %5445  ;;  %5465 = vpow2.f32 %v1988_v0  ;;  %2158 = vst [vmem:[#allocation2 + $0x200] sm:$0xff] %v5444_v52  ;;  %v1289_v55 = vcombine.high %v1273_v9, %v1273_v9  ;;  %2723 = vbcast.lane.b32.xlu0 %v6125_v37, 256 }
 0x25d   : > { %v1291_v17 = vcombine.high %v1287_v11, %v1287_v11  ;;  %v1565_v12 = vrot.slane %v1290_v56, %v5995_v20  ;;  %v5448_v10 = vpop.eup %5447  ;;  %5467 = vpow2.f32 %v1990_v14  ;;  %2159 = vst [vmem:[#allocation2 + $0x208] sm:$0xff] %v5446_v2  ;;  %v1790_v4 = vmul.f32 %v1553_v8, %v6239_v49 }
 0x25e   : > { %v1791_v33 = vmul.f32 %v1553_v8, %v6251_v59  ;;  %v1792_v21 = vmul.f32 %v1557_v22, %v6239_v49  ;;  %v5450_v36 = vpop.eup %5449  ;;  %5469 = vpow2.f32 %v1992_v35  ;;  %2160 = vst [vmem:[#allocation2 + $0x210] sm:$0xff] %v5448_v10  ;;  %v1793_v7 = vmul.f32 %v1557_v22, %v6251_v59  ;;  %2749 = vbcast.lane.b32.xlu1 %v6134_v40, 264 }
 0x25f   : > { %v6374_v1 = vsel %vm812_vm8, %v6009_v28, %v932_v26  ;;  %v6377_v29 = vadd.f32 1.0, %v6246_v62  ;;  %v5452_v27 = vpop.eup %5451  ;;  %5471 = vpow2.f32 %v1994_v42  ;;  %2161 = vst [vmem:[#allocation2 + $0x218] sm:$0xff] %v5450_v36  ;;  %v1569_v63 = vrot.slane %v1273_v9, %v5995_v20 }
 0x260   : > { %v1573_v16 = vrot.slane %v1287_v11, %v5995_v20  ;;  %v1794_v5 = vmul.f32 %v1561_v53, %v6239_v49  ;;  %v5454_v0 = vpop.eup %5453  ;;  %5473 = vpow2.f32 %v1996_v54  ;;  %2162 = vst [vmem:[#allocation2 + $0x220] sm:$0xff] %v5452_v27  ;;  %v1577_v28 = vrot.slane %v1289_v55, %v5995_v20  ;;  %2734 = vbcast.lane.b32.xlu0 %v6130_v39, 256 }
 0x261   : > { %v1581_v62 = vrot.slane %v1291_v17, %v5995_v20  ;;  %v1795_v32 = vmul.f32 %v1561_v53, %v6251_v59  ;;  %v5456_v50 = vpop.eup %5455  ;;  %2163 = vst [vmem:[#allocation2 + $0x228] sm:$0xff] %v5454_v0  ;;  %v1796_v18 = vmul.f32 %v1565_v12, %v6239_v49  ;;  %v1998_v14 = vmul.f32 1.442695, %v1790_v4 }
 0x262   : > { %v2000_v9 = vmul.f32 1.442695, %v1791_v33  ;;  %v2002_v11 = vmul.f32 1.442695, %v1792_v21  ;;  %v5458_v23 = vpop.eup %5457  ;;  %2164 = vst [vmem:[#allocation2 + $0x230] sm:$0xff] %v5456_v50  ;;  %v1797_v37 = vmul.f32 %v1565_v12, %v6251_v59  ;;  %v1047_v8 = vcombine.high %v6374_v1, %v6374_v1  ;;  %2760 = vbcast.lane.b32.xlu1 %v6138_v41, 264 }
 0x263   : > { %v2004_v56 = vmul.f32 1.442695, %v1793_v7  ;;  %v1054_v22 = vrot.slane %v6374_v1, %v6069_v3  ;;  %v5460_v30 = vpop.eup %5459  ;;  %2165 = vst [vmem:[#allocation2 + $0x238] sm:$0xff] %v5458_v23  ;;  %v1798_v35 = vmul.f32 %v1569_v63, %v6239_v49  ;;  %v1799_v42 = vmul.f32 %v1569_v63, %v6251_v59 }
 0x264   : > { %5475 = vpow2.f32 %v1998_v14  ;;  %v2006_v45 = vmul.f32 1.442695, %v1794_v5  ;;  %v5462_v13 = vpop.eup %5461  ;;  %2166 = vst [vmem:[#allocation2 + $0x240] sm:$0xff] %v5460_v30  ;;  %v1800_v26 = vmul.f32 %v1573_v16, %v6239_v49  ;;  %v1801_v52 = vmul.f32 %v1573_v16, %v6251_v59  ;;  %2745 = vbcast.lane.b32.xlu0 %v6134_v40, 256 }
 0x265   : > { %5477 = vpow2.f32 %v2000_v9  ;;  %v2008_v54 = vmul.f32 1.442695, %v1795_v32  ;;  %v5464_v53 = vpop.eup %5463  ;;  %2167 = vst [vmem:[#allocation2 + $0x248] sm:$0xff] %v5462_v13  ;;  %v1802_v2 = vmul.f32 %v1577_v28, %v6239_v49  ;;  %v1803_v55 = vmul.f32 %v1577_v28, %v6251_v59 }
 0x266   : > { %5479 = vpow2.f32 %v2002_v11  ;;  %v2010_v17 = vmul.f32 1.442695, %v1796_v18  ;;  %v5466_v12 = vpop.eup %5465  ;;  %2168 = vst [vmem:[#allocation2 + $0x250] sm:$0xff] %v5464_v53  ;;  %v2012_v10 = vmul.f32 1.442695, %v1797_v37  ;;  %v1061_v4 = vrot.slane %v1047_v8, %v6069_v3  ;;  %2771 = vbcast.lane.b32.xlu1 %v6142_v43, 264 }
 0x267   : > { %5481 = vpow2.f32 %v2004_v56  ;;  %v1062_v33 = vcombine.high %v1054_v22, %v1054_v22  ;;  %v5468_v21 = vpop.eup %5467  ;;  %2169 = vst [vmem:[#allocation2 + $0x258] sm:$0xff] %v5466_v12  ;;  %v1804_v36 = vmul.f32 %v1581_v62, %v6239_v49  ;;  %v2014_v7 = vmul.f32 1.442695, %v1798_v35 }
 0x268   : > { %5483 = vpow2.f32 %v2006_v45  ;;  %v1070_v27 = vrot.slane %v1054_v22, %v6069_v3  ;;  %v5470_v63 = vpop.eup %5469  ;;  %2170 = vst [vmem:[#allocation2 + $0x260] sm:$0xff] %v5468_v21  ;;  %v1805_v16 = vmul.f32 %v1581_v62, %v6251_v59  ;;  %v2016_v5 = vmul.f32 1.442695, %v1799_v42  ;;  %2756 = vbcast.lane.b32.xlu0 %v6138_v41, 256 }
 0x269   : > { %5485 = vpow2.f32 %v2008_v54  ;;  %v1084_v0 = vrot.slane %v1062_v33, %v6069_v3  ;;  %v5472_v28 = vpop.eup %5471  ;;  %2171 = vst [vmem:[#allocation2 + $0x268] sm:$0xff] %v5470_v63  ;;  %v2018_v39 = vmul.f32 1.442695, %v1800_v26  ;;  %v1063_v32 = vcombine.high %v1061_v4, %v1061_v4 }
 0x26a   : > { %5487 = vpow2.f32 %v2010_v17  ;;  %v1092_v50 = vcombine.high %v1070_v27, %v1070_v27  ;;  %v5474_v18 = vpop.eup %5473  ;;  %2172 = vst [vmem:[#allocation2 + $0x270] sm:$0xff] %v5472_v28  ;;  %v2020_v14 = vmul.f32 1.442695, %v1801_v52  ;;  %v1077_v9 = vrot.slane %v1061_v4, %v6069_v3  ;;  %v6424_v17 = vpop.f32.mrb[7].mxu0  ;;  %2782 = vbcast.lane.b32.xlu1 %v6146_v44, 264 }
 0x26b   : > { %5489 = vpow2.f32 %v2012_v10  ;;  %v1094_v11 = vcombine.high %v1084_v0, %v1084_v0  ;;  %2173 = vst [vmem:[#allocation2 + $0x278] sm:$0xff] %v5474_v18  ;;  %v2022_v62 = vmul.f32 1.442695, %v1802_v2  ;;  %v1425_v23 = vrot.slane %v1070_v27, %v5995_v20 }
 0x26c   : > { %5491 = vpow2.f32 %v2014_v7  ;;  %v1429_v37 = vrot.slane %v1084_v0, %v5995_v20  ;;  %v2024_v56 = vmul.f32 1.442695, %v1803_v55  ;;  %v2026_v8 = vmul.f32 1.442695, %v1804_v36  ;;  %2767 = vbcast.lane.b32.xlu0 %v6142_v43, 256 }
 0x26d   : > { %5493 = vpow2.f32 %v2016_v5  ;;  %v883_v22 = vand.u32 2147483647, %v6195_v19  ;;  %v2028_v35 = vmul.f32 1.442695, %v1805_v16  ;;  %v1091_v42 = vrot.slane %v1063_v32, %v6069_v3 }
 0x26e   : > { %v5476_v30 = vpop.eup %5475  ;;  %5495 = vpow2.f32 %v2018_v39  ;;  %v1433_v45 = vrot.slane %v1092_v50, %v5995_v20  ;;  %v1093_v13 = vcombine.high %v1077_v9, %v1077_v9  ;;  %v1437_v26 = vrot.slane %v1094_v11, %v5995_v20  ;;  %2793 = vbcast.lane.b32.xlu1 %v6150_v47, 264 }
 0x26f   : > { %v5478_v40 = vpop.eup %5477  ;;  %5497 = vpow2.f32 %v2020_v14  ;;  %2174 = vst [vmem:[#allocation2 + $0x280] sm:$0xff] %v5476_v30  ;;  %v882_v52 = vmul.f32 %v6195_v19, %v6377_v29  ;;  %v1726_v53 = vmul.f32 %v1425_v23, %v6239_v49  ;;  %v1727_v2 = vmul.f32 %v1425_v23, %v6251_v59 }
 0x270   : > { %v5480_v54 = vpop.eup %5479  ;;  %5499 = vpow2.f32 %v2022_v62  ;;  %2175 = vst [vmem:[#allocation2 + $0x288] sm:$0xff] %v5478_v40  ;;  %v1728_v55 = vmul.f32 %v1429_v37, %v6239_v49  ;;  %v1441_v10 = vrot.slane %v1077_v9, %v5995_v20  ;;  %v1729_v41 = vmul.f32 %v1429_v37, %v6251_v59  ;;  %2778 = vbcast.lane.b32.xlu0 %v6146_v44, 256 }
 0x271   : > { %v5482_v12 = vpop.eup %5481  ;;  %5501 = vpow2.f32 %v2024_v56  ;;  %2176 = vst [vmem:[#allocation2 + $0x290] sm:$0xff] %v5480_v54  ;;  %vm6428_vm10 = vcmp.lt.f32.partialorder %v883_v22, 0.0004427343  ;;  %v1095_v4 = vcombine.high %v1091_v42, %v1091_v42  ;;  %v1445_v33 = vrot.slane %v1091_v42, %v5995_v20 }
 0x272   : > { %v5484_v29 = vpop.eup %5483  ;;  %5503 = vpow2.f32 %v2026_v8  ;;  %2177 = vst [vmem:[#allocation2 + $0x298] sm:$0xff] %v5482_v12  ;;  %v1730_v21 = vmul.f32 %v1433_v45, %v6239_v49  ;;  %v1449_v7 = vrot.slane %v1093_v13, %v5995_v20  ;;  %v1731_v27 = vmul.f32 %v1433_v45, %v6251_v59  ;;  %2804 = vbcast.lane.b32.xlu1 %v6162_v6, 264 }
 0x273   : > { %v5486_v36 = vpop.eup %5485  ;;  %5505 = vpow2.f32 %v2028_v35  ;;  %2178 = vst [vmem:[#allocation2 + $0x2a0] sm:$0xff] %v5484_v29  ;;  %v1732_v63 = vmul.f32 %v1437_v26, %v6239_v49  ;;  %v1870_v5 = vmul.f32 1.442695, %v1726_v53  ;;  %v1872_v0 = vmul.f32 1.442695, %v1727_v2 }
 0x274   : > { %v5488_v16 = vpop.eup %5487  ;;  %2179 = vst [vmem:[#allocation2 + $0x2a8] sm:$0xff] %v5486_v36  ;;  %v1874_v28 = vmul.f32 1.442695, %v1728_v55  ;;  %v885_v39 = vsel %vm6428_vm10, %v882_v52, %v6363_v38  ;;  %v1733_v50 = vmul.f32 %v1437_v26, %v6251_v59  ;;  %v1876_v18 = vmul.f32 1.442695, %v1729_v41  ;;  %v6461_v26 = vpop.f32.mrb[7].mxu1 }
 0x275   : > { %v5490_v32 = vpop.eup %5489  ;;  %2180 = vst [vmem:[#allocation2 + $0x2b0] sm:$0xff] %v5488_v16  ;;  %v7336_v14 = vmax.f32 %v6035_v46, 0.0  ;;  %5507 = vpow2.f32 %v6248_v15  ;;  %v1453_v11 = vrot.slane %v1095_v4, %v5995_v20  ;;  %v1734_v62 = vmul.f32 %v1441_v10, %v6239_v49  ;;  %7338 = vst [vmem:[#allocation25_spill] sm:$0xff] %v6461_v26  ;;  %2789 = vbcast.lane.b32.xlu0 %v6150_v47, 256 }
 0x276   : > { %v5492_v43 = vpop.eup %5491  ;;  %2181 = vst [vmem:[#allocation2 + $0x2b8] sm:$0xff] %v5490_v32  ;;  %5509 = vpow2.f32 %v1870_v5  ;;  %v1878_v23 = vmul.f32 1.442695, %v1730_v21  ;;  %v1735_v38 = vmul.f32 %v1441_v10, %v6251_v59  ;;  %v1736_v56 = vmul.f32 %v1445_v33, %v6239_v49  ;;  %3079 = vbcast.lane.b32.xlu1 %v6173_v31, 264 }
 0x277   : > { %v933_v9 = vadd.f32 %v885_v39, %v7336_v14  ;;  %v5494_v37 = vpop.eup %5493  ;;  %2182 = vst [vmem:[#allocation2 + $0x2c0] sm:$0xff] %v5492_v43  ;;  %5511 = vpow2.f32 %v1872_v0  ;;  %v1880_v8 = vmul.f32 1.442695, %v1731_v27  ;;  %v1737_v15 = vmul.f32 %v1445_v33, %v6251_v59 }
 0x278   : > { %v5496_v22 = vpop.eup %5495  ;;  %2183 = vst [vmem:[#allocation2 + $0x2c8] sm:$0xff] %v5494_v37  ;;  %v1738_v30 = vmul.f32 %v1449_v7, %v6239_v49  ;;  %5513 = vpow2.f32 %v1874_v28  ;;  %v1882_v35 = vmul.f32 1.442695, %v1732_v63  ;;  %v1739_v45 = vmul.f32 %v1449_v7, %v6251_v59 }
 0x279   : > { %v5498_v42 = vpop.eup %5497  ;;  %2184 = vst [vmem:[#allocation2 + $0x2d0] sm:$0xff] %v5496_v22  ;;  %5515 = vpow2.f32 %v1876_v18  ;;  %v1884_v40 = vmul.f32 1.442695, %v1733_v50  ;;  %v6458_v13 = vsel %vm813_vm9, %v6035_v46, %v933_v9  ;;  %v1886_v54 = vmul.f32 1.442695, %v1734_v62  ;;  %2800 = vbcast.lane.b32.xlu0 %v6162_v6, 256 }
 0x27a   : > { %7337 = vst [vmem:[#allocation24_spill] sm:$0xff] %v6458_v13  ;;  %v5500_v52 = vpop.eup %5499  ;;  %2185 = vst [vmem:[#allocation2 + $0x2d8] sm:$0xff] %v5498_v42  ;;  %5517 = vpow2.f32 %v1878_v23  ;;  %v1096_v53 = vcombine.high %v6458_v13, %v6458_v13  ;;  %v1103_v2 = vrot.slane %v6458_v13, %v6069_v3  ;;  %v1740_v12 = vmul.f32 %v1453_v11, %v6239_v49 }
 0x27b   : > { %v5502_v55 = vpop.eup %5501  ;;  %2186 = vst [vmem:[#allocation2 + $0x2e0] sm:$0xff] %v5500_v52  ;;  %5519 = vpow2.f32 %v1880_v8  ;;  %v1888_v46 = vmul.f32 1.442695, %v1735_v38  ;;  %v1890_v10 = vmul.f32 1.442695, %v1736_v56  ;;  %v1741_v33 = vmul.f32 %v1453_v11, %v6251_v59  ;;  %3090 = vbcast.lane.b32.xlu1 %v6177_v24, 264 }
 0x27c   : > { %v5504_v44 = vpop.eup %5503  ;;  %2187 = vst [vmem:[#allocation2 + $0x2e8] sm:$0xff] %v5502_v55  ;;  %5521 = vpow2.f32 %v1882_v35  ;;  %v1110_v41 = vrot.slane %v1096_v53, %v6069_v3  ;;  %v1111_v19 = vcombine.high %v1103_v2, %v1103_v2  ;;  %v1119_v29 = vrot.slane %v1103_v2, %v6069_v3 }
 0x27d   : > { %v5506_v4 = vpop.eup %5505  ;;  %2188 = vst [vmem:[#allocation2 + $0x2f0] sm:$0xff] %v5504_v44  ;;  %5523 = vpow2.f32 %v1884_v40  ;;  %v1892_v21 = vmul.f32 1.442695, %v1737_v15  ;;  %v6475_v36 = vrot.slane %v6002_v25, %v6041_v51  ;;  %v1894_v7 = vmul.f32 1.442695, %v1738_v30  ;;  %3075 = vbcast.lane.b32.xlu0 %v6173_v31, 256 }
 0x27e   : > { %2189 = vst [vmem:[#allocation2 + $0x2f8] sm:$0xff] %v5506_v4  ;;  %5525 = vpow2.f32 %v1886_v54  ;;  %v1112_v27 = vcombine.high %v1110_v41, %v1110_v41  ;;  %v1133_v63 = vrot.slane %v1111_v19, %v6069_v3  ;;  %v1896_v5 = vmul.f32 1.442695, %v1739_v45  ;;  %v5679_v4 = vld [vmem:[%s5869_s15] ss:$0 sm:$0xff] }
 0x27f   : > { %v6478_v16 = vpop.eup %5507  ;;  %5527 = vpow2.f32 %v1888_v46  ;;  %v1141_v0 = vcombine.high %v1119_v29, %v1119_v29  ;;  %v6482_v28 = vrot.slane %v6002_v25, %v6050_v57  ;;  %v1898_v39 = vmul.f32 1.442695, %v1740_v12 }
 0x280   : > { %v5510_v47 = vpop.eup %5509  ;;  %5529 = vpow2.f32 %v1890_v10  ;;  %v1143_v32 = vcombine.high %v1133_v63, %v1133_v63  ;;  %v1457_v50 = vrot.slane %v1119_v29, %v5995_v20  ;;  %v1900_v14 = vmul.f32 1.442695, %v1741_v33 }
 0x281   : > { %v5512_v18 = vpop.eup %5511  ;;  %5531 = vpow2.f32 %v1892_v21  ;;  %2110 = vst [vmem:[#allocation2 + $0x80] sm:$0xff] %v5510_v47  ;;  %v1126_v9 = vrot.slane %v1110_v41, %v6069_v3  ;;  %v1461_v43 = vrot.slane %v1133_v63, %v5995_v20  ;;  %v1140_v23 = vrot.slane %v1112_v27, %v6069_v3  ;;  %3086 = vbcast.lane.b32.xlu0 %v6177_v24, 256 }
 0x282   : > { %v6489_v11 = vpop.permute.xlu0 %955  ;;  %v5514_v62 = vpop.eup %5513  ;;  %5533 = vpow2.f32 %v1894_v7  ;;  %2111 = vst [vmem:[#allocation2 + $0x88] sm:$0xff] %v5512_v18  ;;  %v1465_v37 = vrot.slane %v1141_v0, %v5995_v20  ;;  %v6495_v38 = vrot.slane %v6002_v25, %v6057_v61  ;;  %v1469_v8 = vrot.slane %v1143_v32, %v5995_v20 }
 0x283   : > { %v5516_v56 = vpop.eup %5515  ;;  %5535 = vpow2.f32 %v1896_v5  ;;  %2112 = vst [vmem:[#allocation2 + $0x90] sm:$0xff] %v5514_v62  ;;  %v806_v6 = vmax.f32 %v6153_v48, 0.0  ;;  %v886_v22 = vadd.f32 1.0, %v6478_v16  ;;  %v1742_v35 = vmul.f32 %v1457_v50, %v6239_v49  ;;  %980 = vst.msk [vmem:[#allocation4] sm:$0xff] %vm979_vm13, %v6489_v11 }
 0x284   : > { %v6500_v15 = vpop.permute.xlu1 %965  ;;  %v5518_v30 = vpop.eup %5517  ;;  %5537 = vpow2.f32 %v1898_v39  ;;  %2113 = vst [vmem:[#allocation2 + $0x98] sm:$0xff] %v5516_v56  ;;  %v1743_v42 = vmul.f32 %v1457_v50, %v6251_v59  ;;  %v1744_v45 = vmul.f32 %v1461_v43, %v6239_v49  ;;  %v1142_v52 = vcombine.high %v1126_v9, %v1126_v9 }
 0x285   : > { %v5520_v40 = vpop.eup %5519  ;;  %5539 = vpow2.f32 %v1900_v14  ;;  %2114 = vst [vmem:[#allocation2 + $0xa0] sm:$0xff] %v5518_v30  ;;  %v1745_v54 = vmul.f32 %v1461_v43, %v6251_v59  ;;  %v889_v53 = vmul.f32 -0.5, %v6478_v16  ;;  %v1144_v12 = vcombine.high %v1140_v23, %v1140_v23  ;;  %985 = vst.msk [vmem:[#allocation4 + $0x28] sm:$0xff] %vm979_vm13, %v6500_v15 }
 0x286   : > { %v6509_v2 = vpop.permute.xlu0 %963  ;;  %v5522_v55 = vpop.eup %5521  ;;  %2115 = vst [vmem:[#allocation2 + $0xa8] sm:$0xff] %v5520_v40  ;;  %v1473_v46 = vrot.slane %v1126_v9, %v5995_v20  ;;  %v1746_v10 = vmul.f32 %v1465_v37, %v6239_v49  ;;  %v892_v44 = vand.u32 2147483647, %v6478_v16  ;;  %v1477_v19 = vrot.slane %v1140_v23, %v5995_v20 }
 0x287   : > { %v5524_v41 = vpop.eup %5523  ;;  %2116 = vst [vmem:[#allocation2 + $0xb0] sm:$0xff] %v5522_v55  ;;  %v1747_v29 = vmul.f32 %v1465_v37, %v6251_v59  ;;  %v6518_v31 = vadd.f32 %v5679_v4, %v6189_v34  ;;  %v6521_v33 = vadd.f32 %v5679_v4, %v6217_v60  ;;  %v1748_v27 = vmul.f32 %v1469_v8, %v6239_v49 }
 0x288   : > { %v6523_v21 = vpop.permute.xlu1 %2639  ;;  %v5526_v7 = vpop.eup %5525  ;;  %2117 = vst [vmem:[#allocation2 + $0xb8] sm:$0xff] %v5524_v41  ;;  %v1902_v63 = vmul.f32 1.442695, %v1742_v35  ;;  %v1904_v5 = vmul.f32 1.442695, %v1743_v42  ;;  %v1481_v39 = vrot.slane %v1142_v52, %v5995_v20  ;;  %v1749_v32 = vmul.f32 %v1469_v8, %v6251_v59  ;;  %v5681_v41 = vld [vmem:[#allocation5] sm:$0xff] }
 0x289   : > { %v1906_v0 = vmul.f32 1.442695, %v1744_v45  ;;  %v5528_v47 = vpop.eup %5527  ;;  %2118 = vst [vmem:[#allocation2 + $0xc0] sm:$0xff] %v5526_v7  ;;  %v1908_v34 = vmul.f32 1.442695, %v1745_v54  ;;  %5541 = vlog2.f32 %v886_v22  ;;  %v1485_v18 = vrot.slane %v1144_v12, %v5995_v20  ;;  %v7341_v54 = vld [vmem:[#allocation20_spill] sm:$0xff] }
 0x28a   : > { %v958_v50 = vpop.permute.xlu0 %957  ;;  %v5530_v60 = vpop.eup %5529  ;;  %2119 = vst [vmem:[#allocation2 + $0xc8] sm:$0xff] %v5528_v47  ;;  %v1750_v14 = vmul.f32 %v1473_v46, %v6239_v49  ;;  %5543 = vpow2.f32 %v1902_v63  ;;  %v1910_v9 = vmul.f32 1.442695, %v1746_v10  ;;  %v1751_v62 = vmul.f32 %v1473_v46, %v6251_v59  ;;  %3101 = vbcast.lane.b32.xlu1 %v7341_v54, 264  ;;  %v6546_v46 = vld [vmem:[%s5879_s7] sm:$0xff]  ;;  %984 = vst.msk [vmem:[#allocation4 + $0x20] sm:$0xff] %vm979_vm13, %v6509_v2 }
 0x28b   : > { %v5532_v43 = vpop.eup %5531  ;;  %2120 = vst [vmem:[#allocation2 + $0xd0] sm:$0xff] %v5530_v60  ;;  %5545 = vpow2.f32 %v1904_v5  ;;  %v1912_v23 = vmul.f32 1.442695, %v1747_v29  ;;  %v890_v37 = vadd.f32 1.0, %v889_v53  ;;  %v1752_v22 = vmul.f32 %v1477_v19, %v6239_v49  ;;  %981 = vst.msk [vmem:[#allocation4 + $0x8] sm:$0xff] %vm979_vm13, %v958_v50  ;;  %3097 = vbcast.lane.b32.xlu0 %v7341_v54, 256 }
 0x28c   : > { %v6531_v56 = vpop.permute.xlu1 %2650  ;;  %v5534_v8 = vpop.eup %5533  ;;  %2121 = vst [vmem:[#allocation2 + $0xd8] sm:$0xff] %v5532_v43  ;;  %5547 = vpow2.f32 %v1906_v0  ;;  %v1914_v30 = vmul.f32 1.442695, %v1748_v27  ;;  %vm6534_vm11 = vcmp.lt.f32.partialorder %v892_v44, 0.0004427343  ;;  %v1753_v45 = vmul.f32 %v1477_v19, %v6251_v59  ;;  %v7342_v19 = vld [vmem:[#allocation19_spill] sm:$0xff] }
 0x28d   : > { %v5536_v42 = vpop.eup %5535  ;;  %2122 = vst [vmem:[#allocation2 + $0xe0] sm:$0xff] %v5534_v8  ;;  %v1754_v40 = vmul.f32 %v1481_v39, %v6239_v49  ;;  %5549 = vpow2.f32 %v1908_v34  ;;  %v1916_v52 = vmul.f32 1.442695, %v1749_v32  ;;  %v1755_v12 = vmul.f32 %v1481_v39, %v6251_v59  ;;  %v6555_v59 = vld [vmem:[%s5879_s7 + $0x8] sm:$0xff]  ;;  %v7343_v0 = vld [vmem:[#allocation23_spill] sm:$0xff] }
 0x28e   : > { %v6542_v53 = vpop.permute.xlu0 %2635  ;;  %v5538_v55 = vpop.eup %5537  ;;  %2123 = vst [vmem:[#allocation2 + $0xe8] sm:$0xff] %v5536_v42  ;;  %v1756_v10 = vmul.f32 %v6546_v46, %v1485_v18  ;;  %5551 = vpow2.f32 %v1910_v9  ;;  %v1918_v44 = vmul.f32 1.442695, %v1750_v14  ;;  %v1920_v24 = vmul.f32 1.442695, %v1751_v62  ;;  %3112 = vbcast.lane.b32.xlu1 %v7343_v0, 264 }
 0x28f   : > { %v5540_v49 = vpop.eup %5539  ;;  %2124 = vst [vmem:[#allocation2 + $0xf0] sm:$0xff] %v5538_v55  ;;  %5553 = vpow2.f32 %v1912_v23  ;;  %v2222_v29 = vmul.f32 %v5681_v41, %v7342_v19  ;;  %v1757_v7 = vmul.f32 %v6555_v59, %v1485_v18  ;;  %v1922_v27 = vmul.f32 1.442695, %v1752_v22  ;;  %3108 = vbcast.lane.b32.xlu0 %v7343_v0, 256 }
 0x290   : > { %v6552_v4 = vpop.permute.xlu1 %2661  ;;  %2125 = vst [vmem:[#allocation2 + $0xf8] sm:$0xff] %v5540_v49  ;;  %5555 = vpow2.f32 %v1914_v30  ;;  %v891_v63 = vmul.f32 %v6478_v16, %v890_v37  ;;  %v1924_v5 = vmul.f32 1.442695, %v1753_v45  ;;  %v1926_v11 = vmul.f32 1.442695, %v1754_v40 }
 0x291   : > { %5557 = vpow2.f32 %v1916_v52  ;;  %v2245_v47 = vrot.slane %v2222_v29, %v6069_v3  ;;  %v2238_v39 = vcombine.high %v2222_v29, %v2222_v29  ;;  %v1928_v32 = vmul.f32 1.442695, %v1755_v12 }
 0x292   : > { %v2647_v16 = vpop.permute.xlu0 %2646  ;;  %5559 = vpow2.f32 %v1918_v44  ;;  %v1930_v34 = vmul.f32 1.442695, %v1756_v10  ;;  %v1932_v9 = vmul.f32 1.442695, %v1757_v7  ;;  %v833_v62 = vand.u32 2147483647, %v6518_v31 }
 0x293   : > { %v5542_v15 = vpop.eup %5541  ;;  %5561 = vpow2.f32 %v1920_v24  ;;  %v2261_v2 = vrot.slane %v2245_v47, %v6069_v3  ;;  %v2253_v60 = vcombine.high %v2245_v47, %v2245_v47  ;;  %v6573_v18 = vrot.slane %v2238_v39, %v6069_v3  ;;  %3123 = vbcast.lane.b32.xlu1 %v6475_v36, 264  ;;  %3119 = vbcast.lane.b32.xlu0 %v6475_v36, 256 }
 0x294   : > { %v6570_v50 = vpop.permute.xlu1 %2672  ;;  %v5544_v14 = vpop.eup %5543  ;;  %5563 = vpow2.f32 %v1922_v27  ;;  %v888_v43 = vmul.f32 0.6931472, %v5542_v15  ;;  %v834_v40 = vand.u32 2147483647, %v6521_v33  ;;  %vm817_vm14 = vcmp.ne.f32.partialorder %v6518_v31, %v6518_v31 }
 0x295   : > { %v5546_v23 = vpop.eup %5545  ;;  %5565 = vpow2.f32 %v1924_v5  ;;  %2126 = vst [vmem:[#allocation2 + $0x100] sm:$0xff] %v5544_v14  ;;  %v3337_v37 = vrot.slane %v2261_v2, %v5995_v20  ;;  %v2275_v8 = vrot.slane %v2253_v60, %v6069_v3  ;;  %v2283_v22 = vcombine.high %v2261_v2, %v2261_v2 }
 0x296   : > { %v2658_v30 = vpop.permute.xlu0 %2657  ;;  %v5548_v42 = vpop.eup %5547  ;;  %5567 = vpow2.f32 %v1926_v11  ;;  %2127 = vst [vmem:[#allocation2 + $0x108] sm:$0xff] %v5546_v23  ;;  %v894_v45 = vsel %vm6534_vm11, %v891_v63, %v888_v43  ;;  %v6585_v52 = vrot.slane %v6573_v18, %v6069_v3  ;;  %v841_v5 = vsub.f32 0.0, %v833_v62 }
 0x297   : > { %v5550_v54 = vpop.eup %5549  ;;  %5569 = vpow2.f32 %v1928_v32  ;;  %2128 = vst [vmem:[#allocation2 + $0x110] sm:$0xff] %v5548_v42  ;;  %v934_v55 = vadd.f32 %v894_v45, %v806_v6  ;;  %v3655_v12 = vmul.f32 %v3337_v37, %v6523_v21  ;;  %v3341_v10 = vrot.slane %v2275_v8, %v5995_v20  ;;  %3134 = vbcast.lane.b32.xlu1 %v6482_v28, 264 }
 0x298   : > { %v2684_v44 = vpop.permute.xlu1 %2683  ;;  %v5552_v49 = vpop.eup %5551  ;;  %5571 = vpow2.f32 %v1930_v34  ;;  %2129 = vst [vmem:[#allocation2 + $0x118] sm:$0xff] %v5550_v54  ;;  %v3654_v35 = vmul.f32 %v3337_v37, %v6542_v53  ;;  %v3345_v24 = vrot.slane %v2283_v22, %v5995_v20  ;;  %v2285_v41 = vcombine.high %v2275_v8, %v2275_v8  ;;  %3130 = vbcast.lane.b32.xlu0 %v6482_v28, 256  ;;  %v7345_v28 = vld [vmem:[#allocation17_spill] sm:$0xff] }
 0x299   : > { %v5554_v19 = vpop.eup %5553  ;;  %5573 = vpow2.f32 %v1932_v9  ;;  %2130 = vst [vmem:[#allocation2 + $0x120] sm:$0xff] %v5552_v49  ;;  %v6597_v6 = vsel %vm814_vm12, %v6153_v48, %v934_v55  ;;  %3783 = vst [vmem:[#allocation3 + $0x8] sm:$0xff] %v3655_v12  ;;  %v3657_v21 = vmul.f32 %v3341_v10, %v6531_v56  ;;  %v3656_v53 = vmul.f32 %v3341_v10, %v2647_v16 }
 0x29a   : > { %7344 = vst [vmem:[#allocation20_spill] sm:$0xff] %v6597_v6  ;;  %v2669_v29 = vpop.permute.xlu0 %2668  ;;  %v5556_v7 = vpop.eup %5555  ;;  %2131 = vst [vmem:[#allocation2 + $0x128] sm:$0xff] %v5554_v19  ;;  %v1145_v27 = vcombine.high %v6597_v6, %v6597_v6  ;;  %v1152_v63 = vrot.slane %v6597_v6, %v6069_v3  ;;  %v3659_v48 = vmul.f32 %v3345_v24, %v6552_v4  ;;  %v842_v47 = vsub.f32 0.0, %v834_v40 }
 0x29b   : > { %3782 = vst [vmem:[#allocation3] sm:$0xff] %v3654_v35  ;;  %v5558_v0 = vpop.eup %5557  ;;  %2132 = vst [vmem:[#allocation2 + $0x130] sm:$0xff] %v5556_v7  ;;  %v3349_v36 = vrot.slane %v2285_v41, %v5995_v20  ;;  %v3658_v56 = vmul.f32 %v3345_v24, %v2658_v30  ;;  %v3353_v16 = vrot.slane %v6585_v52, %v5995_v20  ;;  %3145 = vbcast.lane.b32.xlu1 %v6495_v38, 264  ;;  %v7346_v41 = vld [vmem:[#allocation18_spill] sm:$0xff] }
 0x29c   : > { %3785 = vst [vmem:[#allocation3 + $0x18] sm:$0xff] %v3657_v21  ;;  %3784 = vst [vmem:[#allocation3 + $0x10] sm:$0xff] %v3656_v53  ;;  %v6610_v39 = vpop.permute.xlu1 %2694  ;;  %v5560_v11 = vpop.eup %5559  ;;  %v1159_v32 = vrot.slane %v1145_v27, %v6069_v3  ;;  %v1160_v34 = vcombine.high %v1152_v63, %v1152_v63  ;;  %v1168_v4 = vrot.slane %v1152_v63, %v6069_v3  ;;  %v855_v42 = vmul.f32 1.442695, %v841_v5  ;;  %v7347_v63 = vld [vmem:[#allocation11_spill] sm:$0xff] }
 0x29d   : > { %2133 = vst [vmem:[#allocation2 + $0x138] sm:$0xff] %v5558_v0  ;;  %3787 = vst [vmem:[#allocation3 + $0x28] sm:$0xff] %v3659_v48  ;;  %v2254_v15 = vcombine.high %v6573_v18, %v6573_v18  ;;  %v5562_v2 = vpop.eup %5561  ;;  %v3661_v60 = vmul.f32 %v3349_v36, %v6570_v50  ;;  %v3663_v14 = vmul.f32 %v3353_v16, %v2684_v44  ;;  %v857_v44 = vmul.f32 1.442695, %v842_v47 }
 0x29e   : > { %2134 = vst [vmem:[#allocation2 + $0x140] sm:$0xff] %v5560_v11  ;;  %3786 = vst [vmem:[#allocation3 + $0x20] sm:$0xff] %v3658_v56  ;;  %v3660_v9 = vmul.f32 %v3349_v36, %v2669_v29  ;;  %v2680_v43 = vpop.permute.xlu0 %2679  ;;  %v5564_v62 = vpop.eup %5563  ;;  %v1161_v23 = vcombine.high %v1159_v32, %v1159_v32  ;;  %v1175_v37 = vrot.slane %v1159_v32, %v6069_v3  ;;  %3141 = vbcast.lane.b32.xlu0 %v6495_v38, 256  ;;  %v5683_v11 = vld [vmem:[#allocation5 + $0x20] sm:$0xff] }
 0x29f   : > { %2135 = vst [vmem:[#allocation2 + $0x148] sm:$0xff] %v5562_v2  ;;  %v1182_v8 = vrot.slane %v1160_v34, %v6069_v3  ;;  %v1190_v18 = vcombine.high %v1168_v4, %v1168_v4  ;;  %v5566_v22 = vpop.eup %5565  ;;  %2136 = vst [vmem:[#allocation2 + $0x150] sm:$0xff] %v5564_v62  ;;  %v1489_v30 = vrot.slane %v1168_v4, %v5995_v20  ;;  %5575 = vpow2.f32 %v855_v42  ;;  %v7348_v32 = vld [vmem:[#allocation21_spill] sm:$0xff] }
 0x2a0   : > { %v3150_v50 = vrot.slane %v6002_v25, %v7345_v28  ;;  %3789 = vst [vmem:[#allocation3 + $0x38] sm:$0xff] %v3661_v60  ;;  %3791 = vst [vmem:[#allocation3 + $0x48] sm:$0xff] %v3663_v14  ;;  %v3662_v45 = vmul.f32 %v3353_v16, %v2680_v43  ;;  %v6624_v40 = vpop.permute.xlu1 %2705  ;;  %v5568_v54 = vpop.eup %5567  ;;  %v1189_v55 = vrot.slane %v1161_v23, %v6069_v3  ;;  %5577 = vpow2.f32 %v857_v44 }
 0x2a1   : > { %3788 = vst [vmem:[#allocation3 + $0x30] sm:$0xff] %v3660_v9  ;;  %2137 = vst [vmem:[#allocation2 + $0x158] sm:$0xff] %v5566_v22  ;;  %v1192_v12 = vcombine.high %v1182_v8, %v1182_v8  ;;  %v1493_v10 = vrot.slane %v1182_v8, %v5995_v20  ;;  %v5570_v49 = vpop.eup %5569  ;;  %v1191_v35 = vcombine.high %v1175_v37, %v1175_v37 }
 0x2a2   : > { %2138 = vst [vmem:[#allocation2 + $0x160] sm:$0xff] %v5568_v54  ;;  %v1497_v24 = vrot.slane %v1190_v18, %v5995_v20  ;;  %3156 = vbcast.lane.b32.xlu1 %v3150_v50, 264  ;;  %v6630_v25 = vrot.slane %v2254_v15, %v6069_v3  ;;  %3790 = vst [vmem:[#allocation3 + $0x40] sm:$0xff] %v3662_v45  ;;  %v6634_v19 = vrot.slane %v7346_v41, %v5995_v20  ;;  %v6636_v21 = vpop.permute.xlu0 %2690  ;;  %v5572_v53 = vpop.eup %5571 }
 0x2a3   : > { %2139 = vst [vmem:[#allocation2 + $0x168] sm:$0xff] %v5570_v49  ;;  %v1193_v29 = vcombine.high %v1189_v55, %v1189_v55  ;;  %v1501_v7 = vrot.slane %v1192_v12, %v5995_v20  ;;  %v1758_v27 = vmul.f32 %v6546_v46, %v1489_v30  ;;  %v6643_v5 = vrot.slane %v7346_v41, %v7347_v63  ;;  %v5574_v48 = vpop.eup %5573 }
 0x2a4   : > { %2140 = vst [vmem:[#allocation2 + $0x170] sm:$0xff] %v5572_v53  ;;  %v1759_v0 = vmul.f32 %v6555_v59, %v1489_v30  ;;  %v1760_v47 = vmul.f32 %v6546_v46, %v1493_v10  ;;  %v1761_v36 = vmul.f32 %v6555_v59, %v1493_v10  ;;  %v6648_v56 = vpop.permute.xlu1 %2716  ;;  %2141 = vst [vmem:[#allocation2 + $0x178] sm:$0xff] %v5574_v48  ;;  %3152 = vbcast.lane.b32.xlu0 %v3150_v50, 256 }
 0x2a5   : > { %v1505_v16 = vrot.slane %v1175_v37, %v5995_v20  ;;  %v1762_v38 = vmul.f32 %v6546_v46, %v1497_v24  ;;  %v6653_v34 = vmul.f32 %v5683_v11, %v7348_v32  ;;  %v1509_v4 = vrot.slane %v1189_v55, %v5995_v20 }
 0x2a6   : > { %v1513_v15 = vrot.slane %v1191_v35, %v5995_v20  ;;  %v1763_v2 = vmul.f32 %v6555_v59, %v1497_v24  ;;  %959 = vrot.lane.b32.xlu1 %v7346_v41, %s5774_s23  ;;  %v3357_v60 = vrot.slane %v6630_v25, %v5995_v20  ;;  %v2702_v14 = vpop.permute.xlu0 %2701  ;;  %v1517_v9 = vrot.slane %v1193_v29, %v5995_v20  ;;  %v7349_v35 = vld [vmem:[#allocation22_spill] sm:$0xff] }
 0x2a7   : > { %v1764_v43 = vmul.f32 %v6546_v46, %v1501_v7  ;;  %v1765_v62 = vmul.f32 %v6555_v59, %v1501_v7  ;;  %v1934_v23 = vmul.f32 1.442695, %v1758_v27  ;;  %v1936_v37 = vmul.f32 1.442695, %v1759_v0  ;;  %v7350_v27 = vld [vmem:[#allocation12_spill] sm:$0xff] }
 0x2a8   : > { %v1938_v8 = vmul.f32 1.442695, %v1760_v47  ;;  %v1940_v18 = vmul.f32 1.442695, %v1761_v36  ;;  %v3665_v22 = vmul.f32 %v3357_v60, %v6610_v39  ;;  %v6666_v30 = vpop.permute.xlu1 %2991  ;;  %v1766_v42 = vmul.f32 %v6546_v46, %v1505_v16  ;;  %967 = vrot.lane.b32.xlu0 %v7349_v35, %s5774_s23 }
 0x2a9   : > { %5579 = vpow2.f32 %v1934_v23  ;;  %v1942_v45 = vmul.f32 1.442695, %v1762_v38  ;;  %v2284_v54 = vcombine.high %v6585_v52, %v6585_v52  ;;  %v1767_v55 = vmul.f32 %v6555_v59, %v1505_v16  ;;  %v6688_v47 = vpop.eup %5575 }
 0x2aa   : > { %v1768_v12 = vmul.f32 %v6546_v46, %v1509_v4  ;;  %5581 = vpow2.f32 %v1936_v37  ;;  %v1944_v50 = vmul.f32 1.442695, %v1763_v2  ;;  %961 = vrot.lane.b32.xlu1 %v6424_v17, %s5774_s23  ;;  %3793 = vst [vmem:[#allocation3 + $0x58] sm:$0xff] %v3665_v22  ;;  %v2713_v39 = vpop.permute.xlu0 %2712  ;;  %v1769_v10 = vmul.f32 %v6555_v59, %v1509_v4  ;;  %v6694_v32 = vpop.eup %5577 }
 0x2ab   : > { %v1770_v44 = vmul.f32 %v6546_v46, %v1513_v15  ;;  %5583 = vpow2.f32 %v1938_v8  ;;  %v1946_v49 = vmul.f32 1.442695, %v1764_v43  ;;  %v1771_v52 = vmul.f32 %v6555_v59, %v1513_v15 }
 0x2ac   : > { %v1772_v24 = vmul.f32 %v6546_v46, %v1517_v9  ;;  %5585 = vpow2.f32 %v1940_v18  ;;  %v1948_v53 = vmul.f32 1.442695, %v1765_v62  ;;  %v1773_v29 = vmul.f32 %v6555_v59, %v1517_v9  ;;  %v6686_v0 = vpop.permute.xlu1 %3002  ;;  %2811 = vbcast.lane.b32.xlu0 %v6634_v19, 256 }
 0x2ad   : > { %5587 = vpow2.f32 %v1942_v45  ;;  %v1950_v7 = vmul.f32 1.442695, %v1766_v42  ;;  %v6684_v48 = vrot.slane %v7346_v41, %v7350_v27  ;;  %v1952_v36 = vmul.f32 1.442695, %v1767_v55 }
 0x2ae   : > { %5589 = vpow2.f32 %v1944_v50  ;;  %v1954_v16 = vmul.f32 1.442695, %v1768_v12  ;;  %969 = vrot.lane.b32.xlu1 %v6461_v26, %s5774_s23  ;;  %v2441_v38 = vrot.slane %v6653_v34, %v6069_v3  ;;  %v2988_v11 = vpop.permute.xlu0 %2987  ;;  %v1956_v4 = vmul.f32 1.442695, %v1769_v10 }
 0x2af   : > { %5591 = vpow2.f32 %v1946_v49  ;;  %v1958_v15 = vmul.f32 1.442695, %v1770_v44  ;;  %v3361_v2 = vrot.slane %v2284_v54, %v5995_v20  ;;  %v1960_v9 = vmul.f32 1.442695, %v1771_v52 }
 0x2b0   : > { %5593 = vpow2.f32 %v1948_v53  ;;  %v1962_v43 = vmul.f32 1.442695, %v1772_v24  ;;  %v3664_v62 = vmul.f32 %v3357_v60, %v6636_v21  ;;  %v1964_v23 = vmul.f32 1.442695, %v1773_v29  ;;  %2822 = vbcast.lane.b32.xlu0 %v6643_v5, 256 }
 0x2b1   : > { %5595 = vpow2.f32 %v1950_v7  ;;  %v3667_v37 = vmul.f32 %v3361_v2, %v6624_v40  ;;  %v2286_v8 = vcombine.high %v6630_v25, %v6630_v25  ;;  %v913_v18 = vadd.f32 1.0, %v6688_v47  ;;  %v3014_v25 = vpop.permute.xlu1 %3013 }
 0x2b2   : > { %5597 = vpow2.f32 %v1952_v36  ;;  %3792 = vst [vmem:[#allocation3 + $0x50] sm:$0xff] %v3664_v62  ;;  %2815 = vbcast.lane.b32.xlu1 %v6634_v19, 264  ;;  %v3666_v22 = vmul.f32 %v3361_v2, %v2702_v14  ;;  %v2457_v42 = vrot.slane %v2441_v38, %v6069_v3  ;;  %v916_v21 = vmul.f32 -0.5, %v6688_v47  ;;  %v2999_v54 = vpop.permute.xlu0 %2998 }
 0x2b3   : > { %v5580_v45 = vpop.eup %5579  ;;  %5599 = vpow2.f32 %v1954_v16  ;;  %3795 = vst [vmem:[#allocation3 + $0x68] sm:$0xff] %v3667_v37  ;;  %v3365_v60 = vrot.slane %v2286_v8, %v5995_v20  ;;  %v2449_v40 = vcombine.high %v2441_v38, %v2441_v38  ;;  %v922_v19 = vadd.f32 1.0, %v6694_v32 }
 0x2b4   : > { %v5582_v55 = vpop.eup %5581  ;;  %5601 = vpow2.f32 %v1956_v4  ;;  %2142 = vst [vmem:[#allocation2 + $0x180] sm:$0xff] %v5580_v45  ;;  %3794 = vst [vmem:[#allocation3 + $0x60] sm:$0xff] %v3666_v22  ;;  %v3465_v14 = vrot.slane %v2457_v42, %v5995_v20  ;;  %v2479_v12 = vcombine.high %v2457_v42, %v2457_v42  ;;  %2833 = vbcast.lane.b32.xlu0 %v6684_v48, 256  ;;  %v5684_v45 = vld [vmem:[#allocation5 + $0x8] sm:$0xff] }
 0x2b5   : > { %v5584_v50 = vpop.eup %5583  ;;  %5603 = vpow2.f32 %v1958_v15  ;;  %2143 = vst [vmem:[#allocation2 + $0x188] sm:$0xff] %v5582_v55  ;;  %v3669_v10 = vmul.f32 %v3365_v60, %v6648_v56  ;;  %v3668_v44 = vmul.f32 %v3365_v60, %v2713_v39  ;;  %v2471_v49 = vrot.slane %v2449_v40, %v6069_v3 }
 0x2b6   : > { %v5586_v52 = vpop.eup %5585  ;;  %5605 = vpow2.f32 %v1960_v9  ;;  %2144 = vst [vmem:[#allocation2 + $0x190] sm:$0xff] %v5584_v50  ;;  %2826 = vbcast.lane.b32.xlu1 %v6643_v5, 264  ;;  %v3719_v24 = vmul.f32 %v3465_v14, %v6666_v30  ;;  %v3718_v53 = vmul.f32 %v3465_v14, %v2988_v11  ;;  %v3473_v29 = vrot.slane %v2479_v12, %v5995_v20  ;;  %v7351_v30 = vld [vmem:[#allocation13_spill] sm:$0xff] }
 0x2b7   : > { %v5588_v7 = vpop.eup %5587  ;;  %5607 = vpow2.f32 %v1962_v43  ;;  %2145 = vst [vmem:[#allocation2 + $0x198] sm:$0xff] %v5586_v52  ;;  %3797 = vst [vmem:[#allocation3 + $0x78] sm:$0xff] %v3669_v10  ;;  %v3469_v56 = vrot.slane %v2471_v49, %v5995_v20  ;;  %v2481_v39 = vcombine.high %v2471_v49, %v2471_v49  ;;  %v2434_v36 = vcombine.high %v6653_v34, %v6653_v34  ;;  %v3025_v34 = vpop.permute.xlu1 %3024  ;;  %v5685_v49 = vld [vmem:[#allocation5 + $0x28] sm:$0xff] }
 0x2b8   : > { %3796 = vst [vmem:[#allocation3 + $0x70] sm:$0xff] %v3668_v44  ;;  %v5590_v16 = vpop.eup %5589  ;;  %5609 = vpow2.f32 %v1964_v23  ;;  %2146 = vst [vmem:[#allocation2 + $0x1a0] sm:$0xff] %v5588_v7  ;;  %v925_v5 = vmul.f32 -0.5, %v6694_v32  ;;  %v2842_v38 = vrot.slane %v7346_v41, %v7351_v30  ;;  %v3723_v11 = vmul.f32 %v3473_v29, %v3014_v25  ;;  %v3010_v43 = vpop.permute.xlu0 %3009 }
 0x2b9   : > { %3847 = vst [vmem:[#allocation3 + $0x208] sm:$0xff] %v3719_v24  ;;  %3846 = vst [vmem:[#allocation3 + $0x200] sm:$0xff] %v3718_v53  ;;  %v5592_v4 = vpop.eup %5591  ;;  %5611 = vlog2.f32 %v913_v18  ;;  %v3721_v15 = vmul.f32 %v3469_v56, %v6686_v0  ;;  %v3720_v2 = vmul.f32 %v3469_v56, %v2999_v54  ;;  %v3477_v9 = vrot.slane %v2481_v39, %v5995_v20 }
 0x2ba   : > { %2147 = vst [vmem:[#allocation2 + $0x1a8] sm:$0xff] %v5590_v16  ;;  %v5594_v62 = vpop.eup %5593  ;;  %2148 = vst [vmem:[#allocation2 + $0x1b0] sm:$0xff] %v5592_v4  ;;  %v919_v23 = vand.u32 2147483647, %v6688_v47  ;;  %5613 = vlog2.f32 %v922_v19  ;;  %2837 = vbcast.lane.b32.xlu1 %v6684_v48, 264  ;;  %v3722_v37 = vmul.f32 %v3473_v29, %v3010_v43  ;;  %v2448_v8 = vrot.slane %v2434_v36, %v6069_v3 }
 0x2bb   : > { %3851 = vst [vmem:[#allocation3 + $0x228] sm:$0xff] %v3723_v11  ;;  %v5596_v22 = vpop.eup %5595  ;;  %2149 = vst [vmem:[#allocation2 + $0x1b8] sm:$0xff] %v5594_v62  ;;  %v917_v18 = vadd.f32 1.0, %v916_v21  ;;  %v928_v0 = vand.u32 2147483647, %v6694_v32  ;;  %2844 = vbcast.lane.b32.xlu0 %v2842_v38, 256  ;;  %v3725_v42 = vmul.f32 %v3477_v9, %v3025_v34  ;;  %v2223_v60 = vmul.f32 %v5684_v45, %v6374_v1  ;;  %v3036_v12 = vpop.permute.xlu1 %3035 }
 0x2bc   : > { %3849 = vst [vmem:[#allocation3 + $0x218] sm:$0xff] %v3721_v15  ;;  %3848 = vst [vmem:[#allocation3 + $0x210] sm:$0xff] %v3720_v2  ;;  %v5598_v40 = vpop.eup %5597  ;;  %v809_v48 = vmax.f32 %v6518_v31, 0.0  ;;  %v926_v25 = vadd.f32 1.0, %v925_v5  ;;  %v6731_v54 = vrot.slane %v2448_v8, %v6069_v3  ;;  %v2450_v55 = vcombine.high %v2448_v8, %v2448_v8  ;;  %v3021_v1 = vpop.permute.xlu0 %3020 }
 0x2bd   : > { %2150 = vst [vmem:[#allocation2 + $0x1c0] sm:$0xff] %v5596_v22  ;;  %3850 = vst [vmem:[#allocation3 + $0x220] sm:$0xff] %v3722_v37  ;;  %v5600_v21 = vpop.eup %5599  ;;  %v810_v19 = vmax.f32 %v6521_v33, 0.0  ;;  %v2853_v14 = vrot.slane %v7346_v41, %v6041_v51  ;;  %v2294_v50 = vrot.slane %v2223_v60, %v6069_v3  ;;  %v2287_v10 = vcombine.high %v2223_v60, %v2223_v60 }
 0x2be   : > { %2151 = vst [vmem:[#allocation2 + $0x1c8] sm:$0xff] %v5598_v40  ;;  %3853 = vst [vmem:[#allocation3 + $0x238] sm:$0xff] %v3725_v42  ;;  %v5602_v44 = vpop.eup %5601  ;;  %vm6739_vm15 = vcmp.lt.f32.partialorder %v919_v23, 0.0004427343  ;;  %2848 = vbcast.lane.b32.xlu1 %v2842_v38, 264  ;;  %v3481_v52 = vrot.slane %v6731_v54, %v5995_v20  ;;  %v3724_v24 = vmul.f32 %v3477_v9, %v3021_v1 }
 0x2bf   : > { %2152 = vst [vmem:[#allocation2 + $0x1d0] sm:$0xff] %v5600_v21  ;;  %v6746_v53 = vrot.slane %v2450_v55, %v6069_v3  ;;  %v5604_v29 = vpop.eup %5603  ;;  %2153 = vst [vmem:[#allocation2 + $0x1d8] sm:$0xff] %v5602_v44  ;;  %v918_v7 = vmul.f32 %v6688_v47, %v917_v18  ;;  %vm818_vm0 = vcmp.ne.f32.partialorder %v6521_v33, %v6521_v33  ;;  %vm6751_vm1 = vcmp.lt.f32.partialorder %v928_v0, 0.0004427343  ;;  %v3047_v2 = vpop.permute.xlu1 %3046 }
 0x2c0   : > { %2855 = vbcast.lane.b32.xlu0 %v2853_v14, 256  ;;  %v2302_v39 = vcombine.high %v2294_v50, %v2294_v50  ;;  %v2301_v36 = vrot.slane %v2287_v10, %v6069_v3  ;;  %v5606_v16 = vpop.eup %5605  ;;  %2154 = vst [vmem:[#allocation2 + $0x1e0] sm:$0xff] %v5604_v29  ;;  %v927_v5 = vmul.f32 %v6694_v32, %v926_v25  ;;  %3852 = vst [vmem:[#allocation3 + $0x230] sm:$0xff] %v3724_v24  ;;  %v3032_v34 = vpop.permute.xlu0 %3031 }
 0x2c1   : > { %v2864_v38 = vrot.slane %v7346_v41, %v6050_v57  ;;  %v3727_v11 = vmul.f32 %v3481_v52, %v3036_v12  ;;  %v3485_v47 = vrot.slane %v6746_v53, %v5995_v20  ;;  %v5608_v4 = vpop.eup %5607  ;;  %2155 = vst [vmem:[#allocation2 + $0x1e8] sm:$0xff] %v5606_v16  ;;  %v2875_v15 = vrot.slane %v7346_v41, %v6057_v61 }
 0x2c2   : > { %v6765_v9 = vrot.slane %v7346_v41, %v7345_v28  ;;  %v6769_v32 = vrot.slane %v7349_v35, %v5995_v20  ;;  %v2310_v43 = vrot.slane %v2294_v50, %v6069_v3  ;;  %v5610_v62 = vpop.eup %5609  ;;  %2156 = vst [vmem:[#allocation2 + $0x1f0] sm:$0xff] %v5608_v4  ;;  %2859 = vbcast.lane.b32.xlu1 %v2853_v14, 264 }
 0x2c3   : > { %3855 = vst [vmem:[#allocation3 + $0x248] sm:$0xff] %v3727_v11  ;;  %v3729_v23 = vmul.f32 %v3485_v47, %v3047_v2  ;;  %v3726_v37 = vmul.f32 %v3481_v52, %v3032_v34  ;;  %v2480_v8 = vcombine.high %v6731_v54, %v6731_v54  ;;  %v2324_v22 = vrot.slane %v2302_v39, %v6069_v3  ;;  %v5612_v41 = vpop.eup %5611  ;;  %v3058_v29 = vpop.permute.xlu1 %3057 }
 0x2c4   : > { %2157 = vst [vmem:[#allocation2 + $0x1f8] sm:$0xff] %v5610_v62  ;;  %2866 = vbcast.lane.b32.xlu0 %v2864_v38, 256  ;;  %v6777_v18 = vrot.slane %v7349_v35, %v7347_v63  ;;  %v6781_v0 = vrot.slane %v7349_v35, %v7350_v27  ;;  %v6785_v42 = vrot.slane %v7349_v35, %v7351_v30  ;;  %v5614_v60 = vpop.eup %5613  ;;  %v915_v40 = vmul.f32 0.6931472, %v5612_v41  ;;  %v3043_v39 = vpop.permute.xlu0 %3042 }
 0x2c5   : > { %v2303_v45 = vcombine.high %v2301_v36, %v2301_v36  ;;  %3857 = vst [vmem:[#allocation3 + $0x258] sm:$0xff] %v3729_v23  ;;  %3854 = vst [vmem:[#allocation3 + $0x240] sm:$0xff] %v3726_v37  ;;  %v2482_v25 = vcombine.high %v6746_v53, %v6746_v53  ;;  %v6791_v54 = vrot.slane %v7349_v35, %v6041_v51  ;;  %v924_v21 = vmul.f32 0.6931472, %v5614_v60 }
 0x2c6   : > { %v6795_v55 = vrot.slane %v7349_v35, %v6050_v57  ;;  %v2332_v14 = vcombine.high %v2310_v43, %v2310_v43  ;;  %v2317_v12 = vrot.slane %v2301_v36, %v6069_v3  ;;  %v6800_v1 = vrot.slane %v7349_v35, %v6057_v61  ;;  %2870 = vbcast.lane.b32.xlu1 %v2864_v38, 264 }
 0x2c7   : > { %v921_v50 = vsel %vm6739_vm15, %v918_v7, %v915_v40  ;;  %v3489_v10 = vrot.slane %v2480_v8, %v5995_v20  ;;  %v6806_v44 = vrot.slane %v2310_v43, %v5995_v20  ;;  %v2334_v52 = vcombine.high %v2324_v22, %v2324_v22  ;;  %v3069_v43 = vpop.permute.xlu1 %3068 }
 0x2c8   : > { %v937_v24 = vadd.f32 %v921_v50, %v809_v48  ;;  %v930_v53 = vsel %vm6751_vm1, %v927_v5, %v924_v21  ;;  %2877 = vbcast.lane.b32.xlu0 %v2875_v15, 256  ;;  %v2331_v36 = vrot.slane %v2303_v45, %v6069_v3  ;;  %v6814_v7 = vmul.f32 %v5685_v49, %v6265_v58  ;;  %v3054_v62 = vpop.permute.xlu0 %3053 }
 0x2c9   : > { %v938_v16 = vadd.f32 %v930_v53, %v810_v19  ;;  %v3731_v38 = vmul.f32 %v3489_v10, %v3058_v29  ;;  %v3728_v11 = vmul.f32 %v3485_v47, %v3043_v39  ;;  %v6819_v4 = vrot.slane %v2482_v25, %v5995_v20 }
 0x2ca   : > { %v6825_v48 = vsel %vm817_vm14, %v6518_v31, %v937_v24  ;;  %v6828_v56 = vrot.slane %v2324_v22, %v5995_v20  ;;  %v6831_v58 = vrot.slane %v2332_v14, %v5995_v20  ;;  %v2333_v5 = vcombine.high %v2317_v12, %v2317_v12  ;;  %2881 = vbcast.lane.b32.xlu1 %v2875_v15, 264 }
 0x2cb   : > { %7356 = vst [vmem:[#allocation19_spill] sm:$0xff] %v6825_v48  ;;  %v1292_v19 = vcombine.high %v6825_v48, %v6825_v48  ;;  %v1299_v47 = vrot.slane %v6825_v48, %v6069_v3  ;;  %v6841_v2 = vsel %vm818_vm0, %v6521_v33, %v938_v16  ;;  %3859 = vst [vmem:[#allocation3 + $0x268] sm:$0xff] %v3731_v38 }
 0x2cc   : > { %7357 = vst [vmem:[#allocation23_spill] sm:$0xff] %v6841_v2  ;;  %3856 = vst [vmem:[#allocation3 + $0x250] sm:$0xff] %v3728_v11  ;;  %v6844_v31 = vrot.slane %v2317_v12, %v5995_v20  ;;  %v1341_v34 = vcombine.high %v6841_v2, %v6841_v2  ;;  %2888 = vbcast.lane.b32.xlu0 %v6765_v9, 256  ;;  %v6850_v23 = vrot.slane %v2334_v52, %v5995_v20  ;;  %v6875_v53 = vpop.permute.xlu0 %3064 }
 0x2cd   : > { %v2335_v37 = vcombine.high %v2331_v36, %v2331_v36  ;;  %v6854_v33 = vrot.slane %v6814_v7, %v6069_v3  ;;  %v1306_v15 = vrot.slane %v1292_v19, %v6069_v3  ;;  %v1307_v8 = vcombine.high %v1299_v47, %v1299_v47 }
 0x2ce   : > { %v1315_v22 = vrot.slane %v1299_v47, %v6069_v3  ;;  %v3733_v41 = vmul.f32 %v6819_v4, %v3069_v43  ;;  %v1348_v45 = vrot.slane %v6841_v2, %v6069_v3  ;;  %v3730_v60 = vmul.f32 %v3489_v10, %v3054_v62  ;;  %2892 = vbcast.lane.b32.xlu1 %v6765_v9, 264  ;;  %v6873_v10 = vpop.permute.xlu1 %2727 }
 0x2cf   : > { %v6862_v40 = vrot.slane %v2331_v36, %v5995_v20  ;;  %v6865_v25 = vrot.slane %v2333_v5, %v5995_v20  ;;  %v1308_v21 = vcombine.high %v1306_v15, %v1306_v15  ;;  %v1322_v14 = vrot.slane %v1306_v15, %v6069_v3 }
 0x2d0   : > { %v1329_v12 = vrot.slane %v1307_v8, %v6069_v3  ;;  %v1337_v50 = vcombine.high %v1315_v22, %v1315_v22  ;;  %3861 = vst [vmem:[#allocation3 + $0x278] sm:$0xff] %v3733_v41  ;;  %v1585_v52 = vrot.slane %v1315_v22, %v5995_v20  ;;  %v1355_v24 = vrot.slane %v1341_v34, %v6069_v3 }
 0x2d1   : > { %3163 = vbcast.lane.b32.xlu0 %v6769_v32, 256  ;;  %3858 = vst [vmem:[#allocation3 + $0x260] sm:$0xff] %v3730_v60  ;;  %v6878_v29 = vrot.slane %v2335_v37, %v5995_v20  ;;  %v6882_v39 = vrot.slane %v6854_v33, %v6069_v3  ;;  %v1336_v9 = vrot.slane %v1308_v21, %v6069_v3 }
 0x2d2   : > { %v1338_v36 = vcombine.high %v1322_v14, %v1322_v14  ;;  %v1339_v49 = vcombine.high %v1329_v12, %v1329_v12  ;;  %v1589_v16 = vrot.slane %v1329_v12, %v5995_v20  ;;  %v1593_v38 = vrot.slane %v1337_v50, %v5995_v20  ;;  %3167 = vbcast.lane.b32.xlu1 %v6769_v32, 264  ;;  %v6908_v32 = vpop.permute.xlu0 %2723 }
 0x2d3   : > { %v1356_v11 = vcombine.high %v1348_v45, %v1348_v45  ;;  %v6888_v5 = vrot.slane %v1348_v45, %v6069_v3  ;;  %v1340_v47 = vcombine.high %v1336_v9, %v1336_v9  ;;  %v1601_v43 = vrot.slane %v1322_v14, %v5995_v20  ;;  %v6906_v14 = vpop.permute.xlu1 %2738 }
 0x2d4   : > { %v1597_v34 = vrot.slane %v1339_v49, %v5995_v20  ;;  %v1806_v62 = vmul.f32 %v6546_v46, %v1585_v52  ;;  %v1605_v37 = vrot.slane %v1336_v9, %v5995_v20  ;;  %v1807_v15 = vmul.f32 %v6555_v59, %v1585_v52 }
 0x2d5   : > { %v1808_v8 = vmul.f32 %v6546_v46, %v1589_v16  ;;  %v1809_v22 = vmul.f32 %v6555_v59, %v1589_v16  ;;  %3174 = vbcast.lane.b32.xlu0 %v6777_v18, 256  ;;  %v1609_v41 = vrot.slane %v1338_v36, %v5995_v20  ;;  %v1810_v45 = vmul.f32 %v6546_v46, %v1593_v38 }
 0x2d6   : > { %v1357_v60 = vcombine.high %v1355_v24, %v1355_v24  ;;  %v6904_v21 = vrot.slane %v1355_v24, %v6069_v3  ;;  %v1613_v12 = vrot.slane %v1340_v47, %v5995_v20  ;;  %v1811_v50 = vmul.f32 %v6555_v59, %v1593_v38  ;;  %3178 = vbcast.lane.b32.xlu1 %v6777_v18, 264 }
 0x2d7   : > { %v1812_v52 = vmul.f32 %v6546_v46, %v1597_v34  ;;  %v1378_v9 = vrot.slane %v1356_v11, %v6069_v3  ;;  %v1813_v36 = vmul.f32 %v6555_v59, %v1597_v34  ;;  %v1814_v49 = vmul.f32 %v6546_v46, %v1601_v43 }
 0x2d8   : > { %v1815_v16 = vmul.f32 %v6555_v59, %v1601_v43  ;;  %v2030_v24 = vmul.f32 1.442695, %v1806_v62  ;;  %v1816_v19 = vmul.f32 %v6546_v46, %v1605_v37  ;;  %v2032_v2 = vmul.f32 1.442695, %v1807_v15 }
 0x2d9   : > { %v2034_v6 = vmul.f32 1.442695, %v1808_v8  ;;  %v2036_v47 = vmul.f32 1.442695, %v1809_v22  ;;  %v1817_v38 = vmul.f32 %v6555_v59, %v1605_v37  ;;  %v1818_v48 = vmul.f32 %v6546_v46, %v1609_v41  ;;  %v6925_v8 = vpop.permute.xlu1 %2749  ;;  %v6927_v22 = vpop.permute.xlu0 %2734  ;;  %3185 = vbcast.lane.b32.xlu0 %v6781_v0, 256 }
 0x2da   : > { %5615 = vpow2.f32 %v2030_v24  ;;  %v2038_v11 = vmul.f32 1.442695, %v1810_v45  ;;  %v1819_v34 = vmul.f32 %v6555_v59, %v1609_v41  ;;  %v1820_v13 = vmul.f32 %v6546_v46, %v1613_v12  ;;  %3189 = vbcast.lane.b32.xlu1 %v6781_v0, 264 }
 0x2db   : > { %5617 = vpow2.f32 %v2032_v2  ;;  %v2040_v43 = vmul.f32 1.442695, %v1811_v50  ;;  %v1821_v62 = vmul.f32 %v6555_v59, %v1613_v12  ;;  %v2042_v18 = vmul.f32 1.442695, %v1812_v52 }
 0x2dc   : > { %5619 = vpow2.f32 %v2034_v6  ;;  %v1385_v15 = vrot.slane %v1357_v60, %v6069_v3  ;;  %v2044_v37 = vmul.f32 1.442695, %v1813_v36  ;;  %v2046_v24 = vmul.f32 1.442695, %v1814_v49 }
 0x2dd   : > { %5621 = vpow2.f32 %v2036_v47  ;;  %v2048_v45 = vmul.f32 1.442695, %v1815_v16  ;;  %v2050_v41 = vmul.f32 1.442695, %v1816_v19  ;;  %v1386_v46 = vcombine.high %v6888_v5, %v6888_v5  ;;  %v6938_v36 = vpop.permute.xlu1 %2760  ;;  %v6940_v49 = vpop.permute.xlu0 %2745  ;;  %3196 = vbcast.lane.b32.xlu0 %v6785_v42, 256 }
 0x2de   : > { %5623 = vpow2.f32 %v2038_v11  ;;  %v1388_v2 = vcombine.high %v1378_v9, %v1378_v9  ;;  %v2052_v6 = vmul.f32 1.442695, %v1817_v38  ;;  %v2054_v60 = vmul.f32 1.442695, %v1818_v48  ;;  %3200 = vbcast.lane.b32.xlu1 %v6785_v42, 264  ;;  %v5686_v11 = vld [vmem:[%s5879_s7] sm:$0xff] }
 0x2df   : > { %5625 = vpow2.f32 %v2040_v43  ;;  %v1617_v12 = vrot.slane %v6888_v5, %v5995_v20  ;;  %v1387_v50 = vcombine.high %v6904_v21, %v6904_v21  ;;  %v1389_v52 = vcombine.high %v1385_v15, %v1385_v15 }
 0x2e0   : > { %5627 = vpow2.f32 %v2042_v18  ;;  %v1621_v19 = vrot.slane %v1378_v9, %v5995_v20  ;;  %v2056_v0 = vmul.f32 1.442695, %v1819_v34  ;;  %v2058_v16 = vmul.f32 1.442695, %v1820_v13 }
 0x2e1   : > { %5629 = vpow2.f32 %v2044_v37  ;;  %v1625_v48 = vrot.slane %v1386_v46, %v5995_v20  ;;  %v2060_v47 = vmul.f32 1.442695, %v1821_v62  ;;  %v1629_v5 = vrot.slane %v1388_v2, %v5995_v20  ;;  %v6955_v37 = vpop.permute.xlu1 %2771  ;;  %3207 = vbcast.lane.b32.xlu0 %v6791_v54, 256 }
 0x2e2   : > { %5631 = vpow2.f32 %v2046_v24  ;;  %v1633_v38 = vrot.slane %v6904_v21, %v5995_v20  ;;  %v1637_v9 = vrot.slane %v1385_v15, %v5995_v20  ;;  %v1822_v34 = vmul.f32 %v5686_v11, %v1617_v12  ;;  %v6957_v24 = vpop.permute.xlu0 %2756  ;;  %v6960_v15 = vld [vmem:[%s5879_s7 + $0x8] sm:$0xff]  ;;  %3211 = vbcast.lane.b32.xlu1 %v6791_v54, 264 }
 0x2e3   : > { %5633 = vpow2.f32 %v2048_v45  ;;  %v1823_v13 = vmul.f32 %v6555_v59, %v1617_v12  ;;  %v1641_v62 = vrot.slane %v1387_v50, %v5995_v20  ;;  %v6953_v18 = vrot.slane %v1389_v52, %v5995_v20 }
 0x2e4   : > { %v5616_v43 = vpop.eup %5615  ;;  %5635 = vpow2.f32 %v2050_v41  ;;  %v1824_v21 = vmul.f32 %v5686_v11, %v1621_v19  ;;  %v1825_v45 = vmul.f32 %v6960_v15, %v1621_v19  ;;  %v1826_v59 = vmul.f32 %v5686_v11, %v1625_v48 }
 0x2e5   : > { %v5618_v42 = vpop.eup %5617  ;;  %5637 = vpow2.f32 %v2052_v6  ;;  %2190 = vst [vmem:[#allocation2 + $0x300] sm:$0xff] %v5616_v43  ;;  %v1827_v41 = vmul.f32 %v6960_v15, %v1625_v48  ;;  %v1828_v2 = vmul.f32 %v5686_v11, %v1629_v5  ;;  %v1829_v12 = vmul.f32 %v6960_v15, %v1629_v5  ;;  %3218 = vbcast.lane.b32.xlu0 %v6795_v55, 256 }
 0x2e6   : > { %v5620_v46 = vpop.eup %5619  ;;  %5639 = vpow2.f32 %v2054_v60  ;;  %2191 = vst [vmem:[#allocation2 + $0x308] sm:$0xff] %v5618_v42  ;;  %v1830_v50 = vmul.f32 %v5686_v11, %v1633_v38  ;;  %v1831_v52 = vmul.f32 %v6960_v15, %v1633_v38  ;;  %v2062_v19 = vmul.f32 1.442695, %v1822_v34  ;;  %v2783_v42 = vpop.permute.xlu1 %2782  ;;  %3222 = vbcast.lane.b32.xlu1 %v6795_v55, 264 }
 0x2e7   : > { %v5622_v6 = vpop.eup %5621  ;;  %5641 = vpow2.f32 %v2056_v0  ;;  %2192 = vst [vmem:[#allocation2 + $0x310] sm:$0xff] %v5620_v46  ;;  %v2064_v43 = vmul.f32 1.442695, %v1823_v13  ;;  %v1832_v60 = vmul.f32 %v5686_v11, %v1637_v9  ;;  %v6969_v48 = vmul.f32 %v6960_v15, %v1637_v9  ;;  %v2768_v61 = vpop.permute.xlu0 %2767 }
 0x2e8   : > { %v5624_v26 = vpop.eup %5623  ;;  %5643 = vpow2.f32 %v2058_v16  ;;  %2193 = vst [vmem:[#allocation2 + $0x318] sm:$0xff] %v5622_v6  ;;  %v2066_v5 = vmul.f32 1.442695, %v1824_v21  ;;  %v6971_v54 = vmul.f32 %v5686_v11, %v1641_v62  ;;  %v6974_v0 = vmul.f32 %v6960_v15, %v1641_v62 }
 0x2e9   : > { %v5626_v57 = vpop.eup %5625  ;;  %5645 = vpow2.f32 %v2060_v47  ;;  %2194 = vst [vmem:[#allocation2 + $0x320] sm:$0xff] %v5624_v26  ;;  %v2068_v38 = vmul.f32 1.442695, %v1825_v45  ;;  %v6977_v16 = vmul.f32 %v5686_v11, %v6953_v18  ;;  %v2070_v9 = vmul.f32 1.442695, %v1826_v59  ;;  %3229 = vbcast.lane.b32.xlu0 %v6800_v1, 256 }
 0x2ea   : > { %v5628_v34 = vpop.eup %5627  ;;  %2195 = vst [vmem:[#allocation2 + $0x328] sm:$0xff] %v5626_v57  ;;  %5647 = vpow2.f32 %v2062_v19  ;;  %v2072_v13 = vmul.f32 1.442695, %v1827_v41  ;;  %v2074_v46 = vmul.f32 1.442695, %v1828_v2  ;;  %v3671_v57 = vmul.f32 %v6806_v44, %v6873_v10  ;;  %3233 = vbcast.lane.b32.xlu1 %v6800_v1, 264 }
 0x2eb   : > { %v5630_v21 = vpop.eup %5629  ;;  %2196 = vst [vmem:[#allocation2 + $0x330] sm:$0xff] %v5628_v34  ;;  %5649 = vpow2.f32 %v2064_v43  ;;  %v2076_v47 = vmul.f32 1.442695, %v1829_v12  ;;  %v2078_v26 = vmul.f32 1.442695, %v1830_v50  ;;  %v3732_v45 = vmul.f32 %v6819_v4, %v6875_v53  ;;  %v2794_v4 = vpop.permute.xlu1 %2793 }
 0x2ec   : > { %v5632_v6 = vpop.eup %5631  ;;  %2197 = vst [vmem:[#allocation2 + $0x338] sm:$0xff] %v5630_v21  ;;  %5651 = vpow2.f32 %v2066_v5  ;;  %v2080_v62 = vmul.f32 1.442695, %v1831_v52  ;;  %v6979_v51 = vmul.f32 1.442695, %v1832_v60  ;;  %v3673_v59 = vmul.f32 %v6828_v56, %v6906_v14  ;;  %3799 = vst [vmem:[#allocation3 + $0x88] sm:$0xff] %v3671_v57  ;;  %v2779_v53 = vpop.permute.xlu0 %2778 }
 0x2ed   : > { %v5634_v11 = vpop.eup %5633  ;;  %2198 = vst [vmem:[#allocation2 + $0x340] sm:$0xff] %v5632_v6  ;;  %5653 = vpow2.f32 %v2068_v38  ;;  %v3670_v41 = vmul.f32 %v6806_v44, %v6908_v32  ;;  %v3675_v10 = vmul.f32 %v6831_v58, %v6925_v8  ;;  %v3672_v55 = vmul.f32 %v6828_v56, %v6927_v22  ;;  %3860 = vst [vmem:[#allocation3 + $0x270] sm:$0xff] %v3732_v45 }
 0x2ee   : > { %v5636_v2 = vpop.eup %5635  ;;  %2199 = vst [vmem:[#allocation2 + $0x348] sm:$0xff] %v5634_v11  ;;  %5655 = vpow2.f32 %v2070_v9  ;;  %v3677_v12 = vmul.f32 %v6850_v23, %v6938_v36  ;;  %3801 = vst [vmem:[#allocation3 + $0x98] sm:$0xff] %v3673_v59  ;;  %v3674_v44 = vmul.f32 %v6831_v58, %v6940_v49  ;;  %v3679_v14 = vmul.f32 %v6844_v31, %v6955_v37 }
 0x2ef   : > { %v5638_v50 = vpop.eup %5637  ;;  %2200 = vst [vmem:[#allocation2 + $0x350] sm:$0xff] %v5636_v2  ;;  %5657 = vpow2.f32 %v2072_v13  ;;  %3798 = vst [vmem:[#allocation3 + $0x80] sm:$0xff] %v3670_v41  ;;  %v3676_v56 = vmul.f32 %v6850_v23, %v6957_v24  ;;  %v3681_v8 = vmul.f32 %v6862_v40, %v2783_v42  ;;  %v3678_v58 = vmul.f32 %v6844_v31, %v2768_v61 }
 0x2f0   : > { %v5640_v32 = vpop.eup %5639  ;;  %2201 = vst [vmem:[#allocation2 + $0x358] sm:$0xff] %v5638_v50  ;;  %5659 = vpow2.f32 %v2074_v46  ;;  %3803 = vst [vmem:[#allocation3 + $0xa8] sm:$0xff] %v3675_v10  ;;  %v3683_v22 = vmul.f32 %v6865_v25, %v2794_v4  ;;  %v1837_v23 = vmul.f32 %v6960_v15, %v6953_v18  ;;  %v2084_v49 = vmul.f32 1.442695, %v6969_v48  ;;  %v2805_v18 = vpop.permute.xlu1 %2804 }
 0x2f1   : > { %3800 = vst [vmem:[#allocation3 + $0x90] sm:$0xff] %v3672_v55  ;;  %3805 = vst [vmem:[#allocation3 + $0xb8] sm:$0xff] %v3677_v12  ;;  %v5642_v36 = vpop.eup %5641  ;;  %5661 = vpow2.f32 %v2076_v47  ;;  %v3680_v37 = vmul.f32 %v6862_v40, %v2779_v53  ;;  %v2086_v61 = vmul.f32 1.442695, %v6971_v54  ;;  %v3238_v31 = vrot.slane %v7349_v35, %v7345_v28  ;;  %v2790_v24 = vpop.permute.xlu0 %2789 }
 0x2f2   : > { %2202 = vst [vmem:[#allocation2 + $0x360] sm:$0xff] %v5640_v32  ;;  %3802 = vst [vmem:[#allocation3 + $0xa0] sm:$0xff] %v3674_v44  ;;  %v5644_v1 = vpop.eup %5643  ;;  %5663 = vpow2.f32 %v2078_v26  ;;  %v2088_v52 = vmul.f32 1.442695, %v6974_v0  ;;  %v3685_v40 = vmul.f32 %v6878_v29, %v2805_v18  ;;  %v3682_v19 = vmul.f32 %v6865_v25, %v2790_v24 }
 0x2f3   : > { %3807 = vst [vmem:[#allocation3 + $0xc8] sm:$0xff] %v3679_v14  ;;  %3804 = vst [vmem:[#allocation3 + $0xb0] sm:$0xff] %v3676_v56  ;;  %v5646_v15 = vpop.eup %5645  ;;  %5665 = vpow2.f32 %v2080_v62  ;;  %v2090_v35 = vmul.f32 1.442695, %v6977_v16  ;;  %3240 = vbcast.lane.b32.xlu0 %v3238_v31, 256  ;;  %3244 = vbcast.lane.b32.xlu1 %v3238_v31, 264  ;;  %v3497_v5 = vrot.slane %v6882_v39, %v5995_v20 }
 0x2f4   : > { %2203 = vst [vmem:[#allocation2 + $0x368] sm:$0xff] %v5642_v36  ;;  %3809 = vst [vmem:[#allocation3 + $0xd8] sm:$0xff] %v3681_v8  ;;  %v5648_v43 = vpop.eup %5647  ;;  %5667 = vpow2.f32 %v6979_v51  ;;  %v2092_v48 = vmul.f32 1.442695, %v1837_v23  ;;  %v7358_v25 = vcombine.high %v6854_v33, %v6854_v33  ;;  %v2897_v54 = vrot.slane %v6424_v17, %v5995_v20  ;;  %v3080_v0 = vpop.permute.xlu1 %3079 }
 0x2f5   : > { %3806 = vst [vmem:[#allocation3 + $0xc0] sm:$0xff] %v3678_v58  ;;  %3811 = vst [vmem:[#allocation3 + $0xe8] sm:$0xff] %v3683_v22  ;;  %v5650_v60 = vpop.eup %5649  ;;  %5669 = vpow2.f32 %v2084_v49  ;;  %v2801_v38 = vpop.permute.xlu0 %2800  ;;  %v3735_v16 = vmul.f32 %v3497_v5, %v3080_v0  ;;  %v2908_v47 = vrot.slane %v6424_v17, %v7347_v63  ;;  %v2528_v59 = vcombine.high %v6882_v39, %v6882_v39  ;;  %v7359_v49 = vld [vmem:[#allocation14_spill] sm:$0xff] }
 0x2f6   : > { %2204 = vst [vmem:[#allocation2 + $0x370] sm:$0xff] %v5644_v1  ;;  %3808 = vst [vmem:[#allocation3 + $0xd0] sm:$0xff] %v3680_v37  ;;  %v7026_v42 = vrot.slane %v7358_v25, %v6069_v3  ;;  %v5652_v51 = vpop.eup %5651  ;;  %5671 = vpow2.f32 %v2086_v61  ;;  %v3684_v9 = vmul.f32 %v6878_v29, %v2801_v38  ;;  %v2483_v41 = vcombine.high %v6814_v7, %v6814_v7  ;;  %v7361_v25 = vld [vmem:[#allocation16_spill] sm:$0xff] }
 0x2f7   : > { %2205 = vst [vmem:[#allocation2 + $0x378] sm:$0xff] %v5646_v15  ;;  %2206 = vst [vmem:[#allocation2 + $0x380] sm:$0xff] %v5648_v43  ;;  %v5654_v34 = vpop.eup %5653  ;;  %5673 = vpow2.f32 %v2088_v52  ;;  %2899 = vbcast.lane.b32.xlu0 %v2897_v54, 256  ;;  %2903 = vbcast.lane.b32.xlu1 %v2897_v54, 264  ;;  %v2919_v10 = vrot.slane %v6424_v17, %v7350_v27  ;;  %v3505_v53 = vrot.slane %v2528_v59, %v5995_v20  ;;  %v7360_v52 = vld [vmem:[#allocation15_spill] sm:$0xff] }
 0x2f8   : > { %3813 = vst [vmem:[#allocation3 + $0xf8] sm:$0xff] %v3685_v40  ;;  %3810 = vst [vmem:[#allocation3 + $0xe0] sm:$0xff] %v3682_v19  ;;  %v5656_v13 = vpop.eup %5655  ;;  %5675 = vpow2.f32 %v2090_v35  ;;  %v3501_v21 = vrot.slane %v7026_v42, %v5995_v20  ;;  %v3091_v26 = vpop.permute.xlu1 %3090  ;;  %v2530_v39 = vcombine.high %v7026_v42, %v7026_v42  ;;  %v2497_v7 = vrot.slane %v2483_v41, %v6069_v3 }
 0x2f9   : > { %2207 = vst [vmem:[#allocation2 + $0x388] sm:$0xff] %v5650_v60  ;;  %2208 = vst [vmem:[#allocation2 + $0x390] sm:$0xff] %v5652_v51  ;;  %v5658_v33 = vpop.eup %5657  ;;  %5677 = vpow2.f32 %v2092_v48  ;;  %v3076_v29 = vpop.permute.xlu0 %3075  ;;  %v2930_v44 = vrot.slane %v6424_v17, %v7351_v30  ;;  %v2941_v37 = vrot.slane %v6424_v17, %v7359_v49  ;;  %v2952_v40 = vrot.slane %v6424_v17, %v7360_v52 }
 0x2fa   : > { %2209 = vst [vmem:[#allocation2 + $0x398] sm:$0xff] %v5654_v34  ;;  %2210 = vst [vmem:[#allocation2 + $0x3a0] sm:$0xff] %v5656_v13  ;;  %v5660_v46 = vpop.eup %5659  ;;  %v3737_v62 = vmul.f32 %v3501_v21, %v3091_v26  ;;  %v3734_v57 = vmul.f32 %v3497_v5, %v3076_v29  ;;  %v3509_v22 = vrot.slane %v2530_v39, %v5995_v20  ;;  %v7362_v26 = vld [vmem:[#allocation25_spill] sm:$0xff] }
 0x2fb   : > { %3863 = vst [vmem:[#allocation3 + $0x288] sm:$0xff] %v3735_v16  ;;  %3812 = vst [vmem:[#allocation3 + $0xf0] sm:$0xff] %v3684_v9  ;;  %v5662_v6 = vpop.eup %5661  ;;  %2910 = vbcast.lane.b32.xlu0 %v2908_v47, 256  ;;  %2914 = vbcast.lane.b32.xlu1 %v2908_v47, 264  ;;  %v2513_v36 = vrot.slane %v2497_v7, %v6069_v3  ;;  %v2499_v23 = vcombine.high %v2497_v7, %v2497_v7 }
 0x2fc   : > { %2211 = vst [vmem:[#allocation2 + $0x3a8] sm:$0xff] %v5658_v33  ;;  %2212 = vst [vmem:[#allocation2 + $0x3b0] sm:$0xff] %v5660_v46  ;;  %v5664_v11 = vpop.eup %5663  ;;  %v3102_v14 = vpop.permute.xlu1 %3101  ;;  %v2963_v42 = vrot.slane %v6424_v17, %v7361_v25  ;;  %v2974_v9 = vrot.slane %v6424_v17, %v7345_v28  ;;  %v3249_v29 = vrot.slane %v7362_v26, %v5995_v20 }
 0x2fd   : > { %2213 = vst [vmem:[#allocation2 + $0x3b8] sm:$0xff] %v5662_v6  ;;  %v5666_v45 = vpop.eup %5665  ;;  %2214 = vst [vmem:[#allocation2 + $0x3c0] sm:$0xff] %v5664_v11  ;;  %v3087_v56 = vpop.permute.xlu0 %3086  ;;  %v3739_v8 = vmul.f32 %v3505_v53, %v3102_v14  ;;  %v3513_v24 = vrot.slane %v2513_v36, %v5995_v20  ;;  %v2527_v15 = vrot.slane %v2499_v23, %v6069_v3 }
 0x2fe   : > { %3865 = vst [vmem:[#allocation3 + $0x298] sm:$0xff] %v3737_v62  ;;  %3862 = vst [vmem:[#allocation3 + $0x280] sm:$0xff] %v3734_v57  ;;  %v5668_v2 = vpop.eup %5667  ;;  %v3736_v58 = vmul.f32 %v3501_v21, %v3087_v56  ;;  %v2529_v5 = vcombine.high %v2513_v36, %v2513_v36  ;;  %v5688_v62 = vld [vmem:[#allocation5 + $0x10] sm:$0xff]  ;;  %v7363_v57 = vld [vmem:[#allocation24_spill] sm:$0xff]  ;;  %v3260_v41 = vrot.slane %v7362_v26, %v7347_v63 }
 0x2ff   : > { %2215 = vst [vmem:[#allocation2 + $0x3c8] sm:$0xff] %v5666_v45  ;;  %v5670_v55 = vpop.eup %5669  ;;  %2216 = vst [vmem:[#allocation2 + $0x3d0] sm:$0xff] %v5668_v2  ;;  %2921 = vbcast.lane.b32.xlu0 %v2919_v10, 256  ;;  %2925 = vbcast.lane.b32.xlu1 %v2919_v10, 264  ;;  %v3517_v48 = vrot.slane %v2527_v15, %v5995_v20  ;;  %v2531_v16 = vcombine.high %v2527_v15, %v2527_v15 }
 0x300   : > { %v5672_v12 = vpop.eup %5671  ;;  %2217 = vst [vmem:[#allocation2 + $0x3d8] sm:$0xff] %v5670_v55  ;;  %3867 = vst [vmem:[#allocation3 + $0x2a8] sm:$0xff] %v3739_v8  ;;  %v3113_v1 = vpop.permute.xlu1 %3112  ;;  %v3521_v34 = vrot.slane %v2529_v5, %v5995_v20  ;;  %v2224_v11 = vmul.f32 %v5688_v62, %v7363_v57  ;;  %v3293_v8 = vrot.slane %v7362_v26, %v7359_v49 }
 0x301   : > { %v5674_v4 = vpop.eup %5673  ;;  %2218 = vst [vmem:[#allocation2 + $0x3e0] sm:$0xff] %v5672_v12  ;;  %3864 = vst [vmem:[#allocation3 + $0x290] sm:$0xff] %v3736_v58  ;;  %v3098_v61 = vpop.permute.xlu0 %3097  ;;  %v3741_v31 = vmul.f32 %v3509_v22, %v3113_v1  ;;  %v3525_v47 = vrot.slane %v2531_v16, %v5995_v20 }
 0x302   : > { %v5676_v50 = vpop.eup %5675  ;;  %2219 = vst [vmem:[#allocation2 + $0x3e8] sm:$0xff] %v5674_v4  ;;  %v3738_v18 = vmul.f32 %v3505_v53, %v3098_v61  ;;  %v2343_v10 = vrot.slane %v2224_v11, %v6069_v3  ;;  %v3271_v4 = vrot.slane %v7362_v26, %v7350_v27  ;;  %v7082_v61 = vld [vmem:[#allocation6] sm:$0xff]  }
 0x303   : > { %v5678_v32 = vpop.eup %5677  ;;  %2220 = vst [vmem:[#allocation2 + $0x3f0] sm:$0xff] %v5676_v50  ;;  %2932 = vbcast.lane.b32.xlu0 %v2930_v44, 256  ;;  %2936 = vbcast.lane.b32.xlu1 %v2930_v44, 264  ;;  %3869 = vst [vmem:[#allocation3 + $0x2b8] sm:$0xff] %v3741_v31  ;;  %v3282_v50 = vrot.slane %v7362_v26, %v7351_v30  ;;  %v2336_v30 = vcombine.high %v2224_v11, %v2224_v11  ;;  %v7084_v31 = vld [vmem:[#allocation6 + $0x8] sm:$0xff]  }
 0x304   : > { %2221 = vst [vmem:[#allocation2 + $0x3f8] sm:$0xff] %v5678_v32  ;;  %3866 = vst [vmem:[#allocation3 + $0x2a0] sm:$0xff] %v3738_v18  ;;  %v2359_v39 = vrot.slane %v2343_v10, %v6069_v3  ;;  %v2351_v7 = vcombine.high %v2343_v10, %v2343_v10  ;;  %v3304_v18 = vrot.slane %v7362_v26, %v7360_v52 }
 0x305   : > { %v3124_v19 = vpop.permute.xlu1 %3123  ;;  %v3109_v43 = vpop.permute.xlu0 %3108 }
 0x306   : > { %v3743_v35 = vmul.f32 %v3513_v24, %v3124_v19  ;;  %v3740_v60 = vmul.f32 %v3509_v22, %v3109_v43  ;;  %v3401_v14 = vrot.slane %v2359_v39, %v5995_v20  ;;  %v2373_v27 = vrot.slane %v2351_v7, %v6069_v3 }
 0x307   : > { %2943 = vbcast.lane.b32.xlu0 %v2941_v37, 256  ;;  %2947 = vbcast.lane.b32.xlu1 %v2941_v37, 264  ;;  %v2381_v36 = vcombine.high %v2359_v39, %v2359_v39 }
 0x308   : > { %3871 = vst [vmem:[#allocation3 + $0x2c8] sm:$0xff] %v3743_v35  ;;  %3868 = vst [vmem:[#allocation3 + $0x2b0] sm:$0xff] %v3740_v60  ;;  %v3405_v22 = vrot.slane %v2373_v27, %v5995_v20  ;;  %v2383_v15 = vcombine.high %v2373_v27, %v2373_v27  ;;  %v3315_v60 = vrot.slane %v7362_v26, %v7361_v25 }
 0x309   : > { %v3135_v51 = vpop.permute.xlu1 %3134  ;;  %v3120_v54 = vpop.permute.xlu0 %3119 }
 0x30a   : > { %v3745_v0 = vmul.f32 %v3517_v48, %v3135_v51  ;;  %v3742_v38 = vmul.f32 %v3513_v24, %v3120_v54  ;;  %v3409_v24 = vrot.slane %v2381_v36, %v5995_v20  ;;  %v3413_v52 = vrot.slane %v2383_v15, %v5995_v20 }
 0x30b   : > { %2954 = vbcast.lane.b32.xlu0 %v2952_v40, 256  ;;  %2958 = vbcast.lane.b32.xlu1 %v2952_v40, 264  ;;  %v2350_v40 = vrot.slane %v2336_v30, %v6069_v3 }
 0x30c   : > { %3873 = vst [vmem:[#allocation3 + $0x2d8] sm:$0xff] %v3745_v0  ;;  %3870 = vst [vmem:[#allocation3 + $0x2c0] sm:$0xff] %v3742_v38  ;;  %v3326_v38 = vrot.slane %v7362_v26, %v7345_v28 }
 0x30d   : > { %v3146_v13 = vpop.permute.xlu1 %3145  ;;  %v3131_v33 = vpop.permute.xlu0 %3130  ;;  %v2366_v5 = vrot.slane %v2350_v40, %v6069_v3 }
 0x30e   : > { %v3747_v21 = vmul.f32 %v3521_v34, %v3146_v13  ;;  %v3744_v46 = vmul.f32 %v3517_v48, %v3131_v33 }
 0x30f   : > { %2965 = vbcast.lane.b32.xlu0 %v2963_v42, 256  ;;  %2969 = vbcast.lane.b32.xlu1 %v2963_v42, 264  ;;  %v2352_v42 = vcombine.high %v2350_v40, %v2350_v40  ;;  %v3417_v25 = vrot.slane %v2366_v5, %v5995_v20 }
 0x310   : > { %3875 = vst [vmem:[#allocation3 + $0x2e8] sm:$0xff] %v3747_v21  ;;  %3872 = vst [vmem:[#allocation3 + $0x2d0] sm:$0xff] %v3744_v46 }
 0x311   : > { %v3142_v59 = vpop.permute.xlu0 %3141  ;;  %v2380_v16 = vrot.slane %v2352_v42, %v6069_v3 }
 0x312   : > { %v3746_v17 = vmul.f32 %v3521_v34, %v3142_v59 }
 0x313   : > { %2976 = vbcast.lane.b32.xlu0 %v2974_v9, 256  ;;  %2980 = vbcast.lane.b32.xlu1 %v2974_v9, 264  ;;  %v3421_v46 = vrot.slane %v2380_v16, %v5995_v20  ;;  %v2384_v59 = vcombine.high %v2380_v16, %v2380_v16 }
 0x314   : > { %v3157_v6 = vpop.permute.xlu1 %3156  ;;  %3874 = vst [vmem:[#allocation3 + $0x2e0] sm:$0xff] %v3746_v17 }
 0x315   : > { %v3749_v45 = vmul.f32 %v3525_v47, %v3157_v6  ;;  %v7364_v6 = vld [vmem:[#allocation19_spill] sm:$0xff] }
 0x316   : > { %v3153_v55 = vpop.permute.xlu0 %3152 }
 0x317   : > { %3251 = vbcast.lane.b32.xlu0 %v3249_v29, 256  ;;  %3255 = vbcast.lane.b32.xlu1 %v3249_v29, 264  ;;  %3877 = vst [vmem:[#allocation3 + $0x2f8] sm:$0xff] %v3749_v45  ;;  %v3748_v12 = vmul.f32 %v3525_v47, %v3153_v55  ;;  %v2382_v47 = vcombine.high %v2366_v5, %v2366_v5  ;;  %v5689_v29 = vld [vmem:[#allocation5 + $0x30] sm:$0xff] }
 0x318   : > { %v960_v2 = vpop.permute.xlu1 %959  ;;  %v2228_v28 = vmul.f32 %v5689_v29, %v7364_v6 }
 0x319   : > { %982 = vst.msk [vmem:[#allocation4 + $0x10] sm:$0xff] %vm979_vm13, %v960_v2  ;;  %3876 = vst [vmem:[#allocation3 + $0x2f0] sm:$0xff] %v3748_v12  ;;  %v3425_v45 = vrot.slane %v2382_v47, %v5995_v20  ;;  %v3429_v12 = vrot.slane %v2384_v59, %v5995_v20 }
 0x31a   : > { %v968_v63 = vpop.permute.xlu0 %967  ;;  %v2539_v17 = vrot.slane %v2228_v28, %v6069_v3 }
 0x31b   : > { %3262 = vbcast.lane.b32.xlu0 %v3260_v41, 256  ;;  %3266 = vbcast.lane.b32.xlu1 %v3260_v41, 264  ;;  %986 = vst.msk [vmem:[#allocation4 + $0x30] sm:$0xff] %vm979_vm13, %v968_v63 }
 0x31c   : > { %v962_v53 = vpop.permute.xlu1 %961 }
 0x31d   : > { %983 = vst.msk [vmem:[#allocation4 + $0x18] sm:$0xff] %vm979_vm13, %v962_v53  ;;  %v2547_v53 = vcombine.high %v2539_v17, %v2539_v17 }
 0x31e   : > { %v2812_v56 = vpop.permute.xlu0 %2811 }
 0x31f   : > { %3273 = vbcast.lane.b32.xlu0 %v3271_v4, 256  ;;  %3277 = vbcast.lane.b32.xlu1 %v3271_v4, 264  ;;  %v3686_v32 = vmul.f32 %v3401_v14, %v2812_v56  ;;  %v2555_v4 = vrot.slane %v2539_v17, %v6069_v3 }
 0x320   : > { %v970_v44 = vpop.permute.xlu1 %969 }
 0x321   : > { %987 = vst.msk [vmem:[#allocation4 + $0x38] sm:$0xff] %vm979_vm13, %v970_v44  ;;  %3814 = vst [vmem:[#allocation3 + $0x100] sm:$0xff] %v3686_v32  ;;  %v3529_v44 = vrot.slane %v2555_v4, %v5995_v20 }
 0x322   : > { %v2823_v37 = vpop.permute.xlu0 %2822 }
 0x323   : > { %3284 = vbcast.lane.b32.xlu0 %v3282_v50, 256  ;;  %3288 = vbcast.lane.b32.xlu1 %v3282_v50, 264  ;;  %v3688_v1 = vmul.f32 %v3405_v22, %v2823_v37 }
 0x324   : > { %v2816_v58 = vpop.permute.xlu1 %2815 }
 0x325   : > { %v3687_v23 = vmul.f32 %v3401_v14, %v2816_v58  ;;  %3816 = vst [vmem:[#allocation3 + $0x110] sm:$0xff] %v3688_v1  ;;  %v2569_v14 = vrot.slane %v2547_v53, %v6069_v3  ;;  %v2577_v1 = vcombine.high %v2555_v4, %v2555_v4 }
 0x326   : > { %v2834_v43 = vpop.permute.xlu0 %2833 }
 0x327   : > { %3295 = vbcast.lane.b32.xlu0 %v3293_v8, 256  ;;  %3299 = vbcast.lane.b32.xlu1 %v3293_v8, 264  ;;  %3815 = vst [vmem:[#allocation3 + $0x108] sm:$0xff] %v3687_v23  ;;  %v3690_v35 = vmul.f32 %v3409_v24, %v2834_v43  ;;  %v3533_v58 = vrot.slane %v2569_v14, %v5995_v20 }
 0x328   : > { %v2827_v49 = vpop.permute.xlu1 %2826 }
 0x329   : > { %v3689_v19 = vmul.f32 %v3405_v22, %v2827_v49  ;;  %3818 = vst [vmem:[#allocation3 + $0x120] sm:$0xff] %v3690_v35  ;;  %v3537_v49 = vrot.slane %v2577_v1, %v5995_v20 }
 0x32b   : > { %3306 = vbcast.lane.b32.xlu0 %v3304_v18, 256  ;;  %3310 = vbcast.lane.b32.xlu1 %v3304_v18, 264  ;;  %3817 = vst [vmem:[#allocation3 + $0x118] sm:$0xff] %v3689_v19  ;;  %v2532_v18 = vcombine.high %v2228_v28, %v2228_v28 }
 0x32c   : > { %v2838_v48 = vpop.permute.xlu1 %2837 }
 0x32d   : > { %v3691_v51 = vmul.f32 %v3409_v24, %v2838_v48  ;;  %v2845_v54 = vpop.permute.xlu0 %2844  ;;  %v2579_v24 = vcombine.high %v2569_v14, %v2569_v14  ;;  %v2546_v15 = vrot.slane %v2532_v18, %v6069_v3 }
 0x32e   : > { %v3692_v0 = vmul.f32 %v3413_v52, %v2845_v54 }
 0x32f   : > { %3317 = vbcast.lane.b32.xlu0 %v3315_v60, 256  ;;  %3321 = vbcast.lane.b32.xlu1 %v3315_v60, 264  ;;  %3819 = vst [vmem:[#allocation3 + $0x128] sm:$0xff] %v3691_v51  ;;  %v3541_v60 = vrot.slane %v2579_v24, %v5995_v20  ;;  %v2562_v48 = vrot.slane %v2546_v15, %v6069_v3 }
 0x330   : > { %3820 = vst [vmem:[#allocation3 + $0x130] sm:$0xff] %v3692_v0  ;;  %v2849_v34 = vpop.permute.xlu1 %2848  ;;  %v2548_v54 = vcombine.high %v2546_v15, %v2546_v15 }
 0x331   : > { %v3693_v9 = vmul.f32 %v3413_v52, %v2849_v34  ;;  %v3545_v0 = vrot.slane %v2562_v48, %v5995_v20 }
 0x332   : > { %v2856_v13 = vpop.permute.xlu0 %2855 }
 0x333   : > { %3328 = vbcast.lane.b32.xlu0 %v3326_v38, 256  ;;  %3332 = vbcast.lane.b32.xlu1 %v3326_v38, 264  ;;  %v3694_v33 = vmul.f32 %v3417_v25, %v2856_v13  ;;  %3821 = vst [vmem:[#allocation3 + $0x138] sm:$0xff] %v3693_v9  ;;  %v2576_v9 = vrot.slane %v2548_v54, %v6069_v3 }
 0x334   : > { %v2860_v21 = vpop.permute.xlu1 %2859 }
 0x335   : > { %3822 = vst [vmem:[#allocation3 + $0x140] sm:$0xff] %v3694_v33  ;;  %v3695_v26 = vmul.f32 %v3417_v25, %v2860_v21  ;;  %v3549_v13 = vrot.slane %v2576_v9, %v5995_v20  ;;  %v2578_v33 = vcombine.high %v2562_v48, %v2562_v48  ;;  %v5690_v21 = vld [vmem:[#allocation5 + $0x18] sm:$0xff] }
 0x336   : > { %v2867_v62 = vpop.permute.xlu0 %2866 }
 0x337   : > { %v3696_v57 = vmul.f32 %v3421_v46, %v2867_v62  ;;  %3823 = vst [vmem:[#allocation3 + $0x148] sm:$0xff] %v3695_v26  ;;  %v3553_v62 = vrot.slane %v2578_v33, %v5995_v20 }
 0x338   : > { %v2871_v11 = vpop.permute.xlu1 %2870 }
 0x339   : > { %3824 = vst [vmem:[#allocation3 + $0x150] sm:$0xff] %v3696_v57  ;;  %v3697_v41 = vmul.f32 %v3421_v46, %v2871_v11  ;;  %v7365_v46 = vld [vmem:[#allocation20_spill] sm:$0xff]  ;;  %v2580_v57 = vcombine.high %v2576_v9, %v2576_v9  ;;  %v7366_v9 = vld [vmem:[#allocation23_spill] sm:$0xff] }
 0x33a   : > { %v2878_v2 = vpop.permute.xlu0 %2877  ;;  %v2225_v47 = vmul.f32 %v5690_v21, %v7365_v46 }
 0x33b   : > { %v3698_v10 = vmul.f32 %v3425_v45, %v2878_v2  ;;  %3825 = vst [vmem:[#allocation3 + $0x158] sm:$0xff] %v3697_v41  ;;  %v3557_v2 = vrot.slane %v2580_v57, %v5995_v20 }
 0x33c   : > { %v2882_v55 = vpop.permute.xlu1 %2881  ;;  %v2392_v11 = vrot.slane %v2225_v47, %v6069_v3 }
 0x33d   : > { %3826 = vst [vmem:[#allocation3 + $0x160] sm:$0xff] %v3698_v10  ;;  %v3699_v39 = vmul.f32 %v3425_v45, %v2882_v55 }
 0x33e   : > { %v2889_v7 = vpop.permute.xlu0 %2888  ;;  %v2408_v10 = vrot.slane %v2392_v11, %v6069_v3  ;;  %v2400_v55 = vcombine.high %v2392_v11, %v2392_v11 }
 0x33f   : > { %v3700_v63 = vmul.f32 %v3429_v12, %v2889_v7  ;;  %3827 = vst [vmem:[#allocation3 + $0x168] sm:$0xff] %v3699_v39 }
 0x340   : > { %v2893_v50 = vpop.permute.xlu1 %2892  ;;  %v3433_v7 = vrot.slane %v2408_v10, %v5995_v20 }
 0x341   : > { %3828 = vst [vmem:[#allocation3 + $0x170] sm:$0xff] %v3700_v63  ;;  %v3701_v27 = vmul.f32 %v3429_v12, %v2893_v50  ;;  %v2422_v63 = vrot.slane %v2400_v55, %v6069_v3 }
 0x343   : > { %v3164_v56 = vpop.permute.xlu0 %3163  ;;  %3829 = vst [vmem:[#allocation3 + $0x178] sm:$0xff] %v3701_v27 }
 0x344   : > { %v3750_v32 = vmul.f32 %v3529_v44, %v3164_v56  ;;  %v3168_v8 = vpop.permute.xlu1 %3167  ;;  %v3437_v56 = vrot.slane %v2422_v63, %v5995_v20 }
 0x345   : > { %v3751_v22 = vmul.f32 %v3529_v44, %v3168_v8  ;;  %v2385_v8 = vcombine.high %v2225_v47, %v2225_v47 }
 0x346   : > { %3878 = vst [vmem:[#allocation3 + $0x300] sm:$0xff] %v3750_v32  ;;  %v2430_v32 = vcombine.high %v2408_v10, %v2408_v10 }
 0x347   : > { %v3175_v36 = vpop.permute.xlu0 %3174  ;;  %3879 = vst [vmem:[#allocation3 + $0x308] sm:$0xff] %v3751_v22  ;;  %v2399_v1 = vrot.slane %v2385_v8, %v6069_v3 }
 0x348   : > { %v3752_v30 = vmul.f32 %v3533_v58, %v3175_v36  ;;  %v3179_v23 = vpop.permute.xlu1 %3178 }
 0x349   : > { %v3753_v37 = vmul.f32 %v3533_v58, %v3179_v23  ;;  %v3441_v23 = vrot.slane %v2430_v32, %v5995_v20 }
 0x34a   : > { %3880 = vst [vmem:[#allocation3 + $0x310] sm:$0xff] %v3752_v30 }
 0x34b   : > { %3881 = vst [vmem:[#allocation3 + $0x318] sm:$0xff] %v3753_v37  ;;  %v3186_v40 = vpop.permute.xlu0 %3185  ;;  %v2432_v37 = vcombine.high %v2422_v63, %v2422_v63 }
 0x34c   : > { %v3190_v19 = vpop.permute.xlu1 %3189  ;;  %v3754_v43 = vmul.f32 %v3537_v49, %v3186_v40 }
 0x34d   : > { %v3755_v35 = vmul.f32 %v3537_v49, %v3190_v19  ;;  %v3445_v40 = vrot.slane %v2432_v37, %v5995_v20  ;;  %v2415_v19 = vrot.slane %v2399_v1, %v6069_v3 }
 0x34e   : > { %3882 = vst [vmem:[#allocation3 + $0x320] sm:$0xff] %v3754_v43  ;;  %v2401_v43 = vcombine.high %v2399_v1, %v2399_v1 }
 0x34f   : > { %3883 = vst [vmem:[#allocation3 + $0x328] sm:$0xff] %v3755_v35  ;;  %v3197_v52 = vpop.permute.xlu0 %3196 }
 0x350   : > { %v3201_v5 = vpop.permute.xlu1 %3200  ;;  %v3756_v42 = vmul.f32 %v3541_v60, %v3197_v52 }
 0x351   : > { %v3757_v51 = vmul.f32 %v3541_v60, %v3201_v5  ;;  %v3449_v5 = vrot.slane %v2415_v19, %v5995_v20 }
 0x352   : > { %3884 = vst [vmem:[#allocation3 + $0x330] sm:$0xff] %v3756_v42  ;;  %v2429_v42 = vrot.slane %v2401_v43, %v6069_v3 }
 0x353   : > { %3885 = vst [vmem:[#allocation3 + $0x338] sm:$0xff] %v3757_v51  ;;  %v3208_v38 = vpop.permute.xlu0 %3207 }
 0x354   : > { %v3212_v34 = vpop.permute.xlu1 %3211  ;;  %v3758_v25 = vmul.f32 %v3545_v0, %v3208_v38 }
 0x355   : > { %v3759_v16 = vmul.f32 %v3545_v0, %v3212_v34  ;;  %v3453_v34 = vrot.slane %v2429_v42, %v5995_v20 }
 0x356   : > { %3886 = vst [vmem:[#allocation3 + $0x340] sm:$0xff] %v3758_v25  ;;  %v2431_v25 = vcombine.high %v2415_v19, %v2415_v19 }
 0x357   : > { %3887 = vst [vmem:[#allocation3 + $0x348] sm:$0xff] %v3759_v16  ;;  %v3219_v29 = vpop.permute.xlu0 %3218  ;;  %v5691_v16 = vld [vmem:[#allocation5 + $0x38] sm:$0xff] }
 0x358   : > { %v3223_v6 = vpop.permute.xlu1 %3222  ;;  %v3760_v28 = vmul.f32 %v3549_v13, %v3219_v29  ;;  %v3457_v29 = vrot.slane %v2431_v25, %v5995_v20 }
 0x359   : > { %v3761_v26 = vmul.f32 %v3549_v13, %v3223_v6  ;;  %v2229_v13 = vmul.f32 %v5691_v16, %v7366_v9  ;;  %v2433_v6 = vcombine.high %v2429_v42, %v2429_v42 }
 0x35a   : > { %3888 = vst [vmem:[#allocation3 + $0x350] sm:$0xff] %v3760_v28 }
 0x35b   : > { %3889 = vst [vmem:[#allocation3 + $0x358] sm:$0xff] %v3761_v26  ;;  %v3230_v45 = vpop.permute.xlu0 %3229  ;;  %v2588_v28 = vrot.slane %v2229_v13, %v6069_v3 }
 0x35c   : > { %v3234_v59 = vpop.permute.xlu1 %3233  ;;  %v3762_v17 = vmul.f32 %v3553_v62, %v3230_v45  ;;  %v3461_v45 = vrot.slane %v2433_v6, %v5995_v20 }
 0x35d   : > { %v3763_v41 = vmul.f32 %v3553_v62, %v3234_v59  ;;  %v2604_v59 = vrot.slane %v2588_v28, %v6069_v3 }
 0x35e   : > { %3890 = vst [vmem:[#allocation3 + $0x360] sm:$0xff] %v3762_v17  ;;  %v2596_v17 = vcombine.high %v2588_v28, %v2588_v28 }
 0x35f   : > { %3891 = vst [vmem:[#allocation3 + $0x368] sm:$0xff] %v3763_v41 }
 0x365   : > { %v3241_v12 = vpop.permute.xlu0 %3240  ;;  %v3245_v4 = vpop.permute.xlu1 %3244 }
 0x366   : > { %v3764_v53 = vmul.f32 %v3557_v2, %v3241_v12  ;;  %v3765_v39 = vmul.f32 %v3557_v2, %v3245_v4  ;;  %v3561_v12 = vrot.slane %v2604_v59, %v5995_v20  ;;  %v2618_v4 = vrot.slane %v2596_v17, %v6069_v3 }
 0x368   : > { %3892 = vst [vmem:[#allocation3 + $0x370] sm:$0xff] %v3764_v53  ;;  %3893 = vst [vmem:[#allocation3 + $0x378] sm:$0xff] %v3765_v39 }
 0x369   : > { %v2900_v50 = vpop.permute.xlu0 %2899  ;;  %v2904_v44 = vpop.permute.xlu1 %2903 }
 0x36a   : > { %v3702_v14 = vmul.f32 %v3433_v7, %v2900_v50  ;;  %v3703_v27 = vmul.f32 %v3433_v7, %v2904_v44  ;;  %v3565_v50 = vrot.slane %v2618_v4, %v5995_v20  ;;  %v2626_v44 = vcombine.high %v2604_v59, %v2604_v59 }
 0x36c   : > { %3830 = vst [vmem:[#allocation3 + $0x180] sm:$0xff] %v3702_v14  ;;  %3831 = vst [vmem:[#allocation3 + $0x188] sm:$0xff] %v3703_v27  ;;  %v2581_v14 = vcombine.high %v2229_v13, %v2229_v13 }
 0x36d   : > { %v2911_v58 = vpop.permute.xlu0 %2910  ;;  %v2915_v22 = vpop.permute.xlu1 %2914 }
 0x36e   : > { %v3704_v36 = vmul.f32 %v3437_v56, %v2911_v58  ;;  %v3705_v30 = vmul.f32 %v3437_v56, %v2915_v22  ;;  %v3569_v58 = vrot.slane %v2626_v44, %v5995_v20  ;;  %v2628_v22 = vcombine.high %v2618_v4, %v2618_v4 }
 0x370   : > { %3832 = vst [vmem:[#allocation3 + $0x190] sm:$0xff] %v3704_v36  ;;  %3833 = vst [vmem:[#allocation3 + $0x198] sm:$0xff] %v3705_v30  ;;  %v2595_v36 = vrot.slane %v2581_v14, %v6069_v3 }
 0x371   : > { %v2922_v18 = vpop.permute.xlu0 %2921  ;;  %v2926_v49 = vpop.permute.xlu1 %2925 }
 0x372   : > { %v3706_v24 = vmul.f32 %v3441_v23, %v2922_v18  ;;  %v3707_v15 = vmul.f32 %v3441_v23, %v2926_v49  ;;  %v3573_v18 = vrot.slane %v2628_v22, %v5995_v20  ;;  %v2611_v49 = vrot.slane %v2595_v36, %v6069_v3 }
 0x374   : > { %3834 = vst [vmem:[#allocation3 + $0x1a0] sm:$0xff] %v3706_v24  ;;  %3835 = vst [vmem:[#allocation3 + $0x1a8] sm:$0xff] %v3707_v15  ;;  %v2597_v24 = vcombine.high %v2595_v36, %v2595_v36 }
 0x375   : > { %v2933_v35 = vpop.permute.xlu0 %2932  ;;  %v2937_v60 = vpop.permute.xlu1 %2936 }
 0x376   : > { %v3708_v48 = vmul.f32 %v3445_v40, %v2933_v35  ;;  %v3709_v52 = vmul.f32 %v3445_v40, %v2937_v60  ;;  %v3577_v35 = vrot.slane %v2611_v49, %v5995_v20  ;;  %v2625_v60 = vrot.slane %v2597_v24, %v6069_v3 }
 0x378   : > { %3836 = vst [vmem:[#allocation3 + $0x1b0] sm:$0xff] %v3708_v48  ;;  %3837 = vst [vmem:[#allocation3 + $0x1b8] sm:$0xff] %v3709_v52  ;;  %v2629_v9 = vcombine.high %v2625_v60, %v2625_v60 }
 0x379   : > { %v2944_v51 = vpop.permute.xlu0 %2943  ;;  %v2948_v54 = vpop.permute.xlu1 %2947 }
 0x37a   : > { %v3710_v0 = vmul.f32 %v3449_v5, %v2944_v51  ;;  %v3711_v38 = vmul.f32 %v3449_v5, %v2948_v54  ;;  %v3581_v51 = vrot.slane %v2625_v60, %v5995_v20  ;;  %v2627_v54 = vcombine.high %v2611_v49, %v2611_v49 }
 0x37c   : > { %3838 = vst [vmem:[#allocation3 + $0x1c0] sm:$0xff] %v3710_v0  ;;  %3839 = vst [vmem:[#allocation3 + $0x1c8] sm:$0xff] %v3711_v38  ;;  %v3585_v16 = vrot.slane %v2627_v54, %v5995_v20 }
 0x37d   : > { %v2955_v33 = vpop.permute.xlu0 %2954  ;;  %v2959_v21 = vpop.permute.xlu1 %2958 }
 0x37e   : > { %v3712_v46 = vmul.f32 %v3453_v34, %v2955_v33  ;;  %v3713_v47 = vmul.f32 %v3453_v34, %v2959_v21 }
 0x380   : > { %3840 = vst [vmem:[#allocation3 + $0x1d0] sm:$0xff] %v3712_v46  ;;  %3841 = vst [vmem:[#allocation3 + $0x1d8] sm:$0xff] %v3713_v47  ;;  %v3589_v46 = vrot.slane %v2629_v9, %v5995_v20 }
 0x381   : > { %v2966_v26 = vpop.permute.xlu0 %2965  ;;  %v2970_v62 = vpop.permute.xlu1 %2969 }
 0x382   : > { %v3714_v57 = vmul.f32 %v3457_v29, %v2966_v26  ;;  %v3715_v11 = vmul.f32 %v3457_v29, %v2970_v62 }
 0x384   : > { %3842 = vst [vmem:[#allocation3 + $0x1e0] sm:$0xff] %v3714_v57  ;;  %3843 = vst [vmem:[#allocation3 + $0x1e8] sm:$0xff] %v3715_v11 }
 0x385   : > { %v2977_v41 = vpop.permute.xlu0 %2976  ;;  %v2981_v2 = vpop.permute.xlu1 %2980 }
 0x386   : > { %v3716_v10 = vmul.f32 %v3461_v45, %v2977_v41  ;;  %v3717_v55 = vmul.f32 %v3461_v45, %v2981_v2 }
 0x388   : > { %3844 = vst [vmem:[#allocation3 + $0x1f0] sm:$0xff] %v3716_v10  ;;  %3845 = vst [vmem:[#allocation3 + $0x1f8] sm:$0xff] %v3717_v55 }
 0x389   : > { %v3252_v53 = vpop.permute.xlu0 %3251  ;;  %v3256_v39 = vpop.permute.xlu1 %3255 }
 0x38a   : > { %v3766_v7 = vmul.f32 %v3561_v12, %v3252_v53  ;;  %v3767_v63 = vmul.f32 %v3561_v12, %v3256_v39 }
 0x38c   : > { %3894 = vst [vmem:[#allocation3 + $0x380] sm:$0xff] %v3766_v7  ;;  %3895 = vst [vmem:[#allocation3 + $0x388] sm:$0xff] %v3767_v63 }
 0x38d   : > { %v3263_v27 = vpop.permute.xlu0 %3262  ;;  %v3267_v56 = vpop.permute.xlu1 %3266 }
 0x38e   : > { %v3768_v32 = vmul.f32 %v3565_v50, %v3263_v27  ;;  %v3769_v8 = vmul.f32 %v3565_v50, %v3267_v56 }
 0x390   : > { %3896 = vst [vmem:[#allocation3 + $0x390] sm:$0xff] %v3768_v32  ;;  %3897 = vst [vmem:[#allocation3 + $0x398] sm:$0xff] %v3769_v8 }
 0x391   : > { %v3274_v30 = vpop.permute.xlu0 %3273  ;;  %v3278_v23 = vpop.permute.xlu1 %3277 }
 0x392   : > { %v3770_v37 = vmul.f32 %v3569_v58, %v3274_v30  ;;  %v3771_v1 = vmul.f32 %v3569_v58, %v3278_v23 }
 0x394   : > { %3898 = vst [vmem:[#allocation3 + $0x3a0] sm:$0xff] %v3770_v37  ;;  %3899 = vst [vmem:[#allocation3 + $0x3a8] sm:$0xff] %v3771_v1 }
 0x395   : > { %v3285_v15 = vpop.permute.xlu0 %3284  ;;  %v3289_v40 = vpop.permute.xlu1 %3288 }
 0x396   : > { %v3772_v19 = vmul.f32 %v3573_v18, %v3285_v15  ;;  %v3773_v43 = vmul.f32 %v3573_v18, %v3289_v40 }
 0x398   : > { %3900 = vst [vmem:[#allocation3 + $0x3b0] sm:$0xff] %v3772_v19  ;;  %3901 = vst [vmem:[#allocation3 + $0x3b8] sm:$0xff] %v3773_v43 }
 0x399   : > { %v3296_v48 = vpop.permute.xlu0 %3295  ;;  %v3300_v52 = vpop.permute.xlu1 %3299 }
 0x39a   : > { %v3774_v5 = vmul.f32 %v3577_v35, %v3296_v48  ;;  %v3775_v42 = vmul.f32 %v3577_v35, %v3300_v52 }
 0x39c   : > { %3902 = vst [vmem:[#allocation3 + $0x3c0] sm:$0xff] %v3774_v5  ;;  %3903 = vst [vmem:[#allocation3 + $0x3c8] sm:$0xff] %v3775_v42 }
 0x39d   : > { %v3307_v0 = vpop.permute.xlu0 %3306  ;;  %v3311_v38 = vpop.permute.xlu1 %3310 }
 0x39e   : > { %v3776_v34 = vmul.f32 %v3581_v51, %v3307_v0  ;;  %v3777_v25 = vmul.f32 %v3581_v51, %v3311_v38 }
 0x3a0   : > { %3904 = vst [vmem:[#allocation3 + $0x3d0] sm:$0xff] %v3776_v34  ;;  %3905 = vst [vmem:[#allocation3 + $0x3d8] sm:$0xff] %v3777_v25 }
 0x3a1   : > { %v3318_v13 = vpop.permute.xlu0 %3317  ;;  %v3322_v3 = vpop.permute.xlu1 %3321 }
 0x3a2   : > { %v3778_v33 = vmul.f32 %v3585_v16, %v3318_v13  ;;  %v3779_v21 = vmul.f32 %v3585_v16, %v3322_v3 }
 0x3a4   : > { %3906 = vst [vmem:[#allocation3 + $0x3e0] sm:$0xff] %v3778_v33  ;;  %3907 = vst [vmem:[#allocation3 + $0x3e8] sm:$0xff] %v3779_v21 }
 0x3a5   : > { %v3329_v47 = vpop.permute.xlu0 %3328  ;;  %v3333_v29 = vpop.permute.xlu1 %3332 }
 0x3a6   : > { %v3780_v6 = vmul.f32 %v3589_v46, %v3329_v47  ;;  %v3781_v28 = vmul.f32 %v3589_v46, %v3333_v29 }
 0x3a8   : > { %3908 = vst [vmem:[#allocation3 + $0x3f0] sm:$0xff] %v3780_v6  ;;  %3909 = vst [vmem:[#allocation3 + $0x3f8] sm:$0xff] %v3781_v28 }
 0x3a9 LB: >> { %v5776_v20 = vmov 0.0|0.0   ;;  %s5077_s15 = sshll.u32 %s5770_s29, 7  ;;  %vm5777_vm2 = vmmov 0   ;;  %v5778_v26 = vmov 0.0   ;;  %s4993_s3 = sshll.u32 %s5770_s29, 3  ;;  %vm4660_vm3 = vcmask 1040384   ;;  %s5770_s29 = sphi %s7152_s29, %s3940_s29   ;;  %v5766_v61 = vphi %v7082_v61, %v7368_v61   ;;  %v5762_v31 = vphi %v7084_v31, %v7367_v31  }
 0x3aa   : >> { %5232 = vmatprep.subr.bf16.mxu0 %v5776_v20  ;;  %5235 = vmatprep.subr.bf16.mxu1 %v5776_v20  ;;  %s7166_s18 = scalar_lea.vmem [#allocation2], %s5077_s15  ;;  %s7170_s7 = scalar_lea.vmem [#allocation3], %s5077_s15  ;;  %vm4662_vm4 = vcmask 1041408   ;;  %vm4664_vm5 = vcmask 1042432   ;;  %vm4666_vm6 = vcmask 1043456   ;;  %vm4668_vm7 = vcmask 1044480  }
 0x3ab   : >> { %5164 = vmatprep.mubr.msk.f32.mxu0 %vm5777_vm2, %v5778_v26  ;;  %5171 = vmatprep.mubr.msk.f32.mxu1 %vm5777_vm2, %v5778_v26  ;;  %v3946_v62 = vld [vmem:[%s7166_s18] sm:$0xff]  ;;  %v3947_v57 = vld [vmem:[%s7166_s18 + $0x8] sm:$0xff]  ;;  %v4998_v41 = vld [vmem:[%s7166_s18 + $0x10] sm:$0xff]  ;;  %s7183_s21 = scalar_lea.vmem [#allocation4], %s4993_s3  ;;  %vm4670_vm8 = vcmask 1045504   ;;  %s4674_s26 = scalar_lea.vmem %s5894_s30, %s4993_s3  ;;  %vm4672_vm9 = vcmask 1046528  }
 0x3ac   : >> { %v3948_v45 = vmul.f32 %v5766_v61, %v3946_v62  ;;  %v3949_v59 = vmul.f32 %v5762_v31, %v3947_v57  ;;  %v4999_v2 = vld [vmem:[%s7166_s18 + $0x18] sm:$0xff]  ;;  %v5009_v63 = vld [vmem:[%s7166_s18 + $0x20] sm:$0xff]  ;;  %v5010_v50 = vld [vmem:[%s7166_s18 + $0x28] sm:$0xff]  ;;  %s3940_s29 = sadd.s32 1, %s5770_s29  }
 0x3ad   : >> { %v3956_v61 = vld [vmem:[%s7183_s21] sm:$0x1]  ;;  %v5020_v58 = vld [vmem:[%s7166_s18 + $0x30] sm:$0xff]  ;;  %v5021_v22 = vld [vmem:[%s7166_s18 + $0x38] sm:$0xff]  ;;  %p3937_p0 = scmp.ge.s32.totalorder %s3940_s29, 8  }
 0x3ae   : >> { %v5005_v23 = vld [vmem:[%s7183_s21 + $0x1] sm:$0x1]  ;;  %v5032_v40 = vld [vmem:[%s7166_s18 + $0x48] sm:$0xff]  ;;  %v5016_v19 = vld [vmem:[%s7183_s21 + $0x2] sm:$0x1] }
 0x3af   : >> { %v3951_v11 = vld [vmem:[%s7170_s7] sm:$0xff]  ;;  %v3952_v17 = vld [vmem:[%s7170_s7 + $0x8] sm:$0xff]  ;;  %v5002_v12 = vld [vmem:[%s7170_s7 + $0x10] sm:$0xff] }
 0x3b0   : >> { %v3953_v10 = vadd.f32 %v3951_v11, %v3948_v45  ;;  %v3954_v55 = vadd.f32 %v3952_v17, %v3949_v59  ;;  %v5003_v4 = vld [vmem:[%s7170_s7 + $0x18] sm:$0xff]  ;;  %v5013_v14 = vld [vmem:[%s7170_s7 + $0x20] sm:$0xff]  ;;  %v5014_v27 = vld [vmem:[%s7170_s7 + $0x28] sm:$0xff] }
 0x3b1   : >> { %v5024_v37 = vld [vmem:[%s7170_s7 + $0x30] sm:$0xff]  ;;  %v5025_v1 = vld [vmem:[%s7170_s7 + $0x38] sm:$0xff]  ;;  %v5031_v15 = vld [vmem:[%s7166_s18 + $0x40] sm:$0xff] }
 0x3b2   : >> { %v5233_v53 = vpack.c.bf16 %v3954_v55, %v3953_v10  ;;  %v4035_v39 = vmul.f32 %v4998_v41, %v3953_v10  ;;  %v4036_v7 = vmul.f32 %v4999_v2, %v3954_v55  ;;  %v5035_v60 = vld [vmem:[%s7170_s7 + $0x40] sm:$0xff]  ;;  %v5036_v48 = vld [vmem:[%s7170_s7 + $0x48] sm:$0xff]  ;;  %v5042_v51 = vld [vmem:[%s7166_s18 + $0x50] sm:$0xff] }
 0x3b3   : >> { %v5043_v54 = vld [vmem:[%s7166_s18 + $0x58] sm:$0xff]  ;;  %v5027_v34 = vld [vmem:[%s7183_s21 + $0x3] sm:$0x1]  ;;  %v5046_v25 = vld [vmem:[%s7170_s7 + $0x50] sm:$0xff] }
 0x3b4   : >> { %5234 = vmatpush3.bf16.msra.mxu0 %v5233_v53  ;;  %v4040_v31 = vadd.f32 %v5002_v12, %v4035_v39  ;;  %v4041_v44 = vadd.f32 %v5003_v4, %v4036_v7  ;;  %v5047_v16 = vld [vmem:[%s7170_s7 + $0x58] sm:$0xff]  ;;  %v5053_v33 = vld [vmem:[%s7166_s18 + $0x60] sm:$0xff]  ;;  %v5054_v21 = vld [vmem:[%s7166_s18 + $0x68] sm:$0xff] }
 0x3b5   : >> { %5238 = vmatprep.subr.bf16.mxu0 %v5776_v20  ;;  %v5038_v46 = vld [vmem:[%s7183_s21 + $0x4] sm:$0x1]  ;;  %v5058_v28 = vld [vmem:[%s7170_s7 + $0x68] sm:$0xff]  ;;  %v5064_v45 = vld [vmem:[%s7166_s18 + $0x70] sm:$0xff] }
 0x3b6   : >> { %v5236_v56 = vpack.c.bf16 %v4041_v44, %v4040_v31  ;;  %v4122_v32 = vmul.f32 %v5009_v63, %v4040_v31  ;;  %v4123_v8 = vmul.f32 %v5010_v50, %v4041_v44  ;;  %v5057_v6 = vld [vmem:[%s7170_s7 + $0x60] sm:$0xff]  ;;  %v5065_v59 = vld [vmem:[%s7166_s18 + $0x78] sm:$0xff]  ;;  %v5068_v10 = vld [vmem:[%s7170_s7 + $0x70] sm:$0xff] }
 0x3b7   : >> { %5165 = vmatmul.mubr.msk.f32.vlgmr.msra.gmra.mrb[0].mxu0 %vm979_vm13, %v3956_v61  ;;  %v5049_v17 = vld [vmem:[%s7183_s21 + $0x5] sm:$0x1]  ;;  %v5069_v55 = vld [vmem:[%s7170_s7 + $0x78] sm:$0xff]  ;;  %v5060_v39 = vld [vmem:[%s7183_s21 + $0x6] sm:$0x1] }
 0x3b8   : >> { %5237 = vmatpush3.bf16.msra.mxu1 %v5236_v56  ;;  %v4127_v36 = vadd.f32 %v5013_v14, %v4122_v32  ;;  %v4128_v30 = vadd.f32 %v5014_v27, %v4123_v8  ;;  %5178 = vmatprep.mubr.msk.f32.mxu0 %vm5777_vm2, %v5778_v26  ;;  %v5071_v61 = vld [vmem:[%s7183_s21 + $0x7] sm:$0x1] }
 0x3b9   : >> { %5241 = vmatprep.subr.bf16.mxu1 %v5776_v20 }
 0x3ba   : >> { %v4209_v18 = vmul.f32 %v5020_v58, %v4127_v36  ;;  %v4210_v49 = vmul.f32 %v5021_v22, %v4128_v30  ;;  %v5239_v24 = vpack.c.bf16 %v4128_v30, %v4127_v36 }
 0x3bb   : >> { %5172 = vmatmul.mubr.msk.f32.vlgmr.msra.gmra.mrb[0].mxu1 %vm979_vm13, %v5005_v23 }
 0x3bc   : >> { %5240 = vmatpush3.bf16.msra.mxu0 %v5239_v24  ;;  %v4214_v43 = vadd.f32 %v5024_v37, %v4209_v18  ;;  %v4215_v35 = vadd.f32 %v5025_v1, %v4210_v49  ;;  %5185 = vmatprep.mubr.msk.f32.mxu1 %vm5777_vm2, %v5778_v26 }
 0x3bd   : >> { %5244 = vmatprep.subr.bf16.mxu0 %v5776_v20 }
 0x3be   : >> { %v5242_v52 = vpack.c.bf16 %v4215_v35, %v4214_v43  ;;  %v4296_v5 = vmul.f32 %v5031_v15, %v4214_v43  ;;  %v4297_v42 = vmul.f32 %v5032_v40, %v4215_v35 }
 0x3bf   : >> { %5179 = vmatmul.mubr.msk.f32.vlgmr.msra.gmra.mrb[2].mxu0 %vm979_vm13, %v5016_v19 }
 0x3c0   : >> { %5243 = vmatpush3.bf16.msra.mxu1 %v5242_v52  ;;  %v4301_v0 = vadd.f32 %v5035_v60, %v4296_v5  ;;  %v4302_v38 = vadd.f32 %v5036_v48, %v4297_v42  ;;  %5192 = vmatprep.mubr.msk.f32.mxu0 %vm5777_vm2, %v5778_v26  ;;  %v4675_v42 = vld [vmem:[%s4674_s26] sm:$0xff] }
 0x3c1   : >> { %5247 = vmatprep.subr.bf16.mxu1 %v5776_v20 }
 0x3c2   : >> { %v5245_v9 = vpack.c.bf16 %v4302_v38, %v4301_v0  ;;  %v4383_v13 = vmul.f32 %v5042_v51, %v4301_v0  ;;  %v4384_v3 = vmul.f32 %v5043_v54, %v4302_v38 }
 0x3c3   : >> { %5186 = vmatmul.mubr.msk.f32.vlgmr.msra.gmra.mrb[2].mxu1 %vm979_vm13, %v5027_v34 }
 0x3c4   : >> { %5246 = vmatpush3.bf16.msra.mxu0 %v5245_v9  ;;  %v4388_v47 = vadd.f32 %v5046_v25, %v4383_v13  ;;  %v4389_v29 = vadd.f32 %v5047_v16, %v4384_v3  ;;  %5199 = vmatprep.mubr.msk.f32.mxu1 %vm5777_vm2, %v5778_v26 }
 0x3c5   : >> { %5250 = vmatprep.subr.bf16.mxu0 %v5776_v20 }
 0x3c6   : >> { %v5248_v62 = vpack.c.bf16 %v4389_v29, %v4388_v47  ;;  %v4470_v57 = vmul.f32 %v5053_v33, %v4388_v47  ;;  %v4471_v11 = vmul.f32 %v5054_v21, %v4389_v29 }
 0x3c7   : >> { %5193 = vmatmul.mubr.msk.f32.vlgmr.msra.gmra.mrb[4].mxu0 %vm979_vm13, %v5038_v46 }
 0x3c8   : >> { %5249 = vmatpush3.bf16.msra.mxu1 %v5248_v62  ;;  %v4475_v41 = vadd.f32 %v5057_v6, %v4470_v57  ;;  %v4476_v2 = vadd.f32 %v5058_v28, %v4471_v11  ;;  %5206 = vmatprep.mubr.msk.f32.mxu0 %vm5777_vm2, %v5778_v26 }
 0x3c9   : >> { %5253 = vmatprep.subr.bf16.mxu1 %v5776_v20 }
 0x3ca   : >> { %v5251_v12 = vpack.c.bf16 %v4476_v2, %v4475_v41  ;;  %v4557_v4 = vmul.f32 %v5064_v45, %v4475_v41  ;;  %v4558_v53 = vmul.f32 %v5065_v59, %v4476_v2 }
 0x3cb   : >> { %5200 = vmatmul.mubr.msk.f32.vlgmr.msra.gmra.mrb[4].mxu1 %vm979_vm13, %v5049_v17 }
 0x3cc   : >> { %5252 = vmatpush3.bf16.msra.mxu0 %v5251_v12  ;;  %v4562_v7 = vadd.f32 %v5068_v10, %v4557_v4   ;;  %v4563_v63 = vadd.f32 %v5069_v55, %v4558_v53   ;;  %5213 = vmatprep.mubr.msk.f32.mxu1 %vm5777_vm2, %v5778_v26 }
 0x3ce   : >> { %v5254_v50 = vpack.c.bf16 %v4563_v63, %v4562_v7  ;;  %4678 = vst [vmem:[#allocation6] sm:$0xff] (%p3937_p0), %v4562_v7  ;;  %4679 = vst [vmem:[#allocation6 + $0x8] sm:$0xff] (%p3937_p0), %v4563_v63 }
 0x3cf   : >> { %5207 = vmatmul.mubr.msk.f32.vlgmr.msra.gmra.mrb[6].mxu0 %vm979_vm13, %v5060_v39 }
 0x3d0   : >> { %5255 = vmatpush3.bf16.msra.mxu1 %v5254_v50 }
 0x3d3   : >> { %5214 = vmatmul.mubr.msk.f32.vlgmr.msra.gmra.mrb[6].mxu1 %vm979_vm13, %v5071_v61  ;;  %v7368_v61 = vmov %v4562_v7 }
 0x48a   : >> { %v4026_v20 = vpop.f32.mrb[0].mxu0 }
 0x48b   : >> { %v5166_v31 = vpop.f32.mrb[1].mxu0 }
 0x48c   : >> { %v7367_v31 = vmov %v4563_v63 }
 0x48e   : >> { %v4113_v44 = vpop.f32.mrb[0].mxu1 }
 0x48f   : >> { %v4640_v14 = vrot.slane %v4113_v44, 7  ;;  %v5173_v27 = vpop.f32.mrb[1].mxu1 }
 0x491   : >> { %v4661_v56 = vsel %vm4660_vm3, %v4026_v20, %v4640_v14 }
 0x492   : >> { %v4200_v32 = vpop.f32.mrb[2].mxu0 }
 0x493   : >> { %v4643_v8 = vrot.slane %v4200_v32, 6  ;;  %v5180_v58 = vpop.f32.mrb[3].mxu0 }
 0x495   : >> { %v4663_v22 = vsel %vm4662_vm4, %v4661_v56, %v4643_v8 }
 0x496   : >> { %v4287_v26 = vpop.f32.mrb[2].mxu1 }
 0x497   : >> { %v4646_v36 = vrot.slane %v4287_v26, 5  ;;  %v5187_v30 = vpop.f32.mrb[3].mxu1 }
 0x499   : >> { %v4665_v23 = vsel %vm4664_vm5, %v4663_v22, %v4646_v36 }
 0x49a   : >> { %v4374_v37 = vpop.f32.mrb[4].mxu0 }
 0x49b   : >> { %v4649_v1 = vrot.slane %v4374_v37, 4  ;;  %v5194_v18 = vpop.f32.mrb[5].mxu0 }
 0x49d   : >> { %v4667_v49 = vsel %vm4666_vm6, %v4665_v23, %v4649_v1 }
 0x49e   : >> { %v4461_v24 = vpop.f32.mrb[4].mxu1 }
 0x49f   : >> { %v4652_v15 = vrot.slane %v4461_v24, 3  ;;  %v5201_v40 = vpop.f32.mrb[5].mxu1 }
 0x4a1   : >> { %v4669_v19 = vsel %vm4668_vm7, %v4667_v49, %v4652_v15 }
 0x4a2   : >> { %v4548_v43 = vpop.f32.mrb[6].mxu0 }
 0x4a3   : >> { %v4655_v35 = vrot.slane %v4548_v43, 2  ;;  %v5208_v60 = vpop.f32.mrb[7].mxu0 }
 0x4a5   : >> { %v4671_v48 = vsel %vm4670_vm8, %v4669_v19, %v4655_v35 }
 0x4a6   : >> { %v4635_v52 = vpop.f32.mrb[6].mxu1  ;;  %3939 = sbr.rel (!%p3937_p0) target bundleno = 937 (0x3a9), region = 126 }
 0x4a7   : >> { %v4658_v5 = vrot.slane %v4635_v52, 1  ;;  %v5215_v51 = vpop.f32.mrb[7].mxu1 }
 0x4a9   : >> { %v4673_v54 = vsel %vm4672_vm9, %v4671_v48, %v4658_v5 }
 0x4aa   : >> { %v4676_v0 = vadd.f32 %v4675_v42, %v4673_v54 }
 0x4ac   : >> { %4677 = vst [vmem:[%s4674_s26] sm:$0xff] %v4676_v0 }
 0x4ad PF: > { %s16_s27 = sadd.s32 1, %s5758_s27   ;;  %s7369_s23 = sld [smem:[#allocation7_spill]] }
 0x4ae   : > { %p13_p1 = scmp.ge.s32.totalorder %s16_s27, 18   ;;  %s7370_s28 = sld [smem:[#allocation8_spill]] }
 0x4af   : > { %s7371_s10 = sld [smem:[#allocation9_spill]]  ;;  %s7372_s26 = sld [smem:[#allocation10_spill]] }
 0x4b0   : > { %s7373_s21 = smov %s5746_s24  ;;  %s7374_s22 = smov %s5750_s25 }
 0x4b1   :  { %15 = sbr.rel (!%p13_p1) target bundleno = 5 (0x5), region = 137 }
 0x4b4   : > { %s7375_s24 = smov %s7370_s28 }
 0x4b5   : > { %s7376_s25 = smov %s7371_s10 }

</bundles_post_ra>
